<compile_context>
chip_gen: v7x
topology: tpu7x:2x2x1
jax: 0.10.0
libtpu: 0.0.40
codegen_flags: <defaults>
</compile_context>

<pallas_src>
import jax
import jax.numpy as jnp
from jax.experimental import pallas as pl
from jax.experimental.pallas import tpu as pltpu

C = 128          # fixed by the module definition
KH = KW = 3
EPS = 1e-5       # nn.BatchNorm2d default eps
_STAT_CHUNK = 256


# --------------------------------------------------------------------------- #
# in-kernel helpers
# --------------------------------------------------------------------------- #
def _conv3x3(src, w_ref, pad_ref):
    """3x3 SAME conv of a (B, H, W, C) f32 block.

    src:     (B, H, W, C) f32 value
    w_ref:   (KH*KW*C, C) bf16 ref, rows ordered (dy, dx, cin)
    pad_ref: (B, H+2, W+2, C) f32 VMEM scratch
    returns  (B*H*W, C) f32 pre-BN conv output (no bias: cancelled by batch-stat BN)

    Implemented as 9 shifted-tap (M,128)x(128,128) bf16 MXU matmuls accumulated
    in f32 — no im2col scratch.
    """
    B, H, W, Cc = src.shape
    Hp, Wp = H + 2, W + 2
    M = B * H * W

    # Zero only the 1-wide halo; the interior is fully overwritten just below.
    pad_ref[:, 0:1, :, :] = jnp.zeros((B, 1, Wp, Cc), jnp.float32)
    pad_ref[:, Hp - 1:Hp, :, :] = jnp.zeros((B, 1, Wp, Cc), jnp.float32)
    pad_ref[:, :, 0:1, :] = jnp.zeros((B, Hp, 1, Cc), jnp.float32)
    pad_ref[:, :, Wp - 1:Wp, :] = jnp.zeros((B, Hp, 1, Cc), jnp.float32)
    pad_ref[:, 1:H + 1, 1:W + 1, :] = src

    acc = jnp.zeros((M, Cc), jnp.float32)
    t = 0
    for dy in range(KH):
        for dx in range(KW):
            tap = (pad_ref[:, dy:dy + H, dx:dx + W, :]
                   .reshape(M, Cc).astype(jnp.bfloat16))
            acc = acc + jnp.dot(tap, w_ref[t * Cc:(t + 1) * Cc, :],
                                preferred_element_type=jnp.float32)
            t += 1
    return acc


def _sum_sumsq(acc):
    """Per-channel one-pass BN partials [sum, sum(x^2)] -> (2, C).

    Streamed over row chunks so acc and acc*acc are never both live as full
    (M, C) f32 temps when M is large.
    """
    M, Cc = acc.shape
    s = jnp.zeros((1, Cc), jnp.float32)
    q = jnp.zeros((1, Cc), jnp.float32)
    for r in range(0, M, _STAT_CHUNK):
        blk = acc[r:r + _STAT_CHUNK]
        s = s + jnp.sum(blk, axis=0, keepdims=True)
        q = q + jnp.sum(blk * blk, axis=0, keepdims=True)
    return jnp.concatenate([s, q], axis=0)


# --------------------------------------------------------------------------- #
# pass 1: conv1 + per-block BN1 partial stats
# --------------------------------------------------------------------------- #
def _conv1_kernel(x_ref, w1_ref, y1_ref, s1_ref, pad_ref):
    acc = _conv3x3(x_ref[...], w1_ref, pad_ref)                     # (M, C) f32
    y1_ref[...] = acc.reshape(y1_ref.shape).astype(y1_ref.dtype)    # bf16 to HBM
    s1_ref[...] = _sum_sumsq(acc).reshape(s1_ref.shape)


# --------------------------------------------------------------------------- #
# pass 2: BN1 (folded) + ReLU + conv2 + per-block BN2 partial stats
# --------------------------------------------------------------------------- #
def _conv2_kernel(y1_ref, a1_ref, w2_ref, h1_ref, y2_ref, s2_ref, pad_ref):
    B, H, W, Cc = y1_ref.shape
    M = B * H * W
    y1 = y1_ref[...].astype(jnp.float32).reshape(M, Cc)
    h1 = jnp.maximum(y1 * a1_ref[0:1, :] + a1_ref[1:2, :], 0.0)     # BN1 + ReLU (f32)
    h1_ref[...] = h1.reshape(h1_ref.shape)                          # f32 (aliased later)
    acc = _conv3x3(h1.reshape(B, H, W, Cc), w2_ref, pad_ref)
    y2_ref[...] = acc.reshape(y2_ref.shape).astype(y2_ref.dtype)    # bf16 to HBM
    s2_ref[...] = _sum_sumsq(acc).reshape(s2_ref.shape)


# --------------------------------------------------------------------------- #
# pass 3: BN2 (folded) + residual (+h1) + ReLU   (output aliases h1's buffer)
# --------------------------------------------------------------------------- #
def _residual_kernel(h1_ref, y2_ref, a2_ref, o_ref):
    y2 = y2_ref[...].astype(jnp.float32)
    o_ref[...] = jnp.maximum(h1_ref[...] + y2 * a2_ref[0:1, :] + a2_ref[1:2, :], 0.0)


# --------------------------------------------------------------------------- #
# host-side glue
# --------------------------------------------------------------------------- #
def _bn_fold(partials, count, gamma, beta):
    """Combine per-block [sum, sumsq] partials -> per-channel (scale, shift).

    NOTE: one-pass var = E[x^2] - mu^2; fine in f32 at these sizes (see review
    correctness note about a Welford-style combine for very large N*H*W).
    """
    s = jnp.sum(partials, axis=0)                                   # (2, C)
    mu = s[0] / count
    var = jnp.maximum(s[1] / count - mu * mu, 0.0)                  # biased batch var
    scale = jax.lax.rsqrt(var + EPS) * gamma
    shift = beta - mu * scale
    return jnp.stack([scale, shift], axis=0)                        # (2, C) f32


def _vmem_cap_bytes():
    """Per-chip VMEM capacity; conservative fallback (v7x) if the query fails."""
    try:
        cap = int(getattr(pltpu.get_tpu_info(), "vmem_capacity_bytes"))
        if cap > 0:
            return cap
    except Exception:
        pass
    return 64 << 20


def _per_step_vmem_bytes(B, H, W):
    """Rough per-grid-step VMEM footprint (worst pass) for block of B images."""
    hw = B * H * W * C
    stream = 2 * hw * (4 + 4 + 2)                    # double-buffered image streams
    wts = 2 * KH * KW * C * C * 2                    # double-buffered bf16 weights
    pad = B * (H + 2) * (W + 2) * C * 4              # f32 padded scratch
    acc = 4 * hw                                     # f32 matmul accumulator
    return stream + wts + pad + acc + (2 << 20)


def _pick_bblk(N, H, W, budget):
    """Largest useful divisor of N: smallest block giving >=256 MXU rows that
    fits the VMEM budget, else the largest block that fits."""
    target_rows = 256
    divs = [d for d in range(1, N + 1) if N % d == 0]
    fit = [d for d in divs if _per_step_vmem_bytes(d, H, W) <= budget]
    if not fit:
        # TODO(synk): strip-mine H (row chunks with 1-row halo) for images too
        # large for a single-image block on v7x's 64 MiB VMEM.
        return 1
    for d in fit:
        if d * H * W >= target_rows:
            return d
    return fit[-1]


def res_layer_forward(x, params):
    """ResLayer forward, NHWC.  x: (N, H, W, 128) f32 -> (N, H, W, 128) f32."""
    N, H, W, Cc = x.shape
    assert Cc == C
    M = N * H * W

    # HWIO conv weights -> (9*C, C) bf16 matrices, rows ordered (dy, dx, cin).
    w1 = params["w1"].reshape(KH * KW * C, C).astype(jnp.bfloat16)
    w2 = params["w2"].reshape(KH * KW * C, C).astype(jnp.bfloat16)
    # NOTE: conv biases b1/b2 intentionally unused: batch-stat BN cancels them.

    cap = _vmem_cap_bytes()
    budget = (cap * 3) // 4
    B = _pick_bblk(N, H, W, budget)                  # images per grid step
    G = N // B

    img_f32 = jax.ShapeDtypeStruct((N, H, W, C), jnp.float32)
    img_bf16 = jax.ShapeDtypeStruct((N, H, W, C), jnp.bfloat16)
    stats = jax.ShapeDtypeStruct((G, 2, C), jnp.float32)

    img_spec = pl.BlockSpec((B, H, W, C), lambda n: (n, 0, 0, 0))
    w_spec = pl.BlockSpec((KH * KW * C, C), lambda n: (0, 0))
    aff_spec = pl.BlockSpec((2, C), lambda n: (0, 0))
    stat_spec = pl.BlockSpec((1, 2, C), lambda n: (n, 0, 0))

    scratch = [pltpu.VMEM((B, H + 2, W + 2, C), jnp.float32)]       # padded block

    need = _per_step_vmem_bytes(B, H, W)
    cparams = pltpu.CompilerParams(
        dimension_semantics=("parallel",),           # batch grid axis -> megacore
        vmem_limit_bytes=int(min(max(2 * need, 32 << 20), (cap * 85) // 100)))

    conv_flops = 2 * M * (KH * KW * C) * C
    hwcb = M * C

    # ---- pass 1: conv1 + per-block BN1 partials ----
    y1, s1 = pl.pallas_call(
        _conv1_kernel,
        out_shape=(img_bf16, stats),
        grid=(G,),
        in_specs=[img_spec, w_spec],
        out_specs=(img_spec, stat_spec),
        scratch_shapes=scratch,
        compiler_params=cparams,
        cost_estimate=pl.CostEstimate(
            flops=conv_flops, transcendentals=0,
            bytes_accessed=hwcb * 4 + w1.size * 2 + hwcb * 2 + G * 2 * C * 4),
    )(x, w1)

    a1 = _bn_fold(s1, M, params["g1"], params["be1"])               # (2, C)

    # ---- pass 2: BN1 + ReLU + conv2 + per-block BN2 partials ----
    h1, y2, s2 = pl.pallas_call(
        _conv2_kernel,
        out_shape=(img_f32, img_bf16, stats),
        grid=(G,),
        in_specs=[img_spec, aff_spec, w_spec],
        out_specs=(img_spec, img_spec, stat_spec),
        scratch_shapes=scratch,
        compiler_params=cparams,
        cost_estimate=pl.CostEstimate(
            flops=conv_flops + 4 * hwcb, transcendentals=0,
            bytes_accessed=hwcb * (2 + 4 + 2) + w2.size * 2 + G * 2 * C * 4),
    )(y1, a1, w2)

    a2 = _bn_fold(s2, M, params["g2"], params["be2"])               # (2, C)

    # ---- pass 3: BN2 + residual + ReLU (elementwise; out aliases h1's buffer) ----
    out = pl.pallas_call(
        _residual_kernel,
        out_shape=img_f32,
        grid=(G,),
        in_specs=[img_spec, img_spec, aff_spec],
        out_specs=img_spec,
        compiler_params=cparams,
        input_output_aliases={0: 0},
        cost_estimate=pl.CostEstimate(
            flops=3 * hwcb, transcendentals=0,
            bytes_accessed=hwcb * (4 + 2 + 4)),
    )(h1, y2, a2)
    return out


# --------------------------------------------------------------------------- #
# pure-JAX f32 reference (faithful module semantics, incl. conv bias)
# --------------------------------------------------------------------------- #
def _reference(x, params):
    def conv(h, w, b):
        y = jax.lax.conv_general_dilated(
            h, w, window_strides=(1, 1), padding="SAME",
            dimension_numbers=("NHWC", "HWIO", "NHWC"))
        return y + b

    def bn(y, g, be):
        mu = jnp.mean(y, axis=(0, 1, 2), keepdims=True)
        var = jnp.mean((y - mu) ** 2, axis=(0, 1, 2), keepdims=True)
        return (y - mu) * jax.lax.rsqrt(var + EPS) * g + be

    h1 = jax.nn.relu(bn(conv(x, params["w1"], params["b1"]),
                        params["g1"], params["be1"]))
    h2 = bn(conv(h1, params["w2"], params["b2"]), params["g2"], params["be2"])
    return jax.nn.relu(h1 + h2)          # residual is the post-ReLU BN1 activation


def _init_params(key):
    ks = jax.random.split(key, 8)
    bound = (C * KH * KW) ** -0.5

    def w(k):
        return jax.random.uniform(k, (KH, KW, C, C), jnp.float32, -bound, bound)

    def b(k):
        return jax.random.uniform(k, (C,), jnp.float32, -bound, bound)

    return {
        "w1": w(ks[0]), "b1": b(ks[1]),
        "g1": 1.0 + 0.1 * jax.random.normal(ks[2], (C,), jnp.float32),
        "be1": 0.1 * jax.random.normal(ks[3], (C,), jnp.float32),
        "w2": w(ks[4]), "b2": b(ks[5]),
        "g2": 1.0 + 0.1 * jax.random.normal(ks[6], (C,), jnp.float32),
        "be2": 0.1 * jax.random.normal(ks[7], (C,), jnp.float32),
    }


if __name__ == "__main__":
    key = jax.random.PRNGKey(0)
    kx, kp = jax.random.split(key)

    N, H, W = 2, 8, 8                    # C fixed at 128 by the module
    # NHWC (channels-last): the PyTorch NCHW input (2,128,8,8) maps to this layout.
    x = jax.random.normal(kx, (N, H, W, C), jnp.float32)
    params = _init_params(kp)

    out = jax.block_until_ready(jax.jit(res_layer_forward)(x, params))
    ref = _reference(x, params)

    assert out.shape == (N, H, W, C)
    # bf16 MXU operands + bf16 y1/y2 intermediates (f32 accumulation, f32 stats)
    # vs the all-f32 reference: expected max-abs deviation ~1e-2 at these
    # magnitudes; assert with margin.
    err = float(jnp.max(jnp.abs(out - ref)))
    assert jnp.allclose(out, ref, atol=5e-2, rtol=5e-2), f"max abs err {err}"
    print("KERNEL_OK")
</pallas_src>

<mosaic_0001>
module attributes {stable_mosaic.version = 11 : i64} {
  func.func @_conv1_kernel(%arg0: i32, %arg1: memref<2x8x8x128xf32, #tpu.memory_space<vmem>>, %arg2: memref<1152x128xbf16, #tpu.memory_space<vmem>>, %arg3: memref<2x8x8x128xbf16, #tpu.memory_space<vmem>>, %arg4: memref<1x2x128xf32, #tpu.memory_space<vmem>>, %arg5: memref<2x10x10x128xf32, #tpu.memory_space<vmem>>) attributes {dimension_semantics = [#tpu.dimension_semantics<parallel>], iteration_bounds = array<i64: 1>, scalar_prefetch = 0 : i64, scratch_operands = 1 : i64, tpu.core_type = #tpu.core_type<tc>, window_params = [{transform_indices = @transform_0, window_bounds = array<i64: 2, 8, 8, 128>}, {pipeline_mode = #tpu.pipeline_mode<synchronous>, transform_indices = @transform_1, window_bounds = array<i64: 1152, 128>}, {transform_indices = @transform_2, window_bounds = array<i64: 2, 8, 8, 128>}, {transform_indices = @transform_3, window_bounds = array<i64: 1, 2, 128>}]} {
    %c0 = arith.constant 0 : index
    %c0_0 = arith.constant 0 : index
    %c0_1 = arith.constant 0 : index
    %c0_2 = arith.constant 0 : index
    %0 = vector.load %arg1[%c0, %c0_0, %c0_1, %c0_2] : memref<2x8x8x128xf32, #tpu.memory_space<vmem>>, vector<2x8x8x128xf32>
    %cst = arith.constant 0.000000e+00 : f32
    %1 = vector.broadcast %cst : f32 to vector<2x1x10x128xf32>
    %c0_3 = arith.constant 0 : index
    %c0_4 = arith.constant 0 : index
    %c0_5 = arith.constant 0 : index
    %c0_6 = arith.constant 0 : index
    %2 = vector.load %arg5[%c0_3, %c0_4, %c0_5, %c0_6] : memref<2x10x10x128xf32, #tpu.memory_space<vmem>>, vector<2x1x10x128xf32>
    tpu.vector_store %arg5[%c0_3, %c0_4, %c0_5, %c0_6], %1 {strides = array<i32>} : memref<2x10x10x128xf32, #tpu.memory_space<vmem>>, vector<2x1x10x128xf32>,
    %cst_7 = arith.constant 0.000000e+00 : f32
    %3 = vector.broadcast %cst_7 : f32 to vector<2x1x10x128xf32>
    %c0_8 = arith.constant 0 : index
    %c9 = arith.constant 9 : index
    %c0_9 = arith.constant 0 : index
    %c0_10 = arith.constant 0 : index
    %4 = vector.load %arg5[%c0_8, %c9, %c0_9, %c0_10] : memref<2x10x10x128xf32, #tpu.memory_space<vmem>>, vector<2x1x10x128xf32>
    tpu.vector_store %arg5[%c0_8, %c9, %c0_9, %c0_10], %3 {strides = array<i32>} : memref<2x10x10x128xf32, #tpu.memory_space<vmem>>, vector<2x1x10x128xf32>,
    %cst_11 = arith.constant 0.000000e+00 : f32
    %5 = vector.broadcast %cst_11 : f32 to vector<2x10x1x128xf32>
    %c0_12 = arith.constant 0 : index
    %c0_13 = arith.constant 0 : index
    %c0_14 = arith.constant 0 : index
    %c0_15 = arith.constant 0 : index
    %6 = vector.load %arg5[%c0_12, %c0_13, %c0_14, %c0_15] : memref<2x10x10x128xf32, #tpu.memory_space<vmem>>, vector<2x10x1x128xf32>
    tpu.vector_store %arg5[%c0_12, %c0_13, %c0_14, %c0_15], %5 {strides = array<i32>} : memref<2x10x10x128xf32, #tpu.memory_space<vmem>>, vector<2x10x1x128xf32>,
    %cst_16 = arith.constant 0.000000e+00 : f32
    %7 = vector.broadcast %cst_16 : f32 to vector<2x10x1x128xf32>
    %c0_17 = arith.constant 0 : index
    %c0_18 = arith.constant 0 : index
    %c9_19 = arith.constant 9 : index
    %c0_20 = arith.constant 0 : index
    %8 = vector.load %arg5[%c0_17, %c0_18, %c9_19, %c0_20] : memref<2x10x10x128xf32, #tpu.memory_space<vmem>>, vector<2x10x1x128xf32>
    tpu.vector_store %arg5[%c0_17, %c0_18, %c9_19, %c0_20], %7 {strides = array<i32>} : memref<2x10x10x128xf32, #tpu.memory_space<vmem>>, vector<2x10x1x128xf32>,
    %c0_21 = arith.constant 0 : index
    %c1 = arith.constant 1 : index
    %c1_22 = arith.constant 1 : index
    %c0_23 = arith.constant 0 : index
    %9 = vector.load %arg5[%c0_21, %c1, %c1_22, %c0_23] : memref<2x10x10x128xf32, #tpu.memory_space<vmem>>, vector<2x8x8x128xf32>
    tpu.vector_store %arg5[%c0_21, %c1, %c1_22, %c0_23], %0 {strides = array<i32>} : memref<2x10x10x128xf32, #tpu.memory_space<vmem>>, vector<2x8x8x128xf32>,
    %cst_24 = arith.constant 0.000000e+00 : f32
    %10 = vector.broadcast %cst_24 : f32 to vector<128x128xf32>
    %c0_25 = arith.constant 0 : index
    %c0_26 = arith.constant 0 : index
    %c0_27 = arith.constant 0 : index
    %c0_28 = arith.constant 0 : index
    %11 = vector.load %arg5[%c0_25, %c0_26, %c0_27, %c0_28] : memref<2x10x10x128xf32, #tpu.memory_space<vmem>>, vector<2x8x8x128xf32>
    %12 = vector.shape_cast %11 : vector<2x8x8x128xf32> to vector<128x128xf32>
    %13 = arith.truncf %12 : vector<128x128xf32> to vector<128x128xbf16>
    %c0_29 = arith.constant 0 : index
    %c0_30 = arith.constant 0 : index
    %14 = vector.load %arg2[%c0_29, %c0_30] : memref<1152x128xbf16, #tpu.memory_space<vmem>>, vector<128x128xbf16>
    %cst_31 = arith.constant dense<0.000000e+00> : vector<128x128xf32>
    %15 = tpu.matmul %13, %14, %cst_31 {dimension_numbers = #tpu.dot_dimension_numbers<[1], [0], [0], [1], [0, 0, 1, 1], [], []>} : vector<128x128xbf16>, vector<128x128xbf16>, vector<128x128xf32> -> vector<128x128xf32>
    %16 = arith.addf %10, %15 : vector<128x128xf32>
    %c0_32 = arith.constant 0 : index
    %c0_33 = arith.constant 0 : index
    %c1_34 = arith.constant 1 : index
    %c0_35 = arith.constant 0 : index
    %17 = vector.load %arg5[%c0_32, %c0_33, %c1_34, %c0_35] : memref<2x10x10x128xf32, #tpu.memory_space<vmem>>, vector<2x8x8x128xf32>
    %18 = vector.shape_cast %17 : vector<2x8x8x128xf32> to vector<128x128xf32>
    %19 = arith.truncf %18 : vector<128x128xf32> to vector<128x128xbf16>
    %c128 = arith.constant 128 : index
    %c0_36 = arith.constant 0 : index
    %20 = vector.load %arg2[%c128, %c0_36] : memref<1152x128xbf16, #tpu.memory_space<vmem>>, vector<128x128xbf16>
    %cst_37 = arith.constant dense<0.000000e+00> : vector<128x128xf32>
    %21 = tpu.matmul %19, %20, %cst_37 {dimension_numbers = #tpu.dot_dimension_numbers<[1], [0], [0], [1], [0, 0, 1, 1], [], []>} : vector<128x128xbf16>, vector<128x128xbf16>, vector<128x128xf32> -> vector<128x128xf32>
    %22 = arith.addf %16, %21 : vector<128x128xf32>
    %c0_38 = arith.constant 0 : index
    %c0_39 = arith.constant 0 : index
    %c2 = arith.constant 2 : index
    %c0_40 = arith.constant 0 : index
    %23 = vector.load %arg5[%c0_38, %c0_39, %c2, %c0_40] : memref<2x10x10x128xf32, #tpu.memory_space<vmem>>, vector<2x8x8x128xf32>
    %24 = vector.shape_cast %23 : vector<2x8x8x128xf32> to vector<128x128xf32>
    %25 = arith.truncf %24 : vector<128x128xf32> to vector<128x128xbf16>
    %c256 = arith.constant 256 : index
    %c0_41 = arith.constant 0 : index
    %26 = vector.load %arg2[%c256, %c0_41] : memref<1152x128xbf16, #tpu.memory_space<vmem>>, vector<128x128xbf16>
    %cst_42 = arith.constant dense<0.000000e+00> : vector<128x128xf32>
    %27 = tpu.matmul %25, %26, %cst_42 {dimension_numbers = #tpu.dot_dimension_numbers<[1], [0], [0], [1], [0, 0, 1, 1], [], []>} : vector<128x128xbf16>, vector<128x128xbf16>, vector<128x128xf32> -> vector<128x128xf32>
    %28 = arith.addf %22, %27 : vector<128x128xf32>
    %c0_43 = arith.constant 0 : index
    %c1_44 = arith.constant 1 : index
    %c0_45 = arith.constant 0 : index
    %c0_46 = arith.constant 0 : index
    %29 = vector.load %arg5[%c0_43, %c1_44, %c0_45, %c0_46] : memref<2x10x10x128xf32, #tpu.memory_space<vmem>>, vector<2x8x8x128xf32>
    %30 = vector.shape_cast %29 : vector<2x8x8x128xf32> to vector<128x128xf32>
    %31 = arith.truncf %30 : vector<128x128xf32> to vector<128x128xbf16>
    %c384 = arith.constant 384 : index
    %c0_47 = arith.constant 0 : index
    %32 = vector.load %arg2[%c384, %c0_47] : memref<1152x128xbf16, #tpu.memory_space<vmem>>, vector<128x128xbf16>
    %cst_48 = arith.constant dense<0.000000e+00> : vector<128x128xf32>
    %33 = tpu.matmul %31, %32, %cst_48 {dimension_numbers = #tpu.dot_dimension_numbers<[1], [0], [0], [1], [0, 0, 1, 1], [], []>} : vector<128x128xbf16>, vector<128x128xbf16>, vector<128x128xf32> -> vector<128x128xf32>
    %34 = arith.addf %28, %33 : vector<128x128xf32>
    %c0_49 = arith.constant 0 : index
    %c1_50 = arith.constant 1 : index
    %c1_51 = arith.constant 1 : index
    %c0_52 = arith.constant 0 : index
    %35 = vector.load %arg5[%c0_49, %c1_50, %c1_51, %c0_52] : memref<2x10x10x128xf32, #tpu.memory_space<vmem>>, vector<2x8x8x128xf32>
    %36 = vector.shape_cast %35 : vector<2x8x8x128xf32> to vector<128x128xf32>
    %37 = arith.truncf %36 : vector<128x128xf32> to vector<128x128xbf16>
    %c512 = arith.constant 512 : index
    %c0_53 = arith.constant 0 : index
    %38 = vector.load %arg2[%c512, %c0_53] : memref<1152x128xbf16, #tpu.memory_space<vmem>>, vector<128x128xbf16>
    %cst_54 = arith.constant dense<0.000000e+00> : vector<128x128xf32>
    %39 = tpu.matmul %37, %38, %cst_54 {dimension_numbers = #tpu.dot_dimension_numbers<[1], [0], [0], [1], [0, 0, 1, 1], [], []>} : vector<128x128xbf16>, vector<128x128xbf16>, vector<128x128xf32> -> vector<128x128xf32>
    %40 = arith.addf %34, %39 : vector<128x128xf32>
    %c0_55 = arith.constant 0 : index
    %c1_56 = arith.constant 1 : index
    %c2_57 = arith.constant 2 : index
    %c0_58 = arith.constant 0 : index
    %41 = vector.load %arg5[%c0_55, %c1_56, %c2_57, %c0_58] : memref<2x10x10x128xf32, #tpu.memory_space<vmem>>, vector<2x8x8x128xf32>
    %42 = vector.shape_cast %41 : vector<2x8x8x128xf32> to vector<128x128xf32>
    %43 = arith.truncf %42 : vector<128x128xf32> to vector<128x128xbf16>
    %c640 = arith.constant 640 : index
    %c0_59 = arith.constant 0 : index
    %44 = vector.load %arg2[%c640, %c0_59] : memref<1152x128xbf16, #tpu.memory_space<vmem>>, vector<128x128xbf16>
    %cst_60 = arith.constant dense<0.000000e+00> : vector<128x128xf32>
    %45 = tpu.matmul %43, %44, %cst_60 {dimension_numbers = #tpu.dot_dimension_numbers<[1], [0], [0], [1], [0, 0, 1, 1], [], []>} : vector<128x128xbf16>, vector<128x128xbf16>, vector<128x128xf32> -> vector<128x128xf32>
    %46 = arith.addf %40, %45 : vector<128x128xf32>
    %c0_61 = arith.constant 0 : index
    %c2_62 = arith.constant 2 : index
    %c0_63 = arith.constant 0 : index
    %c0_64 = arith.constant 0 : index
    %47 = vector.load %arg5[%c0_61, %c2_62, %c0_63, %c0_64] : memref<2x10x10x128xf32, #tpu.memory_space<vmem>>, vector<2x8x8x128xf32>
    %48 = vector.shape_cast %47 : vector<2x8x8x128xf32> to vector<128x128xf32>
    %49 = arith.truncf %48 : vector<128x128xf32> to vector<128x128xbf16>
    %c768 = arith.constant 768 : index
    %c0_65 = arith.constant 0 : index
    %50 = vector.load %arg2[%c768, %c0_65] : memref<1152x128xbf16, #tpu.memory_space<vmem>>, vector<128x128xbf16>
    %cst_66 = arith.constant dense<0.000000e+00> : vector<128x128xf32>
    %51 = tpu.matmul %49, %50, %cst_66 {dimension_numbers = #tpu.dot_dimension_numbers<[1], [0], [0], [1], [0, 0, 1, 1], [], []>} : vector<128x128xbf16>, vector<128x128xbf16>, vector<128x128xf32> -> vector<128x128xf32>
    %52 = arith.addf %46, %51 : vector<128x128xf32>
    %c0_67 = arith.constant 0 : index
    %c2_68 = arith.constant 2 : index
    %c1_69 = arith.constant 1 : index
    %c0_70 = arith.constant 0 : index
    %53 = vector.load %arg5[%c0_67, %c2_68, %c1_69, %c0_70] : memref<2x10x10x128xf32, #tpu.memory_space<vmem>>, vector<2x8x8x128xf32>
    %54 = vector.shape_cast %53 : vector<2x8x8x128xf32> to vector<128x128xf32>
    %55 = arith.truncf %54 : vector<128x128xf32> to vector<128x128xbf16>
    %c896 = arith.constant 896 : index
    %c0_71 = arith.constant 0 : index
    %56 = vector.load %arg2[%c896, %c0_71] : memref<1152x128xbf16, #tpu.memory_space<vmem>>, vector<128x128xbf16>
    %cst_72 = arith.constant dense<0.000000e+00> : vector<128x128xf32>
    %57 = tpu.matmul %55, %56, %cst_72 {dimension_numbers = #tpu.dot_dimension_numbers<[1], [0], [0], [1], [0, 0, 1, 1], [], []>} : vector<128x128xbf16>, vector<128x128xbf16>, vector<128x128xf32> -> vector<128x128xf32>
    %58 = arith.addf %52, %57 : vector<128x128xf32>
    %c0_73 = arith.constant 0 : index
    %c2_74 = arith.constant 2 : index
    %c2_75 = arith.constant 2 : index
    %c0_76 = arith.constant 0 : index
    %59 = vector.load %arg5[%c0_73, %c2_74, %c2_75, %c0_76] : memref<2x10x10x128xf32, #tpu.memory_space<vmem>>, vector<2x8x8x128xf32>
    %60 = vector.shape_cast %59 : vector<2x8x8x128xf32> to vector<128x128xf32>
    %61 = arith.truncf %60 : vector<128x128xf32> to vector<128x128xbf16>
    %c1024 = arith.constant 1024 : index
    %c0_77 = arith.constant 0 : index
    %62 = vector.load %arg2[%c1024, %c0_77] : memref<1152x128xbf16, #tpu.memory_space<vmem>>, vector<128x128xbf16>
    %cst_78 = arith.constant dense<0.000000e+00> : vector<128x128xf32>
    %63 = tpu.matmul %61, %62, %cst_78 {dimension_numbers = #tpu.dot_dimension_numbers<[1], [0], [0], [1], [0, 0, 1, 1], [], []>} : vector<128x128xbf16>, vector<128x128xbf16>, vector<128x128xf32> -> vector<128x128xf32>
    %64 = arith.addf %58, %63 : vector<128x128xf32>
    %65 = vector.shape_cast %64 : vector<128x128xf32> to vector<2x8x8x128xf32>
    %66 = arith.truncf %65 : vector<2x8x8x128xf32> to vector<2x8x8x128xbf16>
    %c0_79 = arith.constant 0 : index
    %c0_80 = arith.constant 0 : index
    %c0_81 = arith.constant 0 : index
    %c0_82 = arith.constant 0 : index
    %67 = vector.load %arg3[%c0_79, %c0_80, %c0_81, %c0_82] : memref<2x8x8x128xbf16, #tpu.memory_space<vmem>>, vector<2x8x8x128xbf16>
    tpu.vector_store %arg3[%c0_79, %c0_80, %c0_81, %c0_82], %66 {strides = array<i32>} : memref<2x8x8x128xbf16, #tpu.memory_space<vmem>>, vector<2x8x8x128xbf16>,
    %cst_83 = arith.constant 0.000000e+00 : f32
    %68 = vector.broadcast %cst_83 : f32 to vector<1x128xf32>
    %cst_84 = arith.constant 0.000000e+00 : f32
    %69 = vector.broadcast %cst_84 : f32 to vector<1x128xf32>
    %cst_85 = arith.constant dense<0.000000e+00> : vector<128xf32>
    %70 = vector.multi_reduction <add>, %64, %cst_85 [0] : vector<128x128xf32> to vector<128xf32>
    %71 = vector.shape_cast %70 : vector<128xf32> to vector<1x128xf32>
    %72 = arith.addf %68, %71 : vector<1x128xf32>
    %73 = arith.mulf %64, %64 : vector<128x128xf32>
    %cst_86 = arith.constant dense<0.000000e+00> : vector<128xf32>
    %74 = vector.multi_reduction <add>, %73, %cst_86 [0] : vector<128x128xf32> to vector<128xf32>
    %75 = vector.shape_cast %74 : vector<128xf32> to vector<1x128xf32>
    %76 = arith.addf %69, %75 : vector<1x128xf32>
    %77 = tpu.concatenate %72, %76 in 0 : vector<1x128xf32>, vector<1x128xf32> -> vector<2x128xf32>
    %78 = vector.shape_cast %77 : vector<2x128xf32> to vector<1x2x128xf32>
    %c0_87 = arith.constant 0 : index
    %c0_88 = arith.constant 0 : index
    %c0_89 = arith.constant 0 : index
    %79 = vector.load %arg4[%c0_87, %c0_88, %c0_89] : memref<1x2x128xf32, #tpu.memory_space<vmem>>, vector<1x2x128xf32>
    tpu.vector_store %arg4[%c0_87, %c0_88, %c0_89], %78 {strides = array<i32>} : memref<1x2x128xf32, #tpu.memory_space<vmem>>, vector<1x2x128xf32>,
    return
  }
  func.func @transform_0(%arg0: i32) -> (i32, i32, i32, i32) {
    %c0_i32 = arith.constant 0 : i32
    %c0_i32_0 = arith.constant 0 : i32
    %c0_i32_1 = arith.constant 0 : i32
    %c0_i32_2 = arith.constant 0 : i32
    return %arg0, %c0_i32, %c0_i32_0, %c0_i32_1 : i32, i32, i32, i32
  }
  func.func @transform_1(%arg0: i32) -> (i32, i32) {
    %c0_i32 = arith.constant 0 : i32
    %c0_i32_0 = arith.constant 0 : i32
    %c0_i32_1 = arith.constant 0 : i32
    return %c0_i32, %c0_i32_0 : i32, i32
  }
  func.func @transform_2(%arg0: i32) -> (i32, i32, i32, i32) {
    %c0_i32 = arith.constant 0 : i32
    %c0_i32_0 = arith.constant 0 : i32
    %c0_i32_1 = arith.constant 0 : i32
    %c0_i32_2 = arith.constant 0 : i32
    return %arg0, %c0_i32, %c0_i32_0, %c0_i32_1 : i32, i32, i32, i32
  }
  func.func @transform_3(%arg0: i32) -> (i32, i32, i32) {
    %c0_i32 = arith.constant 0 : i32
    %c0_i32_0 = arith.constant 0 : i32
    %c0_i32_1 = arith.constant 0 : i32
    return %arg0, %c0_i32, %c0_i32_0 : i32, i32, i32
  }
}

module attributes {stable_mosaic.version = 11 : i64} {
  func.func @_conv2_kernel(%arg0: i32, %arg1: memref<2x8x8x128xbf16, #tpu.memory_space<vmem>>, %arg2: memref<2x128xf32, #tpu.memory_space<vmem>>, %arg3: memref<1152x128xbf16, #tpu.memory_space<vmem>>, %arg4: memref<2x8x8x128xf32, #tpu.memory_space<vmem>>, %arg5: memref<2x8x8x128xbf16, #tpu.memory_space<vmem>>, %arg6: memref<1x2x128xf32, #tpu.memory_space<vmem>>, %arg7: memref<2x10x10x128xf32, #tpu.memory_space<vmem>>) attributes {dimension_semantics = [#tpu.dimension_semantics<parallel>], iteration_bounds = array<i64: 1>, scalar_prefetch = 0 : i64, scratch_operands = 1 : i64, tpu.core_type = #tpu.core_type<tc>, window_params = [{transform_indices = @transform_0, window_bounds = array<i64: 2, 8, 8, 128>}, {pipeline_mode = #tpu.pipeline_mode<synchronous>, transform_indices = @transform_1, window_bounds = array<i64: 2, 128>}, {pipeline_mode = #tpu.pipeline_mode<synchronous>, transform_indices = @transform_2, window_bounds = array<i64: 1152, 128>}, {transform_indices = @transform_3, window_bounds = array<i64: 2, 8, 8, 128>}, {transform_indices = @transform_4, window_bounds = array<i64: 2, 8, 8, 128>}, {transform_indices = @transform_5, window_bounds = array<i64: 1, 2, 128>}]} {
    %c0 = arith.constant 0 : index
    %c0_0 = arith.constant 0 : index
    %c0_1 = arith.constant 0 : index
    %c0_2 = arith.constant 0 : index
    %0 = vector.load %arg1[%c0, %c0_0, %c0_1, %c0_2] : memref<2x8x8x128xbf16, #tpu.memory_space<vmem>>, vector<2x8x8x128xbf16>
    %1 = arith.extf %0 : vector<2x8x8x128xbf16> to vector<2x8x8x128xf32>
    %2 = vector.shape_cast %1 : vector<2x8x8x128xf32> to vector<128x128xf32>
    %c0_3 = arith.constant 0 : index
    %c0_4 = arith.constant 0 : index
    %3 = vector.load %arg2[%c0_3, %c0_4] : memref<2x128xf32, #tpu.memory_space<vmem>>, vector<1x128xf32>
    %4 = vector.broadcast %3 : vector<1x128xf32> to vector<128x128xf32>
    %5 = arith.mulf %2, %4 : vector<128x128xf32>
    %c1 = arith.constant 1 : index
    %c0_5 = arith.constant 0 : index
    %6 = vector.load %arg2[%c1, %c0_5] : memref<2x128xf32, #tpu.memory_space<vmem>>, vector<1x128xf32>
    %7 = vector.broadcast %6 : vector<1x128xf32> to vector<128x128xf32>
    %8 = arith.addf %5, %7 : vector<128x128xf32>
    %cst = arith.constant 0.000000e+00 : f32
    %9 = vector.broadcast %cst : f32 to vector<128x128xf32>
    %10 = arith.maximumf %8, %9 : vector<128x128xf32>
    %11 = vector.shape_cast %10 : vector<128x128xf32> to vector<2x8x8x128xf32>
    %c0_6 = arith.constant 0 : index
    %c0_7 = arith.constant 0 : index
    %c0_8 = arith.constant 0 : index
    %c0_9 = arith.constant 0 : index
    %12 = vector.load %arg4[%c0_6, %c0_7, %c0_8, %c0_9] : memref<2x8x8x128xf32, #tpu.memory_space<vmem>>, vector<2x8x8x128xf32>
    tpu.vector_store %arg4[%c0_6, %c0_7, %c0_8, %c0_9], %11 {strides = array<i32>} : memref<2x8x8x128xf32, #tpu.memory_space<vmem>>, vector<2x8x8x128xf32>,
    %13 = vector.shape_cast %10 : vector<128x128xf32> to vector<2x8x8x128xf32>
    %cst_10 = arith.constant 0.000000e+00 : f32
    %14 = vector.broadcast %cst_10 : f32 to vector<2x1x10x128xf32>
    %c0_11 = arith.constant 0 : index
    %c0_12 = arith.constant 0 : index
    %c0_13 = arith.constant 0 : index
    %c0_14 = arith.constant 0 : index
    %15 = vector.load %arg7[%c0_11, %c0_12, %c0_13, %c0_14] : memref<2x10x10x128xf32, #tpu.memory_space<vmem>>, vector<2x1x10x128xf32>
    tpu.vector_store %arg7[%c0_11, %c0_12, %c0_13, %c0_14], %14 {strides = array<i32>} : memref<2x10x10x128xf32, #tpu.memory_space<vmem>>, vector<2x1x10x128xf32>,
    %cst_15 = arith.constant 0.000000e+00 : f32
    %16 = vector.broadcast %cst_15 : f32 to vector<2x1x10x128xf32>
    %c0_16 = arith.constant 0 : index
    %c9 = arith.constant 9 : index
    %c0_17 = arith.constant 0 : index
    %c0_18 = arith.constant 0 : index
    %17 = vector.load %arg7[%c0_16, %c9, %c0_17, %c0_18] : memref<2x10x10x128xf32, #tpu.memory_space<vmem>>, vector<2x1x10x128xf32>
    tpu.vector_store %arg7[%c0_16, %c9, %c0_17, %c0_18], %16 {strides = array<i32>} : memref<2x10x10x128xf32, #tpu.memory_space<vmem>>, vector<2x1x10x128xf32>,
    %cst_19 = arith.constant 0.000000e+00 : f32
    %18 = vector.broadcast %cst_19 : f32 to vector<2x10x1x128xf32>
    %c0_20 = arith.constant 0 : index
    %c0_21 = arith.constant 0 : index
    %c0_22 = arith.constant 0 : index
    %c0_23 = arith.constant 0 : index
    %19 = vector.load %arg7[%c0_20, %c0_21, %c0_22, %c0_23] : memref<2x10x10x128xf32, #tpu.memory_space<vmem>>, vector<2x10x1x128xf32>
    tpu.vector_store %arg7[%c0_20, %c0_21, %c0_22, %c0_23], %18 {strides = array<i32>} : memref<2x10x10x128xf32, #tpu.memory_space<vmem>>, vector<2x10x1x128xf32>,
    %cst_24 = arith.constant 0.000000e+00 : f32
    %20 = vector.broadcast %cst_24 : f32 to vector<2x10x1x128xf32>
    %c0_25 = arith.constant 0 : index
    %c0_26 = arith.constant 0 : index
    %c9_27 = arith.constant 9 : index
    %c0_28 = arith.constant 0 : index
    %21 = vector.load %arg7[%c0_25, %c0_26, %c9_27, %c0_28] : memref<2x10x10x128xf32, #tpu.memory_space<vmem>>, vector<2x10x1x128xf32>
    tpu.vector_store %arg7[%c0_25, %c0_26, %c9_27, %c0_28], %20 {strides = array<i32>} : memref<2x10x10x128xf32, #tpu.memory_space<vmem>>, vector<2x10x1x128xf32>,
    %c0_29 = arith.constant 0 : index
    %c1_30 = arith.constant 1 : index
    %c1_31 = arith.constant 1 : index
    %c0_32 = arith.constant 0 : index
    %22 = vector.load %arg7[%c0_29, %c1_30, %c1_31, %c0_32] : memref<2x10x10x128xf32, #tpu.memory_space<vmem>>, vector<2x8x8x128xf32>
    tpu.vector_store %arg7[%c0_29, %c1_30, %c1_31, %c0_32], %13 {strides = array<i32>} : memref<2x10x10x128xf32, #tpu.memory_space<vmem>>, vector<2x8x8x128xf32>,
    %cst_33 = arith.constant 0.000000e+00 : f32
    %23 = vector.broadcast %cst_33 : f32 to vector<128x128xf32>
    %c0_34 = arith.constant 0 : index
    %c0_35 = arith.constant 0 : index
    %c0_36 = arith.constant 0 : index
    %c0_37 = arith.constant 0 : index
    %24 = vector.load %arg7[%c0_34, %c0_35, %c0_36, %c0_37] : memref<2x10x10x128xf32, #tpu.memory_space<vmem>>, vector<2x8x8x128xf32>
    %25 = vector.shape_cast %24 : vector<2x8x8x128xf32> to vector<128x128xf32>
    %26 = arith.truncf %25 : vector<128x128xf32> to vector<128x128xbf16>
    %c0_38 = arith.constant 0 : index
    %c0_39 = arith.constant 0 : index
    %27 = vector.load %arg3[%c0_38, %c0_39] : memref<1152x128xbf16, #tpu.memory_space<vmem>>, vector<128x128xbf16>
    %cst_40 = arith.constant dense<0.000000e+00> : vector<128x128xf32>
    %28 = tpu.matmul %26, %27, %cst_40 {dimension_numbers = #tpu.dot_dimension_numbers<[1], [0], [0], [1], [0, 0, 1, 1], [], []>} : vector<128x128xbf16>, vector<128x128xbf16>, vector<128x128xf32> -> vector<128x128xf32>
    %29 = arith.addf %23, %28 : vector<128x128xf32>
    %c0_41 = arith.constant 0 : index
    %c0_42 = arith.constant 0 : index
    %c1_43 = arith.constant 1 : index
    %c0_44 = arith.constant 0 : index
    %30 = vector.load %arg7[%c0_41, %c0_42, %c1_43, %c0_44] : memref<2x10x10x128xf32, #tpu.memory_space<vmem>>, vector<2x8x8x128xf32>
    %31 = vector.shape_cast %30 : vector<2x8x8x128xf32> to vector<128x128xf32>
    %32 = arith.truncf %31 : vector<128x128xf32> to vector<128x128xbf16>
    %c128 = arith.constant 128 : index
    %c0_45 = arith.constant 0 : index
    %33 = vector.load %arg3[%c128, %c0_45] : memref<1152x128xbf16, #tpu.memory_space<vmem>>, vector<128x128xbf16>
    %cst_46 = arith.constant dense<0.000000e+00> : vector<128x128xf32>
    %34 = tpu.matmul %32, %33, %cst_46 {dimension_numbers = #tpu.dot_dimension_numbers<[1], [0], [0], [1], [0, 0, 1, 1], [], []>} : vector<128x128xbf16>, vector<128x128xbf16>, vector<128x128xf32> -> vector<128x128xf32>
    %35 = arith.addf %29, %34 : vector<128x128xf32>
    %c0_47 = arith.constant 0 : index
    %c0_48 = arith.constant 0 : index
    %c2 = arith.constant 2 : index
    %c0_49 = arith.constant 0 : index
    %36 = vector.load %arg7[%c0_47, %c0_48, %c2, %c0_49] : memref<2x10x10x128xf32, #tpu.memory_space<vmem>>, vector<2x8x8x128xf32>
    %37 = vector.shape_cast %36 : vector<2x8x8x128xf32> to vector<128x128xf32>
    %38 = arith.truncf %37 : vector<128x128xf32> to vector<128x128xbf16>
    %c256 = arith.constant 256 : index
    %c0_50 = arith.constant 0 : index
    %39 = vector.load %arg3[%c256, %c0_50] : memref<1152x128xbf16, #tpu.memory_space<vmem>>, vector<128x128xbf16>
    %cst_51 = arith.constant dense<0.000000e+00> : vector<128x128xf32>
    %40 = tpu.matmul %38, %39, %cst_51 {dimension_numbers = #tpu.dot_dimension_numbers<[1], [0], [0], [1], [0, 0, 1, 1], [], []>} : vector<128x128xbf16>, vector<128x128xbf16>, vector<128x128xf32> -> vector<128x128xf32>
    %41 = arith.addf %35, %40 : vector<128x128xf32>
    %c0_52 = arith.constant 0 : index
    %c1_53 = arith.constant 1 : index
    %c0_54 = arith.constant 0 : index
    %c0_55 = arith.constant 0 : index
    %42 = vector.load %arg7[%c0_52, %c1_53, %c0_54, %c0_55] : memref<2x10x10x128xf32, #tpu.memory_space<vmem>>, vector<2x8x8x128xf32>
    %43 = vector.shape_cast %42 : vector<2x8x8x128xf32> to vector<128x128xf32>
    %44 = arith.truncf %43 : vector<128x128xf32> to vector<128x128xbf16>
    %c384 = arith.constant 384 : index
    %c0_56 = arith.constant 0 : index
    %45 = vector.load %arg3[%c384, %c0_56] : memref<1152x128xbf16, #tpu.memory_space<vmem>>, vector<128x128xbf16>
    %cst_57 = arith.constant dense<0.000000e+00> : vector<128x128xf32>
    %46 = tpu.matmul %44, %45, %cst_57 {dimension_numbers = #tpu.dot_dimension_numbers<[1], [0], [0], [1], [0, 0, 1, 1], [], []>} : vector<128x128xbf16>, vector<128x128xbf16>, vector<128x128xf32> -> vector<128x128xf32>
    %47 = arith.addf %41, %46 : vector<128x128xf32>
    %c0_58 = arith.constant 0 : index
    %c1_59 = arith.constant 1 : index
    %c1_60 = arith.constant 1 : index
    %c0_61 = arith.constant 0 : index
    %48 = vector.load %arg7[%c0_58, %c1_59, %c1_60, %c0_61] : memref<2x10x10x128xf32, #tpu.memory_space<vmem>>, vector<2x8x8x128xf32>
    %49 = vector.shape_cast %48 : vector<2x8x8x128xf32> to vector<128x128xf32>
    %50 = arith.truncf %49 : vector<128x128xf32> to vector<128x128xbf16>
    %c512 = arith.constant 512 : index
    %c0_62 = arith.constant 0 : index
    %51 = vector.load %arg3[%c512, %c0_62] : memref<1152x128xbf16, #tpu.memory_space<vmem>>, vector<128x128xbf16>
    %cst_63 = arith.constant dense<0.000000e+00> : vector<128x128xf32>
    %52 = tpu.matmul %50, %51, %cst_63 {dimension_numbers = #tpu.dot_dimension_numbers<[1], [0], [0], [1], [0, 0, 1, 1], [], []>} : vector<128x128xbf16>, vector<128x128xbf16>, vector<128x128xf32> -> vector<128x128xf32>
    %53 = arith.addf %47, %52 : vector<128x128xf32>
    %c0_64 = arith.constant 0 : index
    %c1_65 = arith.constant 1 : index
    %c2_66 = arith.constant 2 : index
    %c0_67 = arith.constant 0 : index
    %54 = vector.load %arg7[%c0_64, %c1_65, %c2_66, %c0_67] : memref<2x10x10x128xf32, #tpu.memory_space<vmem>>, vector<2x8x8x128xf32>
    %55 = vector.shape_cast %54 : vector<2x8x8x128xf32> to vector<128x128xf32>
    %56 = arith.truncf %55 : vector<128x128xf32> to vector<128x128xbf16>
    %c640 = arith.constant 640 : index
    %c0_68 = arith.constant 0 : index
    %57 = vector.load %arg3[%c640, %c0_68] : memref<1152x128xbf16, #tpu.memory_space<vmem>>, vector<128x128xbf16>
    %cst_69 = arith.constant dense<0.000000e+00> : vector<128x128xf32>
    %58 = tpu.matmul %56, %57, %cst_69 {dimension_numbers = #tpu.dot_dimension_numbers<[1], [0], [0], [1], [0, 0, 1, 1], [], []>} : vector<128x128xbf16>, vector<128x128xbf16>, vector<128x128xf32> -> vector<128x128xf32>
    %59 = arith.addf %53, %58 : vector<128x128xf32>
    %c0_70 = arith.constant 0 : index
    %c2_71 = arith.constant 2 : index
    %c0_72 = arith.constant 0 : index
    %c0_73 = arith.constant 0 : index
    %60 = vector.load %arg7[%c0_70, %c2_71, %c0_72, %c0_73] : memref<2x10x10x128xf32, #tpu.memory_space<vmem>>, vector<2x8x8x128xf32>
    %61 = vector.shape_cast %60 : vector<2x8x8x128xf32> to vector<128x128xf32>
    %62 = arith.truncf %61 : vector<128x128xf32> to vector<128x128xbf16>
    %c768 = arith.constant 768 : index
    %c0_74 = arith.constant 0 : index
    %63 = vector.load %arg3[%c768, %c0_74] : memref<1152x128xbf16, #tpu.memory_space<vmem>>, vector<128x128xbf16>
    %cst_75 = arith.constant dense<0.000000e+00> : vector<128x128xf32>
    %64 = tpu.matmul %62, %63, %cst_75 {dimension_numbers = #tpu.dot_dimension_numbers<[1], [0], [0], [1], [0, 0, 1, 1], [], []>} : vector<128x128xbf16>, vector<128x128xbf16>, vector<128x128xf32> -> vector<128x128xf32>
    %65 = arith.addf %59, %64 : vector<128x128xf32>
    %c0_76 = arith.constant 0 : index
    %c2_77 = arith.constant 2 : index
    %c1_78 = arith.constant 1 : index
    %c0_79 = arith.constant 0 : index
    %66 = vector.load %arg7[%c0_76, %c2_77, %c1_78, %c0_79] : memref<2x10x10x128xf32, #tpu.memory_space<vmem>>, vector<2x8x8x128xf32>
    %67 = vector.shape_cast %66 : vector<2x8x8x128xf32> to vector<128x128xf32>
    %68 = arith.truncf %67 : vector<128x128xf32> to vector<128x128xbf16>
    %c896 = arith.constant 896 : index
    %c0_80 = arith.constant 0 : index
    %69 = vector.load %arg3[%c896, %c0_80] : memref<1152x128xbf16, #tpu.memory_space<vmem>>, vector<128x128xbf16>
    %cst_81 = arith.constant dense<0.000000e+00> : vector<128x128xf32>
    %70 = tpu.matmul %68, %69, %cst_81 {dimension_numbers = #tpu.dot_dimension_numbers<[1], [0], [0], [1], [0, 0, 1, 1], [], []>} : vector<128x128xbf16>, vector<128x128xbf16>, vector<128x128xf32> -> vector<128x128xf32>
    %71 = arith.addf %65, %70 : vector<128x128xf32>
    %c0_82 = arith.constant 0 : index
    %c2_83 = arith.constant 2 : index
    %c2_84 = arith.constant 2 : index
    %c0_85 = arith.constant 0 : index
    %72 = vector.load %arg7[%c0_82, %c2_83, %c2_84, %c0_85] : memref<2x10x10x128xf32, #tpu.memory_space<vmem>>, vector<2x8x8x128xf32>
    %73 = vector.shape_cast %72 : vector<2x8x8x128xf32> to vector<128x128xf32>
    %74 = arith.truncf %73 : vector<128x128xf32> to vector<128x128xbf16>
    %c1024 = arith.constant 1024 : index
    %c0_86 = arith.constant 0 : index
    %75 = vector.load %arg3[%c1024, %c0_86] : memref<1152x128xbf16, #tpu.memory_space<vmem>>, vector<128x128xbf16>
    %cst_87 = arith.constant dense<0.000000e+00> : vector<128x128xf32>
    %76 = tpu.matmul %74, %75, %cst_87 {dimension_numbers = #tpu.dot_dimension_numbers<[1], [0], [0], [1], [0, 0, 1, 1], [], []>} : vector<128x128xbf16>, vector<128x128xbf16>, vector<128x128xf32> -> vector<128x128xf32>
    %77 = arith.addf %71, %76 : vector<128x128xf32>
    %78 = vector.shape_cast %77 : vector<128x128xf32> to vector<2x8x8x128xf32>
    %79 = arith.truncf %78 : vector<2x8x8x128xf32> to vector<2x8x8x128xbf16>
    %c0_88 = arith.constant 0 : index
    %c0_89 = arith.constant 0 : index
    %c0_90 = arith.constant 0 : index
    %c0_91 = arith.constant 0 : index
    %80 = vector.load %arg5[%c0_88, %c0_89, %c0_90, %c0_91] : memref<2x8x8x128xbf16, #tpu.memory_space<vmem>>, vector<2x8x8x128xbf16>
    tpu.vector_store %arg5[%c0_88, %c0_89, %c0_90, %c0_91], %79 {strides = array<i32>} : memref<2x8x8x128xbf16, #tpu.memory_space<vmem>>, vector<2x8x8x128xbf16>,
    %cst_92 = arith.constant 0.000000e+00 : f32
    %81 = vector.broadcast %cst_92 : f32 to vector<1x128xf32>
    %cst_93 = arith.constant 0.000000e+00 : f32
    %82 = vector.broadcast %cst_93 : f32 to vector<1x128xf32>
    %cst_94 = arith.constant dense<0.000000e+00> : vector<128xf32>
    %83 = vector.multi_reduction <add>, %77, %cst_94 [0] : vector<128x128xf32> to vector<128xf32>
    %84 = vector.shape_cast %83 : vector<128xf32> to vector<1x128xf32>
    %85 = arith.addf %81, %84 : vector<1x128xf32>
    %86 = arith.mulf %77, %77 : vector<128x128xf32>
    %cst_95 = arith.constant dense<0.000000e+00> : vector<128xf32>
    %87 = vector.multi_reduction <add>, %86, %cst_95 [0] : vector<128x128xf32> to vector<128xf32>
    %88 = vector.shape_cast %87 : vector<128xf32> to vector<1x128xf32>
    %89 = arith.addf %82, %88 : vector<1x128xf32>
    %90 = tpu.concatenate %85, %89 in 0 : vector<1x128xf32>, vector<1x128xf32> -> vector<2x128xf32>
    %91 = vector.shape_cast %90 : vector<2x128xf32> to vector<1x2x128xf32>
    %c0_96 = arith.constant 0 : index
    %c0_97 = arith.constant 0 : index
    %c0_98 = arith.constant 0 : index
    %92 = vector.load %arg6[%c0_96, %c0_97, %c0_98] : memref<1x2x128xf32, #tpu.memory_space<vmem>>, vector<1x2x128xf32>
    tpu.vector_store %arg6[%c0_96, %c0_97, %c0_98], %91 {strides = array<i32>} : memref<1x2x128xf32, #tpu.memory_space<vmem>>, vector<1x2x128xf32>,
    return
  }
  func.func @transform_0(%arg0: i32) -> (i32, i32, i32, i32) {
    %c0_i32 = arith.constant 0 : i32
    %c0_i32_0 = arith.constant 0 : i32
    %c0_i32_1 = arith.constant 0 : i32
    %c0_i32_2 = arith.constant 0 : i32
    return %arg0, %c0_i32, %c0_i32_0, %c0_i32_1 : i32, i32, i32, i32
  }
  func.func @transform_1(%arg0: i32) -> (i32, i32) {
    %c0_i32 = arith.constant 0 : i32
    %c0_i32_0 = arith.constant 0 : i32
    %c0_i32_1 = arith.constant 0 : i32
    return %c0_i32, %c0_i32_0 : i32, i32
  }
  func.func @transform_2(%arg0: i32) -> (i32, i32) {
    %c0_i32 = arith.constant 0 : i32
    %c0_i32_0 = arith.constant 0 : i32
    %c0_i32_1 = arith.constant 0 : i32
    return %c0_i32, %c0_i32_0 : i32, i32
  }
  func.func @transform_3(%arg0: i32) -> (i32, i32, i32, i32) {
    %c0_i32 = arith.constant 0 : i32
    %c0_i32_0 = arith.constant 0 : i32
    %c0_i32_1 = arith.constant 0 : i32
    %c0_i32_2 = arith.constant 0 : i32
    return %arg0, %c0_i32, %c0_i32_0, %c0_i32_1 : i32, i32, i32, i32
  }
  func.func @transform_4(%arg0: i32) -> (i32, i32, i32, i32) {
    %c0_i32 = arith.constant 0 : i32
    %c0_i32_0 = arith.constant 0 : i32
    %c0_i32_1 = arith.constant 0 : i32
    %c0_i32_2 = arith.constant 0 : i32
    return %arg0, %c0_i32, %c0_i32_0, %c0_i32_1 : i32, i32, i32, i32
  }
  func.func @transform_5(%arg0: i32) -> (i32, i32, i32) {
    %c0_i32 = arith.constant 0 : i32
    %c0_i32_0 = arith.constant 0 : i32
    %c0_i32_1 = arith.constant 0 : i32
    return %arg0, %c0_i32, %c0_i32_0 : i32, i32, i32
  }
}

module attributes {stable_mosaic.version = 11 : i64} {
  func.func @_residual_kernel(%arg0: i32, %arg1: memref<2x8x8x128xf32, #tpu.memory_space<vmem>>, %arg2: memref<2x8x8x128xbf16, #tpu.memory_space<vmem>>, %arg3: memref<2x128xf32, #tpu.memory_space<vmem>>, %arg4: memref<2x8x8x128xf32, #tpu.memory_space<vmem>>) attributes {dimension_semantics = [#tpu.dimension_semantics<parallel>], iteration_bounds = array<i64: 1>, scalar_prefetch = 0 : i64, scratch_operands = 0 : i64, tpu.core_type = #tpu.core_type<tc>, window_params = [{transform_indices = @transform_0, window_bounds = array<i64: 2, 8, 8, 128>}, {transform_indices = @transform_1, window_bounds = array<i64: 2, 8, 8, 128>}, {pipeline_mode = #tpu.pipeline_mode<synchronous>, transform_indices = @transform_2, window_bounds = array<i64: 2, 128>}, {transform_indices = @transform_3, window_bounds = array<i64: 2, 8, 8, 128>}]} {
    %c0 = arith.constant 0 : index
    %c0_0 = arith.constant 0 : index
    %c0_1 = arith.constant 0 : index
    %c0_2 = arith.constant 0 : index
    %0 = vector.load %arg2[%c0, %c0_0, %c0_1, %c0_2] : memref<2x8x8x128xbf16, #tpu.memory_space<vmem>>, vector<2x8x8x128xbf16>
    %1 = arith.extf %0 : vector<2x8x8x128xbf16> to vector<2x8x8x128xf32>
    %c0_3 = arith.constant 0 : index
    %c0_4 = arith.constant 0 : index
    %c0_5 = arith.constant 0 : index
    %c0_6 = arith.constant 0 : index
    %2 = vector.load %arg1[%c0_3, %c0_4, %c0_5, %c0_6] : memref<2x8x8x128xf32, #tpu.memory_space<vmem>>, vector<2x8x8x128xf32>
    %c0_7 = arith.constant 0 : index
    %c0_8 = arith.constant 0 : index
    %3 = vector.load %arg3[%c0_7, %c0_8] : memref<2x128xf32, #tpu.memory_space<vmem>>, vector<1x128xf32>
    %4 = vector.shape_cast %3 : vector<1x128xf32> to vector<1x1x1x128xf32>
    %5 = vector.broadcast %4 : vector<1x1x1x128xf32> to vector<2x8x8x128xf32>
    %6 = arith.mulf %1, %5 : vector<2x8x8x128xf32>
    %7 = arith.addf %2, %6 : vector<2x8x8x128xf32>
    %c1 = arith.constant 1 : index
    %c0_9 = arith.constant 0 : index
    %8 = vector.load %arg3[%c1, %c0_9] : memref<2x128xf32, #tpu.memory_space<vmem>>, vector<1x128xf32>
    %9 = vector.shape_cast %8 : vector<1x128xf32> to vector<1x1x1x128xf32>
    %10 = vector.broadcast %9 : vector<1x1x1x128xf32> to vector<2x8x8x128xf32>
    %11 = arith.addf %7, %10 : vector<2x8x8x128xf32>
    %cst = arith.constant 0.000000e+00 : f32
    %12 = vector.broadcast %cst : f32 to vector<2x8x8x128xf32>
    %13 = arith.maximumf %11, %12 : vector<2x8x8x128xf32>
    %c0_10 = arith.constant 0 : index
    %c0_11 = arith.constant 0 : index
    %c0_12 = arith.constant 0 : index
    %c0_13 = arith.constant 0 : index
    %14 = vector.load %arg4[%c0_10, %c0_11, %c0_12, %c0_13] : memref<2x8x8x128xf32, #tpu.memory_space<vmem>>, vector<2x8x8x128xf32>
    tpu.vector_store %arg4[%c0_10, %c0_11, %c0_12, %c0_13], %13 {strides = array<i32>} : memref<2x8x8x128xf32, #tpu.memory_space<vmem>>, vector<2x8x8x128xf32>,
    return
  }
  func.func @transform_0(%arg0: i32) -> (i32, i32, i32, i32) {
    %c0_i32 = arith.constant 0 : i32
    %c0_i32_0 = arith.constant 0 : i32
    %c0_i32_1 = arith.constant 0 : i32
    %c0_i32_2 = arith.constant 0 : i32
    return %arg0, %c0_i32, %c0_i32_0, %c0_i32_1 : i32, i32, i32, i32
  }
  func.func @transform_1(%arg0: i32) -> (i32, i32, i32, i32) {
    %c0_i32 = arith.constant 0 : i32
    %c0_i32_0 = arith.constant 0 : i32
    %c0_i32_1 = arith.constant 0 : i32
    %c0_i32_2 = arith.constant 0 : i32
    return %arg0, %c0_i32, %c0_i32_0, %c0_i32_1 : i32, i32, i32, i32
  }
  func.func @transform_2(%arg0: i32) -> (i32, i32) {
    %c0_i32 = arith.constant 0 : i32
    %c0_i32_0 = arith.constant 0 : i32
    %c0_i32_1 = arith.constant 0 : i32
    return %c0_i32, %c0_i32_0 : i32, i32
  }
  func.func @transform_3(%arg0: i32) -> (i32, i32, i32, i32) {
    %c0_i32 = arith.constant 0 : i32
    %c0_i32_0 = arith.constant 0 : i32
    %c0_i32_1 = arith.constant 0 : i32
    %c0_i32_2 = arith.constant 0 : i32
    return %arg0, %c0_i32, %c0_i32_0, %c0_i32_1 : i32, i32, i32, i32
  }
}

</mosaic_0001>

<bundles_post_ra>
// kernel: res_layer_forward.5
= control target key start
LH: loop header
LB: loop body
LE: loop exit
PB: predicated region body
PF: predicated region fallthrough
CT: control target
= control target key end

     0   :  { %8 = vsyncpa [#allocation3], 0  ;;  %s397_s0 = inlined_call_operand.hbm [shape: f32[2,8,8,128], index: 0, kind: input, shape index: {}, may-alias: {0,3}]   ;;  %s398_s1 = inlined_call_operand.vmem [shape: bf16[2,8,8,128], index: 1, kind: input, shape index: {}]   ;;  %s399_s2 = inlined_call_operand.vmem [shape: f32[2,128], index: 2, kind: input, shape index: {}]   ;;  %s400_s3 = inlined_call_operand.hbm [shape: f32[2,8,8,128], index: 3, kind: output, shape index: {}, may-alias: {0,3}]  }
   0x1   :  { %9 = vsyncpa [#allocation4], 0  ;;  %s277_s12 = smov [#allocation2]   ;;  %s229_s16 = scalar_lea.hbm %s397_s0, 2048 }
   0x2   :  { %s15_s13 = sshll.u32 %s277_s12, 4  ;;  %p230_p0 = scmp.ne.s32.totalorder %s397_s0, %s229_s16  ;;  %s16_s13 = int_to_ptr.vmem [resolvable:$true] %s15_s13 }
   0x3   :  { %p233_p1 = scmp.lt.u32.totalorder %s229_s16, %s397_s0 }
   0x5   :  { %p235_p2 = pnand %p233_p1, %p230_p0 }
   0x7   :  { %238 = shalt.err (!%p235_p2)
}
   0x8   :  { %s239_s21 = scalar_lea.vmem %s16_s13, 2048  ;;  %p244_p4 = scmp.lt.s32.totalorder %s16_s13, %s16_s13 }
   0x9   :  { %p240_p3 = scmp.ne.s32.totalorder %s16_s13, %s239_s21  ;;  %p245_p5 = scmp.lt.s32.totalorder %s239_s21, %s239_s21 }
   0xb   :  { %p246_p6 = por %p245_p5, %p244_p4 }
   0xd   :  { %p247_p7 = pnand %p246_p6, %p240_p3 }
   0xf   :  { %250 = shalt.err (!%p247_p7)
}
  0x10   :  { %s278_s22 = smov 128   ;;  %s279_s23 = smov 8  }
  0x11   :  { %21 = dma.hbm_to_vmem [thread:$0]  %s397_s0, 2048, %s16_s13, [#allocation3], %s278_s22, %s278_s22, %s279_s23  }
  0x12   :  { %273 = dma.done.wait [#allocation3], 2048  }
  0x13   :  { %274 = vsyncadd [#allocation3], 4294965248  ;;  %v187_v0 = vld [vmem:[%s398_s1] sm:$0xff]   ;;  %v218_v4 = vld [vmem:[%s398_s1 + $0x8] sm:$0xff]  }
  0x14   :  { %v322_v1 = vld [vmem:[%s399_s2] ss:$0 sm:$0xff]  ;;  %v188_v2 = vunpack.c.l.bf16 %v187_v0  ;;  %v189_v3 = vunpack.c.h.bf16 %v187_v0  ;;  %v62_v6 = vld [vmem:[#allocation2 + $0x8] sm:$0xff]  ;;  %v192_v7 = vunpack.c.l.bf16 %v218_v4  ;;  %v193_v8 = vunpack.c.h.bf16 %v218_v4  ;;  %v219_v9 = vld [vmem:[%s398_s1 + $0x10] sm:$0xff]  }
  0x15   :  { %v61_v5 = vld [vmem:[#allocation2] sm:$0xff]  ;;  %v63_v12 = vld [vmem:[#allocation2 + $0x10] sm:$0xff]  ;;  %v64_v13 = vld [vmem:[#allocation2 + $0x18] sm:$0xff]  ;;  %v196_v14 = vunpack.c.l.bf16 %v219_v9  ;;  %v197_v15 = vunpack.c.h.bf16 %v219_v9 }
  0x16   :  { %v82_v10 = vmul.f32 %v188_v2, %v322_v1  ;;  %v83_v11 = vmul.f32 %v189_v3, %v322_v1  ;;  %v220_v16 = vld [vmem:[%s398_s1 + $0x18] sm:$0xff]   ;;  %v338_v17 = vld [vmem:[%s399_s2 + $0x1] ss:$0 sm:$0xff]  ;;  %v84_v18 = vmul.f32 %v192_v7, %v322_v1  ;;  %v85_v19 = vmul.f32 %v193_v8, %v322_v1  ;;  %v66_v21 = vld [vmem:[#allocation2 + $0x28] sm:$0xff] }
  0x17   :  { %v65_v20 = vld [vmem:[#allocation2 + $0x20] sm:$0xff]  ;;  %v200_v22 = vunpack.c.l.bf16 %v220_v16  ;;  %v201_v23 = vunpack.c.h.bf16 %v220_v16  ;;  %v86_v26 = vmul.f32 %v196_v14, %v322_v1  ;;  %v87_v27 = vmul.f32 %v197_v15, %v322_v1  ;;  %v67_v28 = vld [vmem:[#allocation2 + $0x30] sm:$0xff]  ;;  %v68_v29 = vld [vmem:[#allocation2 + $0x38] sm:$0xff] }
  0x18   :  { %v98_v24 = vadd.f32 %v82_v10, %v61_v5  ;;  %v99_v25 = vadd.f32 %v83_v11, %v62_v6  ;;  %v100_v30 = vadd.f32 %v84_v18, %v63_v12  ;;  %v101_v31 = vadd.f32 %v85_v19, %v64_v13  ;;  %v221_v42 = vld [vmem:[%s398_s1 + $0x20] sm:$0xff]   ;;  %v222_v47 = vld [vmem:[%s398_s1 + $0x28] sm:$0xff]   ;;  %v223_v52 = vld [vmem:[%s398_s1 + $0x30] sm:$0xff]  }
  0x19   :  { %v88_v32 = vmul.f32 %v200_v22, %v322_v1  ;;  %v89_v33 = vmul.f32 %v201_v23, %v322_v1  ;;  %v102_v36 = vadd.f32 %v86_v26, %v65_v20  ;;  %v103_v37 = vadd.f32 %v87_v27, %v66_v21  ;;  %v224_v57 = vld [vmem:[%s398_s1 + $0x38] sm:$0xff]   ;;  %v69_v60 = vld [vmem:[#allocation2 + $0x40] sm:$0xff]  ;;  %v70_v61 = vld [vmem:[#allocation2 + $0x48] sm:$0xff]  ;;  %s280_s1 = smov [#allocation5]  }
  0x1a   :  { %v119_v34 = vadd.f32 %v338_v17, %v98_v24  ;;  %v120_v35 = vadd.f32 %v338_v17, %v99_v25  ;;  %v121_v38 = vadd.f32 %v338_v17, %v100_v30  ;;  %v122_v39 = vadd.f32 %v338_v17, %v101_v31  ;;  %v71_v3 = vld [vmem:[#allocation2 + $0x50] sm:$0xff]  ;;  %v72_v4 = vld [vmem:[#allocation2 + $0x58] sm:$0xff]  ;;  %v73_v9 = vld [vmem:[#allocation2 + $0x60] sm:$0xff]  ;;  %s172_s17 = sshll.u32 %s280_s1, 4  ;;  %s173_s17 = int_to_ptr.vmem [resolvable:$true] %s172_s17 }
  0x1b   :  { %v104_v40 = vadd.f32 %v88_v32, %v67_v28  ;;  %v105_v41 = vadd.f32 %v89_v33, %v68_v29  ;;  %v123_v45 = vadd.f32 %v338_v17, %v102_v36  ;;  %v124_v46 = vadd.f32 %v338_v17, %v103_v37  ;;  %v74_v10 = vld [vmem:[#allocation2 + $0x68] sm:$0xff]  ;;  %v75_v18 = vld [vmem:[#allocation2 + $0x70] sm:$0xff]  ;;  %v76_v19 = vld [vmem:[#allocation2 + $0x78] sm:$0xff]  ;;  %s251_s18 = scalar_lea.vmem %s173_s17, 2048  ;;  %p256_p9 = scmp.lt.s32.totalorder %s173_s17, %s173_s17 }
  0x1c   :  { %v135_v43 = vmax.f32 %v119_v34, 0.0  ;;  %v136_v44 = vmax.f32 %v120_v35, 0.0  ;;  %v137_v48 = vmax.f32 %v121_v38, 0.0  ;;  %v138_v49 = vmax.f32 %v122_v39, 0.0  ;;  %p252_p8 = scmp.ne.s32.totalorder %s173_s17, %s251_s18  ;;  %p257_p10 = scmp.lt.s32.totalorder %s251_s18, %s251_s18 }
  0x1d   :  { %v125_v50 = vadd.f32 %v338_v17, %v104_v40  ;;  %v126_v51 = vadd.f32 %v338_v17, %v105_v41  ;;  %v139_v53 = vmax.f32 %v123_v45, 0.0  ;;  %v140_v54 = vmax.f32 %v124_v46, 0.0 }
  0x1e   :  { %151 = vst [vmem:[#allocation5] sm:$0xff] %v135_v43  ;;  %152 = vst [vmem:[#allocation5 + $0x8] sm:$0xff] %v136_v44  ;;  %v204_v55 = vunpack.c.l.bf16 %v221_v42  ;;  %v205_v56 = vunpack.c.h.bf16 %v221_v42  ;;  %v208_v62 = vunpack.c.l.bf16 %v222_v47  ;;  %v209_v63 = vunpack.c.h.bf16 %v222_v47  ;;  %p258_p11 = por %p257_p10, %p256_p9 }
  0x1f   :  { %153 = vst [vmem:[#allocation5 + $0x10] sm:$0xff] %v137_v48  ;;  %154 = vst [vmem:[#allocation5 + $0x18] sm:$0xff] %v138_v49  ;;  %v141_v58 = vmax.f32 %v125_v50, 0.0  ;;  %v142_v59 = vmax.f32 %v126_v51, 0.0  ;;  %v212_v5 = vunpack.c.l.bf16 %v223_v52  ;;  %v213_v6 = vunpack.c.h.bf16 %v223_v52 }
  0x20   :  { %155 = vst [vmem:[#allocation5 + $0x20] sm:$0xff] %v139_v53  ;;  %156 = vst [vmem:[#allocation5 + $0x28] sm:$0xff] %v140_v54  ;;  %v90_v0 = vmul.f32 %v204_v55, %v322_v1  ;;  %v91_v2 = vmul.f32 %v205_v56, %v322_v1  ;;  %v92_v7 = vmul.f32 %v208_v62, %v322_v1  ;;  %v216_v11 = vunpack.c.l.bf16 %v224_v57  ;;  %p259_p12 = pnand %p258_p11, %p252_p8 }
  0x21   :  { %157 = vst [vmem:[#allocation5 + $0x30] sm:$0xff] %v141_v58  ;;  %158 = vst [vmem:[#allocation5 + $0x38] sm:$0xff] %v142_v59  ;;  %v93_v8 = vmul.f32 %v209_v63, %v322_v1  ;;  %v217_v12 = vunpack.c.h.bf16 %v224_v57  ;;  %v94_v15 = vmul.f32 %v212_v5, %v322_v1  ;;  %v95_v16 = vmul.f32 %v213_v6, %v322_v1 }
  0x22   :  { %v106_v13 = vadd.f32 %v90_v0, %v69_v60  ;;  %v107_v14 = vadd.f32 %v91_v2, %v70_v61  ;;  %v108_v20 = vadd.f32 %v92_v7, %v71_v3  ;;  %v96_v22 = vmul.f32 %v216_v11, %v322_v1 }
  0x23   :  { %v109_v21 = vadd.f32 %v93_v8, %v72_v4  ;;  %v97_v23 = vmul.f32 %v217_v12, %v322_v1  ;;  %v110_v26 = vadd.f32 %v94_v15, %v73_v9  ;;  %v111_v27 = vadd.f32 %v95_v16, %v74_v10 }
  0x24   :  { %v127_v24 = vadd.f32 %v338_v17, %v106_v13  ;;  %v128_v25 = vadd.f32 %v338_v17, %v107_v14  ;;  %v129_v28 = vadd.f32 %v338_v17, %v108_v20  ;;  %v112_v30 = vadd.f32 %v96_v22, %v75_v18 }
  0x25   :  { %v130_v29 = vadd.f32 %v338_v17, %v109_v21  ;;  %v113_v31 = vadd.f32 %v97_v23, %v76_v19  ;;  %v131_v34 = vadd.f32 %v338_v17, %v110_v26  ;;  %v132_v35 = vadd.f32 %v338_v17, %v111_v27 }
  0x26   :  { %v143_v32 = vmax.f32 %v127_v24, 0.0  ;;  %v144_v33 = vmax.f32 %v128_v25, 0.0  ;;  %v145_v1 = vmax.f32 %v129_v28, 0.0  ;;  %v133_v37 = vadd.f32 %v338_v17, %v112_v30 }
  0x27   :  { %v146_v36 = vmax.f32 %v130_v29, 0.0  ;;  %v134_v38 = vadd.f32 %v338_v17, %v113_v31  ;;  %v147_v39 = vmax.f32 %v131_v34, 0.0  ;;  %v148_v40 = vmax.f32 %v132_v35, 0.0 }
  0x28   :  { %159 = vst [vmem:[#allocation5 + $0x40] sm:$0xff] %v143_v32  ;;  %160 = vst [vmem:[#allocation5 + $0x48] sm:$0xff] %v144_v33  ;;  %v149_v41 = vmax.f32 %v133_v37, 0.0 }
  0x29   :  { %161 = vst [vmem:[#allocation5 + $0x50] sm:$0xff] %v145_v1  ;;  %162 = vst [vmem:[#allocation5 + $0x58] sm:$0xff] %v146_v36  ;;  %v150_v42 = vmax.f32 %v134_v38, 0.0 }
  0x2a   :  { %163 = vst [vmem:[#allocation5 + $0x60] sm:$0xff] %v147_v39  ;;  %164 = vst [vmem:[#allocation5 + $0x68] sm:$0xff] %v148_v40 }
  0x2b   :  { %165 = vst [vmem:[#allocation5 + $0x70] sm:$0xff] %v149_v41  ;;  %166 = vst [vmem:[#allocation5 + $0x78] sm:$0xff] %v150_v42 }
  0x2c   :  { %262 = shalt.err (!%p259_p12)
}
  0x2d   :  { %s263_s21 = scalar_lea.hbm %s400_s3, 2048 }
  0x2e   :  { %p264_p13 = scmp.ne.s32.totalorder %s400_s3, %s263_s21  ;;  %p267_p0 = scmp.lt.u32.totalorder %s263_s21, %s400_s3 }
  0x30   :  { %p269_p1 = pnand %p267_p0, %p264_p13 }
  0x32   :  { %272 = shalt.err (!%p269_p1)
}
  0x33   :  { %178 = dma.vmem_to_hbm [thread:$0]  %s173_s17, 2048, %s400_s3, [#allocation4], %s278_s22, %s278_s22, %s279_s23  }
  0x34   :  { %275 = dma.done.wait [#allocation4], 2048  }
  0x35   :  { %276 = vsyncadd [#allocation4], 4294965248 }
  0x36   :  { %182 = vsyncpa [#allocation3], 1 }
  0x37   :  { %183 = vsyncpa [#allocation4], 1 }

// kernel: res_layer_forward.3
= control target key start
LH: loop header
LB: loop body
LE: loop exit
PB: predicated region body
PF: predicated region fallthrough
CT: control target
= control target key end

     0   :  { %v2745_v1 = vmov 0.0   ;;  %vm1966_vm0 = vcmask 1040384   ;;  %s3312_s1 = inlined_call_operand.vmem [shape: bf16[1152,128], index: 1, kind: input, shape index: {}]   ;;  %s3313_s0 = inlined_call_operand.vmem [shape: f32[2,8,8,128], index: 0, kind: input, shape index: {}]   ;;  %s3314_s2 = inlined_call_operand.vmem [shape: bf16[2,8,8,128], index: 2, kind: output, shape index: {0}]   ;;  %s3315_s3 = inlined_call_operand.vmem [shape: f32[1,2,128], index: 3, kind: output, shape index: {1}]  }
   0x1   :  { %v2673_v0 = vld [vmem:[%s3312_s1 + $0x40] sm:$0xff]   ;;  %30 = vst [vmem:[#allocation2] sm:$0xff] %v2745_v1  ;;  %31 = vst [vmem:[#allocation2 + $0x8] sm:$0x3] %v2745_v1  ;;  %v2675_v3 = vld [vmem:[%s3312_s1 + $0x48] sm:$0xff]  }
   0x2   :  { %32 = vst [vmem:[#allocation2 + $0xa0] sm:$0xff] %v2745_v1  ;;  %33 = vst [vmem:[#allocation2 + $0xa8] sm:$0x3] %v2745_v1  ;;  %v2674_v2 = vld [vmem:[%s3312_s1 + $0x100] sm:$0xff]   ;;  %2240 = vmatprep.subr.bf16.mxu1 %v2673_v0  ;;  %v2676_v4 = vld [vmem:[%s3312_s1 + $0x108] sm:$0xff]  }
   0x3   :  { %35 = vst [vmem:[#allocation2 + $0x90] sm:$0xff] %v2745_v1  ;;  %36 = vst [vmem:[#allocation2 + $0x98] sm:$0x3] %v2745_v1  ;;  %2368 = vmatprep.subr.bf16.mxu0 %v2674_v2  ;;  %2241 = vmatpush3.bf16.msra.mxu1 %v2673_v0  ;;  %v2677_v5 = vld [vmem:[%s3312_s1 + $0x50] sm:$0xff]   ;;  %v2679_v7 = vld [vmem:[%s3312_s1 + $0x58] sm:$0xff]  }
   0x4   :  { %37 = vst [vmem:[#allocation2 + $0x130] sm:$0xff] %v2745_v1  ;;  %38 = vst [vmem:[#allocation2 + $0x138] sm:$0x3] %v2745_v1  ;;  %2369 = vmatpush3.bf16.msra.mxu0 %v2674_v2  ;;  %2242 = vmatprep.subr.bf16.mxu1 %v2675_v3  ;;  %v2678_v6 = vld [vmem:[%s3312_s1 + $0x110] sm:$0xff]   ;;  %v2680_v8 = vld [vmem:[%s3312_s1 + $0x118] sm:$0xff]  }
   0x5   :  { %40 = vst [vmem:[#allocation2 + $0x10] sm:$0x1] %v2745_v1  ;;  %41 = vst [vmem:[#allocation2 + $0x20] sm:$0x1] %v2745_v1  ;;  %2370 = vmatprep.subr.bf16.mxu0 %v2676_v4  ;;  %v2681_v9 = vld [vmem:[%s3312_s1 + $0x60] sm:$0xff]   ;;  %v2683_v11 = vld [vmem:[%s3312_s1 + $0x68] sm:$0xff]  }
   0x6   :  { %42 = vst [vmem:[#allocation2 + $0x30] sm:$0x1] %v2745_v1  ;;  %43 = vst [vmem:[#allocation2 + $0x40] sm:$0x1] %v2745_v1  ;;  %v2682_v10 = vld [vmem:[%s3312_s1 + $0x120] sm:$0xff]   ;;  %v2684_v12 = vld [vmem:[%s3312_s1 + $0x128] sm:$0xff]  }
   0x7   :  { %44 = vst [vmem:[#allocation2 + $0x50] sm:$0x1] %v2745_v1  ;;  %45 = vst [vmem:[#allocation2 + $0x60] sm:$0x1] %v2745_v1  ;;  %2243 = vmatpush3.bf16.msra.mxu1 %v2675_v3  ;;  %v14_v13 = vld [vmem:[%s3313_s0] sm:$0xff]  ;;  %v15_v15 = vld [vmem:[%s3313_s0 + $0x8] sm:$0xff] }
   0x8   :  { %46 = vst [vmem:[#allocation2 + $0x70] sm:$0x1] %v2745_v1  ;;  %47 = vst [vmem:[#allocation2 + $0x80] sm:$0x1] %v2745_v1  ;;  %2371 = vmatpush3.bf16.msra.mxu0 %v2676_v4  ;;  %2244 = vmatprep.subr.bf16.mxu1 %v2677_v5  ;;  %v136_v14 = vld [vmem:[#allocation2 + $0x1] sm:$0xff]  ;;  %v884_v17 = vpack.c.bf16 %v15_v15, %v14_v13  ;;  %v16_v18 = vld [vmem:[%s3313_s0 + $0x10] sm:$0xff] }
   0x9   :  { %50 = vst [vmem:[#allocation2 + $0xb0] sm:$0x1] %v2745_v1  ;;  %51 = vst [vmem:[#allocation2 + $0xc0] sm:$0x1] %v2745_v1  ;;  %2372 = vmatprep.subr.bf16.mxu0 %v2678_v6  ;;  %v152_v16 = vpack.c.bf16 %v14_v13, %v136_v14  ;;  %v17_v19 = vld [vmem:[%s3313_s0 + $0x18] sm:$0xff]  ;;  %v2685_v20 = vld [vmem:[%s3312_s1 + $0x70] sm:$0xff]   ;;  %v2865_v34 = vpack.c.bf16 %v16_v18, %v15_v15 }
   0xa   :  { %52 = vst [vmem:[#allocation2 + $0xd0] sm:$0x1] %v2745_v1  ;;  %53 = vst [vmem:[#allocation2 + $0xe0] sm:$0x1] %v2745_v1  ;;  %v2686_v21 = vld [vmem:[%s3312_s1 + $0x130] sm:$0xff]   ;;  %2384 = vmatprep.mubr.bf16.mxu0 %v884_v17  ;;  %v18_v22 = vld [vmem:[%s3313_s0 + $0x20] sm:$0xff]  ;;  %v885_v35 = vpack.c.bf16 %v17_v19, %v16_v18 }
   0xb   :  { %54 = vst [vmem:[#allocation2 + $0xf0] sm:$0x1] %v2745_v1  ;;  %55 = vst [vmem:[#allocation2 + $0x100] sm:$0x1] %v2745_v1  ;;  %2245 = vmatpush3.bf16.msra.mxu1 %v2677_v5  ;;  %2256 = vmatprep.mubr.bf16.mxu1 %v152_v16  ;;  %v19_v23 = vld [vmem:[%s3313_s0 + $0x28] sm:$0xff]  ;;  %v2829_v24 = vld [vmem:[%s3313_s0 + $0x30] sm:$0xff]  ;;  %v2876_v39 = vpack.c.bf16 %v18_v22, %v17_v19 }
   0xc   :  { %56 = vst [vmem:[#allocation2 + $0x110] sm:$0x1] %v2745_v1  ;;  %57 = vst [vmem:[#allocation2 + $0x120] sm:$0x1] %v2745_v1  ;;  %2373 = vmatpush3.bf16.msra.mxu0 %v2678_v6  ;;  %2246 = vmatprep.subr.bf16.mxu1 %v2679_v7  ;;  %v2835_v25 = vld [vmem:[%s3313_s0 + $0x38] sm:$0xff]  ;;  %v2689_v28 = vld [vmem:[%s3312_s1] sm:$0xff]   ;;  %v886_v42 = vpack.c.bf16 %v19_v23, %v18_v22  ;;  %v2902_v46 = vpack.c.bf16 %v2829_v24, %v19_v23 }
   0xd   :  { %60 = vst [vmem:[#allocation2 + $0x19] sm:$0x1] %v2745_v1  ;;  %61 = vst [vmem:[#allocation2 + $0x29] sm:$0x1] %v2745_v1  ;;  %2374 = vmatprep.subr.bf16.mxu0 %v2680_v8  ;;  %v2687_v26 = vld [vmem:[%s3312_s1 + $0x78] sm:$0xff]   ;;  %v22_v29 = vld [vmem:[%s3313_s0 + $0x40] sm:$0xff]  ;;  %v887_v48 = vpack.c.bf16 %v2835_v25, %v2829_v24 }
   0xe   :  { %62 = vst [vmem:[#allocation2 + $0x39] sm:$0x1] %v2745_v1  ;;  %63 = vst [vmem:[#allocation2 + $0x49] sm:$0x1] %v2745_v1  ;;  %v2688_v27 = vld [vmem:[%s3312_s1 + $0x138] sm:$0xff]   ;;  %v23_v30 = vld [vmem:[%s3313_s0 + $0x48] sm:$0xff] }
   0xf   :  { %64 = vst [vmem:[#allocation2 + $0x59] sm:$0x1] %v2745_v1  ;;  %65 = vst [vmem:[#allocation2 + $0x69] sm:$0x1] %v2745_v1  ;;  %2247 = vmatpush3.bf16.msra.mxu1 %v2679_v7  ;;  %v2856_v31 = vld [vmem:[%s3313_s0 + $0x50] sm:$0xff]  ;;  %v2690_v32 = vld [vmem:[%s3312_s1 + $0x140] sm:$0xff]   ;;  %v888_v52 = vpack.c.bf16 %v23_v30, %v22_v29 }
  0x10   :  { %66 = vst [vmem:[#allocation2 + $0x79] sm:$0x1] %v2745_v1  ;;  %67 = vst [vmem:[#allocation2 + $0x89] sm:$0x1] %v2745_v1  ;;  %2375 = vmatpush3.bf16.msra.mxu0 %v2680_v8  ;;  %2248 = vmatprep.subr.bf16.mxu1 %v2681_v9  ;;  %v25_v33 = vld [vmem:[%s3313_s0 + $0x58] sm:$0xff]  ;;  %v2691_v36 = vld [vmem:[%s3312_s1 + $0x8] sm:$0xff]   ;;  %v2920_v55 = vpack.c.bf16 %v2856_v31, %v23_v30 }
  0x11   :  { %70 = vst [vmem:[#allocation2 + $0xb9] sm:$0x1] %v2745_v1  ;;  %71 = vst [vmem:[#allocation2 + $0xc9] sm:$0x1] %v2745_v1  ;;  %2376 = vmatprep.subr.bf16.mxu0 %v2682_v10  ;;  %v2692_v37 = vld [vmem:[%s3312_s1 + $0x148] sm:$0xff]   ;;  %v26_v38 = vld [vmem:[%s3313_s0 + $0x60] sm:$0xff]  ;;  %v889_v56 = vpack.c.bf16 %v25_v33, %v2856_v31 }
  0x12   :  { %72 = vst [vmem:[#allocation2 + $0xd9] sm:$0x1] %v2745_v1  ;;  %73 = vst [vmem:[#allocation2 + $0xe9] sm:$0x1] %v2745_v1  ;;  %v27_v40 = vld [vmem:[%s3313_s0 + $0x68] sm:$0xff]  ;;  %v2884_v41 = vld [vmem:[%s3313_s0 + $0x70] sm:$0xff]  ;;  %v2929_v59 = vpack.c.bf16 %v26_v38, %v25_v33 }
  0x13   :  { %74 = vst [vmem:[#allocation2 + $0xf9] sm:$0x1] %v2745_v1  ;;  %75 = vst [vmem:[#allocation2 + $0x109] sm:$0x1] %v2745_v1  ;;  %2249 = vmatpush3.bf16.msra.mxu1 %v2681_v9  ;;  %v2891_v43 = vld [vmem:[%s3313_s0 + $0x78] sm:$0xff]  ;;  %v2693_v44 = vld [vmem:[%s3312_s1 + $0x10] sm:$0xff]   ;;  %v890_v60 = vpack.c.bf16 %v27_v40, %v26_v38  ;;  %v2940_v63 = vpack.c.bf16 %v2884_v41, %v27_v40 }
  0x14   :  { %76 = vst [vmem:[#allocation2 + $0x119] sm:$0x1] %v2745_v1  ;;  %77 = vst [vmem:[#allocation2 + $0x129] sm:$0x1] %v2745_v1  ;;  %2377 = vmatpush3.bf16.msra.mxu0 %v2682_v10  ;;  %2250 = vmatprep.subr.bf16.mxu1 %v2683_v11  ;;  %v2694_v45 = vld [vmem:[%s3312_s1 + $0x150] sm:$0xff]   ;;  %v144_v47 = vld [vmem:[#allocation2 + $0xa1] sm:$0xff]  ;;  %v891_v3 = vpack.c.bf16 %v2891_v43, %v2884_v41 }
  0x15   :  { %59 = vst [vmem:[#allocation2 + $0x9] sm:$0x1] %v2745_v1  ;;  %39 = vst [vmem:[#allocation2] sm:$0x1] %v2745_v1  ;;  %2378 = vmatprep.subr.bf16.mxu0 %v2684_v12  ;;  %v2695_v49 = vld [vmem:[%s3312_s1 + $0x18] sm:$0xff]   ;;  %v156_v51 = vpack.c.bf16 %v22_v29, %v144_v47  ;;  %v2697_v53 = vld [vmem:[%s3312_s1 + $0x20] sm:$0xff]  }
  0x16   :  { %48 = vst [vmem:[#allocation2 + $0x90] sm:$0x1] %v2745_v1  ;;  %49 = vst [vmem:[#allocation2 + $0xa0] sm:$0x1] %v2745_v1  ;;  %v2696_v50 = vld [vmem:[%s3312_s1 + $0x158] sm:$0xff]   ;;  %v2698_v54 = vld [vmem:[%s3312_s1 + $0x160] sm:$0xff]  }
  0x17   :  { %58 = vst [vmem:[#allocation2 + $0x130] sm:$0x1] %v2745_v1  ;;  %68 = vst [vmem:[#allocation2 + $0x99] sm:$0x1] %v2745_v1  ;;  %2251 = vmatpush3.bf16.msra.mxu1 %v2683_v11  ;;  %v2699_v57 = vld [vmem:[%s3312_s1 + $0x28] sm:$0xff]   ;;  %v2701_v61 = vld [vmem:[%s3312_s1 + $0x30] sm:$0xff]  }
  0x18   :  { %69 = vst [vmem:[#allocation2 + $0xa9] sm:$0x1] %v2745_v1  ;;  %78 = vst [vmem:[#allocation2 + $0x139] sm:$0x1] %v2745_v1  ;;  %2379 = vmatpush3.bf16.msra.mxu0 %v2684_v12  ;;  %2252 = vmatprep.subr.bf16.mxu1 %v2685_v20  ;;  %v2700_v58 = vld [vmem:[%s3312_s1 + $0x168] sm:$0xff]   ;;  %v2702_v62 = vld [vmem:[%s3312_s1 + $0x170] sm:$0xff]  }
  0x19   :  { %80 = vst [vmem:[#allocation2 + $0x11] sm:$0xff] %v14_v13  ;;  %81 = vst [vmem:[#allocation2 + $0x21] sm:$0xff] %v15_v15  ;;  %2380 = vmatprep.subr.bf16.mxu0 %v2686_v21  ;;  %v2703_v5 = vld [vmem:[%s3312_s1 + $0x38] sm:$0xff]   ;;  %v2705_v11 = vld [vmem:[%s3312_s1 + $0x80] sm:$0xff]  }
  0x1a   :  { %82 = vst [vmem:[#allocation2 + $0x31] sm:$0xff] %v16_v18  ;;  %83 = vst [vmem:[#allocation2 + $0x41] sm:$0xff] %v17_v19  ;;  %v2704_v6 = vld [vmem:[%s3312_s1 + $0x178] sm:$0xff]   ;;  %v2706_v14 = vld [vmem:[%s3312_s1 + $0x180] sm:$0xff]  }
  0x1b   :  { %84 = vst [vmem:[#allocation2 + $0x51] sm:$0xff] %v18_v22  ;;  %85 = vst [vmem:[#allocation2 + $0x61] sm:$0xff] %v19_v23  ;;  %2253 = vmatpush3.bf16.msra.mxu1 %v2685_v20  ;;  %v2708_v22 = vld [vmem:[%s3312_s1 + $0x188] sm:$0xff]  }
  0x1c   :  { %86 = vst [vmem:[#allocation2 + $0x71] sm:$0xff] %v2829_v24  ;;  %87 = vst [vmem:[#allocation2 + $0x81] sm:$0xff] %v2835_v25  ;;  %2381 = vmatpush3.bf16.msra.mxu0 %v2686_v21  ;;  %2254 = vmatprep.subr.bf16.mxu1 %v2687_v26  ;;  %v96_v0 = vld [vmem:[#allocation2] sm:$0xff]  ;;  %v2707_v21 = vld [vmem:[%s3312_s1 + $0x88] sm:$0xff]  }
  0x1d   :  { %88 = vst [vmem:[#allocation2 + $0xb1] sm:$0xff] %v22_v29  ;;  %89 = vst [vmem:[#allocation2 + $0xc1] sm:$0xff] %v23_v30  ;;  %2382 = vmatprep.subr.bf16.mxu0 %v2688_v27 }
  0x1e   :  { %90 = vst [vmem:[#allocation2 + $0xd1] sm:$0xff] %v2856_v31  ;;  %91 = vst [vmem:[#allocation2 + $0xe1] sm:$0xff] %v25_v33  ;;  %v2710_v31 = vld [vmem:[%s3312_s1 + $0x190] sm:$0xff]  }
  0x1f   :  { %2255 = vmatpush3.bf16.msra.mxu1 %v2687_v26  ;;  %92 = vst [vmem:[#allocation2 + $0xf1] sm:$0xff] %v26_v38  ;;  %93 = vst [vmem:[#allocation2 + $0x101] sm:$0xff] %v27_v40 }
  0x20   :  { %2383 = vmatpush3.bf16.msra.mxu0 %v2688_v27  ;;  %2272 = vmatprep.subr.bf16.mxu1 %v2689_v28  ;;  %94 = vst [vmem:[#allocation2 + $0x111] sm:$0xff] %v2884_v41  ;;  %95 = vst [vmem:[#allocation2 + $0x121] sm:$0xff] %v2891_v43  ;;  %v2942_v1 = vld [vmem:[#allocation2 + $0x10] sm:$0xff]  ;;  %v2948_v4 = vld [vmem:[#allocation2 + $0x22] sm:$0xff] }
  0x21   :  { %2400 = vmatprep.subr.bf16.mxu0 %v2690_v32  ;;  %v2944_v2 = vld [vmem:[#allocation2 + $0x12] sm:$0xff]  ;;  %v112_v7 = vpack.c.bf16 %v2942_v1, %v96_v0  ;;  %v2960_v9 = vld [vmem:[#allocation2 + $0x20] sm:$0xff] }
  0x22   :  { %2257 = vmatmul.mubr.bf16.vlgmr.msra.gmra.mrb[0].mxu1 %v2865_v34  ;;  %v1085_v8 = vpack.c.bf16 %v2948_v4, %v2944_v2  ;;  %v2962_v10 = vld [vmem:[#allocation2 + $0x30] sm:$0xff]  ;;  %v2969_v13 = vld [vmem:[#allocation2 + $0x42] sm:$0xff]  ;;  %v2712_v41 = vld [vmem:[%s3312_s1 + $0x198] sm:$0xff]  }
  0x23   :  { %2385 = vmatmul.mubr.bf16.vlgmr.msra.gmra.mrb[0].mxu0 %v885_v35  ;;  %2273 = vmatpush3.bf16.msra.mxu1 %v2689_v28  ;;  %v2967_v12 = vld [vmem:[#allocation2 + $0x32] sm:$0xff]  ;;  %v2974_v15 = vld [vmem:[#allocation2 + $0x40] sm:$0xff]  ;;  %v2980_v17 = vpack.c.bf16 %v2962_v10, %v2960_v9 }
  0x24   :  { %2401 = vmatpush3.bf16.msra.mxu0 %v2690_v32  ;;  %2274 = vmatprep.subr.bf16.mxu1 %v2691_v36  ;;  %v2976_v16 = vld [vmem:[#allocation2 + $0x50] sm:$0xff]  ;;  %v1086_v19 = vpack.c.bf16 %v2969_v13, %v2967_v12  ;;  %v2986_v20 = vld [vmem:[#allocation2 + $0x62] sm:$0xff]  ;;  %v2711_v35 = vld [vmem:[%s3312_s1 + $0x98] sm:$0xff]  }
  0x25   :  { %2402 = vmatprep.subr.bf16.mxu0 %v2692_v37  ;;  %2260 = vmatprep.mubr.bf16.mxu1 %v2876_v39  ;;  %v2982_v18 = vld [vmem:[#allocation2 + $0x52] sm:$0xff]  ;;  %v2996_v23 = vpack.c.bf16 %v2976_v16, %v2974_v15  ;;  %v2998_v24 = vld [vmem:[#allocation2 + $0x60] sm:$0xff] }
  0x26   :  { %2388 = vmatprep.mubr.bf16.mxu0 %v886_v42  ;;  %v3000_v26 = vld [vmem:[#allocation2 + $0x70] sm:$0xff]  ;;  %v1087_v27 = vpack.c.bf16 %v2986_v20, %v2982_v18  ;;  %v3010_v30 = vld [vmem:[#allocation2 + $0x82] sm:$0xff] }
  0x27   :  { %2275 = vmatpush3.bf16.msra.mxu1 %v2691_v36  ;;  %v2709_v28 = vld [vmem:[%s3312_s1 + $0x90] sm:$0xff]   ;;  %v104_v32 = vld [vmem:[#allocation2 + $0xa0] sm:$0xff]  ;;  %v3018_v33 = vpack.c.bf16 %v3000_v26, %v2998_v24 }
  0x28   :  { %2403 = vmatpush3.bf16.msra.mxu0 %v2692_v37  ;;  %2276 = vmatprep.subr.bf16.mxu1 %v2693_v44  ;;  %v3008_v29 = vld [vmem:[#allocation2 + $0x72] sm:$0xff]  ;;  %v3029_v40 = vld [vmem:[#allocation2 + $0xc2] sm:$0xff] }
  0x29   :  { %2404 = vmatprep.subr.bf16.mxu0 %v2694_v45  ;;  %v3023_v36 = vld [vmem:[#allocation2 + $0xb0] sm:$0xff]  ;;  %v1088_v38 = vpack.c.bf16 %v3010_v30, %v3008_v29  ;;  %v3076_v0 = vld [vmem:[#allocation2 + $0x100] sm:$0xff] }
  0x2a   :  { %2261 = vmatmul.mubr.bf16.gmra.mrb[4].mxu1 %v2902_v46  ;;  %v3025_v37 = vld [vmem:[#allocation2 + $0xb2] sm:$0xff]  ;;  %v116_v42 = vpack.c.bf16 %v3023_v36, %v104_v32  ;;  %v2722_v32 = vld [vmem:[%s3312_s1 + $0x1c0] sm:$0xff]  }
  0x2b   :  { %2389 = vmatmul.mubr.bf16.gmra.mrb[4].mxu0 %v887_v48  ;;  %2277 = vmatpush3.bf16.msra.mxu1 %v2693_v44  ;;  %v3035_v44 = vld [vmem:[#allocation2 + $0xc0] sm:$0xff]  ;;  %v1089_v47 = vpack.c.bf16 %v3029_v40, %v3025_v37 }
  0x2c   :  { %2405 = vmatpush3.bf16.msra.mxu0 %v2694_v45  ;;  %2278 = vmatprep.subr.bf16.mxu1 %v2695_v49  ;;  %v3037_v45 = vld [vmem:[#allocation2 + $0xd0] sm:$0xff]  ;;  %v2713_v48 = vld [vmem:[%s3312_s1 + $0xa0] sm:$0xff]  }
  0x2d   :  { %2406 = vmatprep.subr.bf16.mxu0 %v2696_v50  ;;  %2264 = vmatprep.mubr.bf16.mxu1 %v156_v51  ;;  %v2714_v51 = vld [vmem:[%s3312_s1 + $0x1a0] sm:$0xff]  }
  0x2e   :  { %2392 = vmatprep.mubr.bf16.mxu0 %v888_v52  ;;  %v3052_v52 = vld [vmem:[#allocation2 + $0xe0] sm:$0xff] }
  0x2f   :  { %2279 = vmatpush3.bf16.msra.mxu1 %v2695_v49  ;;  %v3045_v49 = vld [vmem:[#allocation2 + $0xd2] sm:$0xff] }
  0x30   :  { %2407 = vmatpush3.bf16.msra.mxu0 %v2696_v50  ;;  %2280 = vmatprep.subr.bf16.mxu1 %v2697_v53  ;;  %v3047_v50 = vld [vmem:[#allocation2 + $0xe2] sm:$0xff] }
  0x31   :  { %2408 = vmatprep.subr.bf16.mxu0 %v2698_v54 }
  0x32   :  { %2265 = vmatmul.mubr.bf16.gmra.mrb[8].mxu1 %v2920_v55 }
  0x33   :  { %2393 = vmatmul.mubr.bf16.gmra.mrb[8].mxu0 %v889_v56  ;;  %2281 = vmatpush3.bf16.msra.mxu1 %v2697_v53  ;;  %v3056_v53 = vpack.c.bf16 %v3037_v45, %v3035_v44  ;;  %v3061_v56 = vld [vmem:[#allocation2 + $0xf0] sm:$0xff] }
  0x34   :  { %2409 = vmatpush3.bf16.msra.mxu0 %v2698_v54  ;;  %2282 = vmatprep.subr.bf16.mxu1 %v2699_v57  ;;  %v2715_v54 = vld [vmem:[%s3312_s1 + $0xa8] sm:$0xff]  }
  0x35   :  { %2410 = vmatprep.subr.bf16.mxu0 %v2700_v58  ;;  %2268 = vmatprep.mubr.bf16.mxu1 %v2929_v59 }
  0x36   :  { %2396 = vmatprep.mubr.bf16.mxu0 %v890_v60  ;;  %v3067_v60 = vld [vmem:[#allocation2 + $0x102] sm:$0xff] }
  0x37   :  { %2283 = vmatpush3.bf16.msra.mxu1 %v2699_v57  ;;  %v1090_v57 = vpack.c.bf16 %v3047_v50, %v3045_v49 }
  0x38   :  { %2411 = vmatpush3.bf16.msra.mxu0 %v2700_v58  ;;  %2284 = vmatprep.subr.bf16.mxu1 %v2701_v61  ;;  %v3065_v58 = vld [vmem:[#allocation2 + $0xf2] sm:$0xff] }
  0x39   :  { %2412 = vmatprep.subr.bf16.mxu0 %v2702_v62 }
  0x3a   :  { %2269 = vmatmul.mubr.bf16.gmra.mrb[12].mxu1 %v2940_v63 }
  0x3b   :  { %2397 = vmatmul.mubr.bf16.gmra.mrb[12].mxu0 %v891_v3  ;;  %2285 = vmatpush3.bf16.msra.mxu1 %v2701_v61  ;;  %v2716_v61 = vld [vmem:[%s3312_s1 + $0x1a8] sm:$0xff]   ;;  %v1091_v3 = vpack.c.bf16 %v3067_v60, %v3065_v58 }
  0x3c   :  { %2413 = vmatpush3.bf16.msra.mxu0 %v2702_v62  ;;  %2286 = vmatprep.subr.bf16.mxu1 %v2703_v5  ;;  %v3074_v62 = vpack.c.bf16 %v3061_v56, %v3052_v52 }
  0x3d   :  { %2414 = vmatprep.subr.bf16.mxu0 %v2704_v6  ;;  %2288 = vmatprep.mubr.bf16.mxu1 %v112_v7  ;;  %v3086_v7 = vld [vmem:[#allocation2 + $0x112] sm:$0xff] }
  0x3e   :  { %2416 = vmatprep.mubr.bf16.mxu0 %v1085_v8  ;;  %v3088_v8 = vld [vmem:[#allocation2 + $0x122] sm:$0xff] }
  0x3f   :  { %2287 = vmatpush3.bf16.msra.mxu1 %v2703_v5  ;;  %v3081_v5 = vld [vmem:[#allocation2 + $0x110] sm:$0xff] }
  0x40   :  { %2415 = vmatpush3.bf16.msra.mxu0 %v2704_v6  ;;  %2304 = vmatprep.subr.bf16.mxu1 %v2705_v11  ;;  %v2717_v6 = vld [vmem:[%s3312_s1 + $0xb0] sm:$0xff]  }
  0x41   :  { %2432 = vmatprep.subr.bf16.mxu0 %v2706_v14 }
  0x42   :  { %2289 = vmatmul.mubr.bf16.vlgmr.msra.gmra.mrb[0].mxu1 %v2980_v17 }
  0x43   :  { %2417 = vmatmul.mubr.bf16.vlgmr.msra.gmra.mrb[0].mxu0 %v1086_v19  ;;  %2305 = vmatpush3.bf16.msra.mxu1 %v2705_v11  ;;  %v2718_v11 = vld [vmem:[%s3312_s1 + $0x1b0] sm:$0xff]   ;;  %v466_v19 = vld [vmem:[#allocation2 + $0x2] sm:$0xff] }
  0x44   :  { %2433 = vmatpush3.bf16.msra.mxu0 %v2706_v14  ;;  %2306 = vmatprep.subr.bf16.mxu1 %v2707_v21  ;;  %v3096_v14 = vpack.c.bf16 %v3081_v5, %v3076_v0 }
  0x45   :  { %2434 = vmatprep.subr.bf16.mxu0 %v2708_v22  ;;  %2292 = vmatprep.mubr.bf16.mxu1 %v2996_v23 }
  0x46   :  { %2420 = vmatprep.mubr.bf16.mxu0 %v1087_v27  ;;  %v2720_v27 = vld [vmem:[%s3312_s1 + $0x1b8] sm:$0xff]  }
  0x47   :  { %2307 = vmatpush3.bf16.msra.mxu1 %v2707_v21  ;;  %v1092_v21 = vpack.c.bf16 %v3088_v8, %v3086_v7 }
  0x48   :  { %2435 = vmatpush3.bf16.msra.mxu0 %v2708_v22  ;;  %2308 = vmatprep.subr.bf16.mxu1 %v2709_v28  ;;  %v2719_v22 = vld [vmem:[%s3312_s1 + $0xb8] sm:$0xff]  }
  0x49   :  { %2436 = vmatprep.subr.bf16.mxu0 %v2710_v31 }
  0x4a   :  { %2293 = vmatmul.mubr.bf16.gmra.mrb[4].mxu1 %v3018_v33 }
  0x4b   :  { %2421 = vmatmul.mubr.bf16.gmra.mrb[4].mxu0 %v1088_v38  ;;  %2309 = vmatpush3.bf16.msra.mxu1 %v2709_v28  ;;  %v482_v28 = vpack.c.bf16 %v2944_v2, %v466_v19  ;;  %v3117_v2 = vpack.c.bf16 %v2967_v12, %v2948_v4  ;;  %v2724_v38 = vld [vmem:[%s3312_s1 + $0x1c8] sm:$0xff]   ;;  %v2725_v4 = vld [vmem:[%s3312_s1 + $0xd0] sm:$0xff]   ;;  %v3134_v12 = vld [vmem:[#allocation2 + $0x80] sm:$0xff] }
  0x4c   :  { %2437 = vmatpush3.bf16.msra.mxu0 %v2710_v31  ;;  %2310 = vmatprep.subr.bf16.mxu1 %v2711_v35  ;;  %v2721_v31 = vld [vmem:[%s3312_s1 + $0xc0] sm:$0xff]  }
  0x4d   :  { %2438 = vmatprep.subr.bf16.mxu0 %v2712_v41  ;;  %2296 = vmatprep.mubr.bf16.mxu1 %v116_v42 }
  0x4e   :  { %2424 = vmatprep.mubr.bf16.mxu0 %v1089_v47  ;;  %v2727_v47 = vld [vmem:[%s3312_s1 + $0xd8] sm:$0xff]  }
  0x4f   :  { %2311 = vmatpush3.bf16.msra.mxu1 %v2711_v35  ;;  %v2723_v35 = vld [vmem:[%s3312_s1 + $0xc8] sm:$0xff]  }
  0x50   :  { %2439 = vmatpush3.bf16.msra.mxu0 %v2712_v41  ;;  %2312 = vmatprep.subr.bf16.mxu1 %v2713_v48  ;;  %v3127_v41 = vpack.c.bf16 %v2982_v18, %v2969_v13  ;;  %v2726_v13 = vld [vmem:[%s3312_s1 + $0x1d0] sm:$0xff]   ;;  %v3143_v18 = vpack.c.bf16 %v3008_v29, %v2986_v20  ;;  %v2729_v20 = vld [vmem:[%s3312_s1 + $0xe0] sm:$0xff]  }
  0x51   :  { %2440 = vmatprep.subr.bf16.mxu0 %v2714_v51  ;;  %v2730_v29 = vld [vmem:[%s3312_s1 + $0x1e0] sm:$0xff]  }
  0x52   :  { %2297 = vmatmul.mubr.bf16.gmra.mrb[8].mxu1 %v3056_v53 }
  0x53   :  { %2425 = vmatmul.mubr.bf16.gmra.mrb[8].mxu0 %v1090_v57  ;;  %2313 = vmatpush3.bf16.msra.mxu1 %v2713_v48  ;;  %v2728_v48 = vld [vmem:[%s3312_s1 + $0x1d8] sm:$0xff]   ;;  %v3173_v57 = vpack.c.bf16 %v3065_v58, %v3047_v50  ;;  %v2734_v50 = vld [vmem:[%s3312_s1 + $0x1f0] sm:$0xff]   ;;  %v3189_v58 = vpack.c.bf16 %v3086_v7, %v3067_v60  ;;  %v2737_v60 = vld [vmem:[%s3312_s1 + $0x200] sm:$0xff]   ;;  %v684_v7 = vpack.c.bf16 %v2974_v15, %v2962_v10 }
  0x54   :  { %2441 = vmatpush3.bf16.msra.mxu0 %v2714_v51  ;;  %2314 = vmatprep.subr.bf16.mxu1 %v2715_v54  ;;  %v2731_v51 = vld [vmem:[%s3312_s1 + $0xe8] sm:$0xff]   ;;  %v2739_v10 = vld [vmem:[%s3312_s1 + $0x210] sm:$0xff]   ;;  %v686_v15 = vpack.c.bf16 %v3134_v12, %v3000_v26 }
  0x55   :  { %2442 = vmatprep.subr.bf16.mxu0 %v2716_v61  ;;  %2300 = vmatprep.mubr.bf16.mxu1 %v3074_v62  ;;  %v2742_v26 = vld [vmem:[%s3312_s1 + $0x228] sm:$0xff]  }
  0x56   :  { %2428 = vmatprep.mubr.bf16.mxu0 %v1091_v3  ;;  %v2736_v3 = vld [vmem:[%s3312_s1 + $0x1f8] sm:$0xff]  }
  0x57   :  { %2315 = vmatpush3.bf16.msra.mxu1 %v2715_v54  ;;  %v2732_v54 = vld [vmem:[%s3312_s1 + $0x1e8] sm:$0xff]  }
  0x58   :  { %2443 = vmatpush3.bf16.msra.mxu0 %v2716_v61  ;;  %2316 = vmatprep.subr.bf16.mxu1 %v2717_v6 }
  0x59   :  { %2444 = vmatprep.subr.bf16.mxu0 %v2718_v11 }
  0x5a   :  { %2301 = vmatmul.mubr.bf16.gmra.mrb[12].mxu1 %v3096_v14 }
  0x5b   :  { %2429 = vmatmul.mubr.bf16.gmra.mrb[12].mxu0 %v1092_v21  ;;  %2317 = vmatpush3.bf16.msra.mxu1 %v2717_v6  ;;  %v683_v6 = vpack.c.bf16 %v2960_v9, %v2942_v1  ;;  %v2738_v1 = vld [vmem:[%s3312_s1 + $0x208] sm:$0xff]   ;;  %v685_v9 = vpack.c.bf16 %v2998_v24, %v2976_v16  ;;  %v687_v24 = vpack.c.bf16 %v3035_v44, %v3023_v36  ;;  %v2743_v44 = vld [vmem:[%s3312_s1 + $0x230] sm:$0xff]  }
  0x5c   :  { %2445 = vmatpush3.bf16.msra.mxu0 %v2718_v11  ;;  %2318 = vmatprep.subr.bf16.mxu1 %v2719_v22  ;;  %v689_v36 = vpack.c.bf16 %v3076_v0, %v3061_v56 }
  0x5d   :  { %2446 = vmatprep.subr.bf16.mxu0 %v2720_v27  ;;  %2320 = vmatprep.mubr.bf16.mxu1 %v482_v28 }
  0x5e   :  { %2448 = vmatprep.mubr.bf16.mxu0 %v2980_v17  ;;  %v1278_v17 = vld [vmem:[#allocation2 + $0x90] sm:$0xff] }
  0x5f   :  { %2319 = vmatpush3.bf16.msra.mxu1 %v2719_v22  ;;  %v1290_v42 = vpack.c.bf16 %v1278_v17, %v3134_v12 }
  0x60   :  { %2447 = vmatpush3.bf16.msra.mxu0 %v2720_v27  ;;  %2336 = vmatprep.subr.bf16.mxu1 %v2721_v31 }
  0x61   :  { %2464 = vmatprep.subr.bf16.mxu0 %v2722_v32 }
  0x62   :  { %2321 = vmatmul.mubr.bf16.vlgmr.msra.gmra.mrb[0].mxu1 %v3117_v2 }
  0x63   :  { %2449 = vmatmul.mubr.bf16.vlgmr.msra.gmra.mrb[0].mxu0 %v2996_v23  ;;  %2337 = vmatpush3.bf16.msra.mxu1 %v2721_v31  ;;  %v474_v23 = vld [vmem:[#allocation2 + $0xa2] sm:$0xff] }
  0x64   :  { %2465 = vmatpush3.bf16.msra.mxu0 %v2722_v32  ;;  %2338 = vmatprep.subr.bf16.mxu1 %v2723_v35 }
  0x65   :  { %2466 = vmatprep.subr.bf16.mxu0 %v2724_v38  ;;  %2324 = vmatprep.mubr.bf16.mxu1 %v3127_v41 }
  0x66   :  { %2452 = vmatprep.mubr.bf16.mxu0 %v3018_v33  ;;  %v486_v33 = vpack.c.bf16 %v3025_v37, %v474_v23  ;;  %v3163_v37 = vpack.c.bf16 %v3045_v49, %v3029_v40  ;;  %v2733_v40 = vld [vmem:[%s3312_s1 + $0xf0] sm:$0xff]   ;;  %v3180_v49 = vld [vmem:[#allocation2 + $0x120] sm:$0xff] }
  0x67   :  { %2339 = vmatpush3.bf16.msra.mxu1 %v2723_v35 }
  0x68   :  { %2467 = vmatpush3.bf16.msra.mxu0 %v2724_v38  ;;  %2340 = vmatprep.subr.bf16.mxu1 %v2725_v4 }
  0x69   :  { %2468 = vmatprep.subr.bf16.mxu0 %v2726_v13 }
  0x6a   :  { %2325 = vmatmul.mubr.bf16.gmra.mrb[4].mxu1 %v3143_v18 }
  0x6b   :  { %2453 = vmatmul.mubr.bf16.gmra.mrb[4].mxu0 %v1290_v42  ;;  %2341 = vmatpush3.bf16.msra.mxu1 %v2725_v4 }
  0x6c   :  { %2469 = vmatpush3.bf16.msra.mxu0 %v2726_v13  ;;  %2342 = vmatprep.subr.bf16.mxu1 %v2727_v47 }
  0x6d   :  { %2470 = vmatprep.subr.bf16.mxu0 %v2728_v48  ;;  %2328 = vmatprep.mubr.bf16.mxu1 %v486_v33 }
  0x6e   :  { %2456 = vmatprep.mubr.bf16.mxu0 %v3056_v53  ;;  %v1286_v53 = vld [vmem:[#allocation2 + $0x130] sm:$0xff] }
  0x6f   :  { %2343 = vmatpush3.bf16.msra.mxu1 %v2727_v47  ;;  %v1294_v61 = vpack.c.bf16 %v1286_v53, %v3180_v49 }
  0x70   :  { %2471 = vmatpush3.bf16.msra.mxu0 %v2728_v48  ;;  %2344 = vmatprep.subr.bf16.mxu1 %v2729_v20 }
  0x71   :  { %2472 = vmatprep.subr.bf16.mxu0 %v2730_v29 }
  0x72   :  { %2329 = vmatmul.mubr.bf16.gmra.mrb[8].mxu1 %v3163_v37 }
  0x73   :  { %2457 = vmatmul.mubr.bf16.gmra.mrb[8].mxu0 %v3074_v62  ;;  %2345 = vmatpush3.bf16.msra.mxu1 %v2729_v20  ;;  %v2735_v62 = vld [vmem:[%s3312_s1 + $0xf8] sm:$0xff]  }
  0x74   :  { %2473 = vmatpush3.bf16.msra.mxu0 %v2730_v29  ;;  %2346 = vmatprep.subr.bf16.mxu1 %v2731_v51 }
  0x75   :  { %2474 = vmatprep.subr.bf16.mxu0 %v2732_v54  ;;  %2332 = vmatprep.mubr.bf16.mxu1 %v3173_v57 }
  0x76   :  { %2460 = vmatprep.mubr.bf16.mxu0 %v3096_v14 }
  0x77   :  { %2347 = vmatpush3.bf16.msra.mxu1 %v2731_v51 }
  0x78   :  { %2475 = vmatpush3.bf16.msra.mxu0 %v2732_v54  ;;  %2348 = vmatprep.subr.bf16.mxu1 %v2733_v40 }
  0x79   :  { %2476 = vmatprep.subr.bf16.mxu0 %v2734_v50 }
  0x7a   :  { %2333 = vmatmul.mubr.bf16.gmra.mrb[12].mxu1 %v3189_v58 }
  0x7b   :  { %2461 = vmatmul.mubr.bf16.gmra.mrb[12].mxu0 %v1294_v61  ;;  %2349 = vmatpush3.bf16.msra.mxu1 %v2733_v40 }
  0x7c   :  { %2477 = vmatpush3.bf16.msra.mxu0 %v2734_v50  ;;  %2350 = vmatprep.subr.bf16.mxu1 %v2735_v62 }
  0x7d   :  { %2478 = vmatprep.subr.bf16.mxu0 %v2736_v3  ;;  %2352 = vmatprep.mubr.bf16.mxu1 %v683_v6 }
  0x7e   :  { %2480 = vmatprep.mubr.bf16.mxu0 %v2865_v34  ;;  %v1479_v34 = vld [vmem:[#allocation2 + $0x91] sm:$0xff] }
  0x7f   :  { %2351 = vmatpush3.bf16.msra.mxu1 %v2735_v62  ;;  %v1491_v16 = vpack.c.bf16 %v1479_v34, %v2835_v25  ;;  %v688_v25 = vpack.c.bf16 %v3052_v52, %v3037_v45  ;;  %v690_v45 = vpack.c.bf16 %v3180_v49, %v3081_v5 }
  0x80   :  { %2479 = vmatpush3.bf16.msra.mxu0 %v2736_v3  ;;  %2528 = vmatprep.subr.bf16.mxu1 %v2737_v60 }
  0x81   :  { %2496 = vmatprep.subr.bf16.mxu0 %v2737_v60 }
  0x82   :  { %2353 = vmatmul.mubr.bf16.vlgmr.msra.gmra.mrb[0].mxu1 %v684_v7 }
  0x83   :  { %2481 = vmatmul.mubr.bf16.vlgmr.msra.gmra.mrb[0].mxu0 %v2876_v39  ;;  %2536 = vmatpush3.bf16.msra.mxu1 %v2737_v60  ;;  %v2740_v39 = vld [vmem:[%s3312_s1 + $0x218] sm:$0xff]  }
  0x84   :  { %2497 = vmatpush3.bf16.msra.mxu0 %v2737_v60  ;;  %2529 = vmatprep.subr.bf16.mxu1 %v2738_v1 }
  0x85   :  { %2498 = vmatprep.subr.bf16.mxu0 %v2738_v1  ;;  %2356 = vmatprep.mubr.bf16.mxu1 %v685_v9 }
  0x86   :  { %2484 = vmatprep.mubr.bf16.mxu0 %v2902_v46  ;;  %v2741_v46 = vld [vmem:[%s3312_s1 + $0x220] sm:$0xff]  }
  0x87   :  { %2537 = vmatpush3.bf16.msra.mxu1 %v2738_v1 }
  0x88   :  { %2499 = vmatpush3.bf16.msra.mxu0 %v2738_v1  ;;  %2530 = vmatprep.subr.bf16.mxu1 %v2739_v10 }
  0x89   :  { %2500 = vmatprep.subr.bf16.mxu0 %v2739_v10 }
  0x8a   :  { %2357 = vmatmul.mubr.bf16.gmra.mrb[4].mxu1 %v686_v15 }
  0x8b   :  { %2485 = vmatmul.mubr.bf16.gmra.mrb[4].mxu0 %v1491_v16  ;;  %2538 = vmatpush3.bf16.msra.mxu1 %v2739_v10 }
  0x8c   :  { %2501 = vmatpush3.bf16.msra.mxu0 %v2739_v10  ;;  %2531 = vmatprep.subr.bf16.mxu1 %v2740_v39 }
  0x8d   :  { %2502 = vmatprep.subr.bf16.mxu0 %v2740_v39  ;;  %2360 = vmatprep.mubr.bf16.mxu1 %v687_v24 }
  0x8e   :  { %2488 = vmatprep.mubr.bf16.mxu0 %v2920_v55  ;;  %v1487_v55 = vld [vmem:[#allocation2 + $0x131] sm:$0xff] }
  0x8f   :  { %2539 = vmatpush3.bf16.msra.mxu1 %v2740_v39  ;;  %v1495_v52 = vpack.c.bf16 %v1487_v55, %v2891_v43  ;;  %v1688_v43 = vld [vmem:[#allocation2 + $0x132] sm:$0xff] }
  0x90   :  { %2503 = vmatpush3.bf16.msra.mxu0 %v2740_v39  ;;  %2532 = vmatprep.subr.bf16.mxu1 %v2741_v46  ;;  %v1696_v56 = vpack.c.bf16 %v1688_v43, %v3088_v8 }
  0x91   :  { %2504 = vmatprep.subr.bf16.mxu0 %v2741_v46 }
  0x92   :  { %2361 = vmatmul.mubr.bf16.gmra.mrb[8].mxu1 %v688_v25 }
  0x93   :  { %2489 = vmatmul.mubr.bf16.gmra.mrb[8].mxu0 %v2929_v59  ;;  %2540 = vmatpush3.bf16.msra.mxu1 %v2741_v46  ;;  %v2744_v59 = vld [vmem:[%s3312_s1 + $0x238] sm:$0xff]  }
  0x94   :  { %2505 = vmatpush3.bf16.msra.mxu0 %v2741_v46  ;;  %2533 = vmatprep.subr.bf16.mxu1 %v2742_v26 }
  0x95   :  { %2506 = vmatprep.subr.bf16.mxu0 %v2742_v26  ;;  %2364 = vmatprep.mubr.bf16.mxu1 %v689_v36 }
  0x96   :  { %2492 = vmatprep.mubr.bf16.mxu0 %v2940_v63  ;;  %v1680_v63 = vld [vmem:[#allocation2 + $0x92] sm:$0xff] }
  0x97   :  { %2541 = vmatpush3.bf16.msra.mxu1 %v2742_v26  ;;  %v1692_v0 = vpack.c.bf16 %v1680_v63, %v3010_v30 }
  0x98   :  { %2507 = vmatpush3.bf16.msra.mxu0 %v2742_v26  ;;  %2534 = vmatprep.subr.bf16.mxu1 %v2743_v44 }
  0x99   :  { %2508 = vmatprep.subr.bf16.mxu0 %v2743_v44 }
  0x9a   :  { %2365 = vmatmul.mubr.bf16.gmra.mrb[12].mxu1 %v690_v45 }
  0x9b   :  { %2493 = vmatmul.mubr.bf16.gmra.mrb[12].mxu0 %v1495_v52  ;;  %2542 = vmatpush3.bf16.msra.mxu1 %v2743_v44 }
  0x9c   :  { %2509 = vmatpush3.bf16.msra.mxu0 %v2743_v44  ;;  %2535 = vmatprep.subr.bf16.mxu1 %v2744_v59 }
  0x9d   :  { %2510 = vmatprep.subr.bf16.mxu0 %v2744_v59  ;;  %2512 = vmatprep.mubr.bf16.mxu0 %v3117_v2 }
  0x9e   :  { %2520 = vmatprep.mubr.bf16.mxu1 %v3163_v37 }
  0x9f   :  { %2543 = vmatpush3.bf16.msra.mxu1 %v2744_v59 }
  0xa0   :  { %2511 = vmatpush3.bf16.msra.mxu0 %v2744_v59 }
  0xa2   :  { %2521 = vmatmul.mubr.bf16.vlgmr.msra.gmra.mrb[16].mxu1 %v3173_v57 }
  0xa3   :  { %2513 = vmatmul.mubr.bf16.vlgmr.msra.gmra.mrb[0].mxu0 %v3127_v41  ;;  %2524 = vmatprep.mubr.bf16.mxu1 %v3189_v58 }
  0xa4   :  { %2516 = vmatprep.mubr.bf16.mxu0 %v3143_v18 }
  0xaa   :  { %2525 = vmatmul.mubr.bf16.gmra.mrb[20].mxu1 %v1696_v56 }
  0xab   :  { %2517 = vmatmul.mubr.bf16.gmra.mrb[4].mxu0 %v1692_v0 }
 0x155   :  { %v2354_v5 = vpop.f32.mrb[0].mxu1 }
 0x156   :  { %v789_v11 = vpop.f32.mrb[1].mxu1 }
 0x157   :  { %v2355_v14 = vpop.f32.mrb[2].mxu1 }
 0x158   :  { %v792_v19 = vpop.f32.mrb[3].mxu1 }
 0x15d   :  { %v3255_v21 = vpop.f32.mrb[4].mxu1 }
 0x15e   :  { %v3257_v22 = vpop.f32.mrb[5].mxu1 }
 0x15f   :  { %v3259_v27 = vpop.f32.mrb[6].mxu1 }
 0x160   :  { %v3261_v28 = vpop.f32.mrb[7].mxu1 }
 0x165   :  { %v2362_v31 = vpop.f32.mrb[8].mxu1 }
 0x166   :  { %v2490_v32 = vpop.f32.mrb[8].mxu0  ;;  %v821_v2 = vpop.f32.mrb[9].mxu1 }
 0x167   :  { %v2552_v8 = vadd.f32 %v2490_v32, %v2362_v31  ;;  %v1626_v35 = vpop.f32.mrb[9].mxu0  ;;  %v2363_v30 = vpop.f32.mrb[10].mxu1 }
 0x168   :  { %v2554_v38 = vadd.f32 %v1626_v35, %v821_v2  ;;  %v2491_v41 = vpop.f32.mrb[10].mxu0  ;;  %v824_v4 = vpop.f32.mrb[11].mxu1 }
 0x169   :  { %v2556_v12 = vadd.f32 %v2491_v41, %v2363_v30  ;;  %v1629_v17 = vpop.f32.mrb[11].mxu0 }
 0x16a   :  { %v2558_v13 = vadd.f32 %v1629_v17, %v824_v4 }
 0x16d   :  { %v2366_v18 = vpop.f32.mrb[12].mxu1 }
 0x16e   :  { %v2494_v23 = vpop.f32.mrb[12].mxu0  ;;  %v837_v42 = vpop.f32.mrb[13].mxu1 }
 0x16f   :  { %v2560_v47 = vadd.f32 %v2494_v23, %v2366_v18  ;;  %v1642_v48 = vpop.f32.mrb[13].mxu0  ;;  %v2367_v33 = vpop.f32.mrb[14].mxu1 }
 0x170   :  { %v2562_v20 = vadd.f32 %v1642_v48, %v837_v42  ;;  %v2495_v29 = vpop.f32.mrb[14].mxu0  ;;  %v840_v37 = vpop.f32.mrb[15].mxu1 }
 0x171   :  { %v2564_v51 = vadd.f32 %v2495_v29, %v2367_v33  ;;  %v1645_v54 = vpop.f32.mrb[15].mxu0 }
 0x172   :  { %v2566_v57 = vadd.f32 %v1645_v54, %v840_v37 }
 0x175   :  { %v2522_v40 = vpop.f32.mrb[16].mxu1 }
 0x176   :  { %v2514_v49 = vpop.f32.mrb[0].mxu0  ;;  %v3263_v53 = vadd.f32 %v2552_v8, %v2522_v40  ;;  %v1827_v50 = vpop.f32.mrb[17].mxu1 }
 0x177   :  { %v2544_v58 = vadd.f32 %v2514_v49, %v2354_v5  ;;  %v1795_v61 = vpop.f32.mrb[1].mxu0  ;;  %v3265_v62 = vadd.f32 %v2554_v38, %v1827_v50  ;;  %v2523_v3 = vpop.f32.mrb[18].mxu1 }
 0x178   :  { %v2545_v6 = vadd.f32 %v1795_v61, %v789_v11  ;;  %v2515_v60 = vpop.f32.mrb[2].mxu0  ;;  %v3267_v7 = vadd.f32 %v2556_v12, %v2523_v3  ;;  %v1830_v1 = vpop.f32.mrb[19].mxu1 }
 0x179   :  { %v2546_v9 = vadd.f32 %v2515_v60, %v2355_v14  ;;  %v1798_v34 = vpop.f32.mrb[3].mxu0  ;;  %v2559_v10 = vadd.f32 %v2558_v13, %v1830_v1  ;;  %v1930_v44 = vmul.f32 %v2544_v58, %v2544_v58 }
 0x17a   :  { %v2077_v15 = vpack.c.bf16 %v3267_v7, %v3263_v53  ;;  %v2547_v16 = vadd.f32 %v1798_v34, %v792_v19  ;;  %v1928_v46 = vmul.f32 %v2545_v6, %v2545_v6 }
 0x17b   :  { %v2057_v39 = vpack.c.bf16 %v2546_v9, %v2544_v58  ;;  %v2072_v24 = vpack.c.bf16 %v2559_v10, %v3265_v62  ;;  %v1931_v14 = vmul.f32 %v2546_v9, %v2546_v9  ;;  %v1937_v40 = vmul.f32 %v2559_v10, %v2559_v10 }
 0x17c   :  { %2093 = vst [vmem:[%s3314_s2 + $0x28] sm:$0xff] %v2077_v15   ;;  %v2052_v25 = vpack.c.bf16 %v2547_v16, %v2545_v6  ;;  %v1906_v26 = vadd.f32 %v2547_v16, %v2545_v6  ;;  %v1929_v36 = vmul.f32 %v2547_v16, %v2547_v16  ;;  %v1939_v6 = vmul.f32 %v3267_v7, %v3267_v7 }
 0x17d   :  { %2089 = vst [vmem:[%s3314_s2 + $0x8] sm:$0xff] %v2057_v39   ;;  %2092 = vst [vmem:[%s3314_s2 + $0x20] sm:$0xff] %v2072_v24   ;;  %v2526_v55 = vpop.f32.mrb[20].mxu1 }
 0x17e   :  { %2053 = vst [vmem:[%s3314_s2] sm:$0xff] %v2052_v25   ;;  %v1907_v45 = vadd.f32 %v2544_v58, %v1906_v26  ;;  %v1944_v52 = vadd.f32 %v1929_v36, %v1928_v46  ;;  %v2518_v59 = vpop.f32.mrb[4].mxu0  ;;  %v2561_v43 = vadd.f32 %v2560_v47, %v2526_v55  ;;  %v1843_v63 = vpop.f32.mrb[21].mxu1  ;;  %v1938_v58 = vmul.f32 %v3263_v53, %v3263_v53 }
 0x17f   :  { %v2548_v56 = vadd.f32 %v2518_v59, %v3255_v21  ;;  %v1811_v0 = vpop.f32.mrb[5].mxu0  ;;  %v2563_v5 = vadd.f32 %v2562_v20, %v1843_v63  ;;  %v2527_v11 = vpop.f32.mrb[22].mxu1 }
 0x180   :  { %v1945_v19 = vadd.f32 %v1944_v52, %v1930_v44  ;;  %v2549_v31 = vadd.f32 %v1811_v0, %v3257_v22  ;;  %v1908_v32 = vadd.f32 %v2546_v9, %v1907_v45  ;;  %v2519_v2 = vpop.f32.mrb[6].mxu0  ;;  %v1846_v8 = vpop.f32.mrb[23].mxu1  ;;  %v2565_v30 = vadd.f32 %v2564_v51, %v2527_v11 }
 0x181   :  { %v2550_v35 = vadd.f32 %v2519_v2, %v3259_v27  ;;  %v1814_v38 = vpop.f32.mrb[7].mxu0  ;;  %v2567_v22 = vadd.f32 %v2566_v57, %v1846_v8  ;;  %v1934_v27 = vmul.f32 %v2548_v56, %v2548_v56  ;;  %v1936_v51 = vmul.f32 %v3265_v62, %v3265_v62 }
 0x182   :  { %v1909_v41 = vadd.f32 %v2549_v31, %v1908_v32  ;;  %v1932_v4 = vmul.f32 %v2549_v31, %v2549_v31  ;;  %v1946_v12 = vadd.f32 %v1945_v19, %v1931_v14  ;;  %v2551_v17 = vadd.f32 %v1814_v38, %v3261_v28 }
 0x183   :  { %v2067_v21 = vpack.c.bf16 %v2550_v35, %v2548_v56  ;;  %v2087_v13 = vpack.c.bf16 %v2565_v30, %v2561_v43  ;;  %v2082_v33 = vpack.c.bf16 %v2567_v22, %v2563_v5  ;;  %v1935_v20 = vmul.f32 %v2550_v35, %v2550_v35 }
 0x184   :  { %v1947_v18 = vadd.f32 %v1946_v12, %v1932_v4  ;;  %v2062_v23 = vpack.c.bf16 %v2551_v17, %v2549_v31  ;;  %v1910_v42 = vadd.f32 %v2551_v17, %v1909_v41  ;;  %v1933_v47 = vmul.f32 %v2551_v17, %v2551_v17 }
 0x185   :  { %2091 = vst [vmem:[%s3314_s2 + $0x18] sm:$0xff] %v2067_v21   ;;  %2095 = vst [vmem:[%s3314_s2 + $0x38] sm:$0xff] %v2087_v13   ;;  %v1940_v9 = vmul.f32 %v2563_v5, %v2563_v5  ;;  %v1941_v16 = vmul.f32 %v2567_v22, %v2567_v22  ;;  %v1942_v24 = vmul.f32 %v2561_v43, %v2561_v43 }
 0x186   :  { %2090 = vst [vmem:[%s3314_s2 + $0x10] sm:$0xff] %v2062_v23   ;;  %v1911_v28 = vadd.f32 %v2548_v56, %v1910_v42  ;;  %v1948_v48 = vadd.f32 %v1947_v18, %v1933_v47  ;;  %2094 = vst [vmem:[%s3314_s2 + $0x30] sm:$0xff] %v2082_v33   ;;  %v1943_v25 = vmul.f32 %v2565_v30, %v2565_v30 }
 0x188   :  { %v1912_v29 = vadd.f32 %v2550_v35, %v1911_v28  ;;  %v1949_v37 = vadd.f32 %v1948_v48, %v1934_v27 }
 0x18a   :  { %v1913_v54 = vadd.f32 %v3265_v62, %v1912_v29  ;;  %v1950_v57 = vadd.f32 %v1949_v37, %v1935_v20 }
 0x18c   :  { %v1951_v49 = vadd.f32 %v1950_v57, %v1936_v51  ;;  %v1914_v50 = vadd.f32 %v2559_v10, %v1913_v54 }
 0x18e   :  { %v1915_v61 = vadd.f32 %v3263_v53, %v1914_v50  ;;  %v1952_v3 = vadd.f32 %v1951_v49, %v1937_v40 }
 0x190   :  { %v1916_v60 = vadd.f32 %v3267_v7, %v1915_v61  ;;  %v1953_v1 = vadd.f32 %v1952_v3, %v1938_v58 }
 0x192   :  { %v1917_v34 = vadd.f32 %v2563_v5, %v1916_v60  ;;  %v1954_v15 = vadd.f32 %v1953_v1, %v1939_v6 }
 0x194   :  { %v1918_v62 = vadd.f32 %v2567_v22, %v1917_v34  ;;  %v1955_v39 = vadd.f32 %v1954_v15, %v1940_v9 }
 0x196   :  { %v1919_v10 = vadd.f32 %v2561_v43, %v1918_v62  ;;  %v1956_v46 = vadd.f32 %v1955_v39, %v1941_v16 }
 0x198   :  { %v1920_v26 = vadd.f32 %v2565_v30, %v1919_v10  ;;  %v1957_v36 = vadd.f32 %v1956_v46, %v1942_v24 }
 0x19a   :  { %v1921_v53 = vrot.slane %v1920_v26, 4  ;;  %v1958_v55 = vadd.f32 %v1957_v36, %v1943_v25 }
 0x19c   :  { %v1922_v44 = vadd.f32 %v1921_v53, %v1920_v26  ;;  %v1959_v45 = vrot.slane %v1958_v55, 4 }
 0x19e   :  { %v1923_v52 = vrot.slane %v1922_v44, 2  ;;  %v1960_v59 = vadd.f32 %v1959_v45, %v1958_v55 }
 0x1a0   :  { %v1924_v7 = vadd.f32 %v1923_v52, %v1922_v44  ;;  %v1961_v63 = vrot.slane %v1960_v59, 2 }
 0x1a2   :  { %v1925_v56 = vrot.slane %v1924_v7, 1  ;;  %v1962_v0 = vadd.f32 %v1961_v63, %v1960_v59 }
 0x1a4   :  { %v1963_v5 = vrot.slane %v1962_v0, 1  ;;  %v1926_v11 = vadd.f32 %v1925_v56, %v1924_v7 }
 0x1a6   :  { %v1964_v14 = vadd.f32 %v1963_v5, %v1962_v0 }
 0x1a8   :  { %v1967_v19 = vsel %vm1966_vm0, %v1926_v11, %v1964_v14 }
 0x1a9   :  { %1968 = vst [vmem:[%s3315_s3] sm:$0x3] %v1967_v19 }

// kernel: res_layer_forward.4
= control target key start
LH: loop header
LB: loop body
LE: loop exit
PB: predicated region body
PF: predicated region fallthrough
CT: control target
= control target key end

     0   :  { %v2924_v2 = vmov 0.0   ;;  %s3574_s0 = inlined_call_operand.vmem [shape: bf16[2,8,8,128], index: 0, kind: input, shape index: {}]   ;;  %s3575_s1 = inlined_call_operand.vmem [shape: f32[2,128], index: 1, kind: input, shape index: {}]   ;;  %s3576_s2 = inlined_call_operand.vmem [shape: bf16[1152,128], index: 2, kind: input, shape index: {}]   ;;  %s3577_s3 = inlined_call_operand.hbm [shape: f32[2,8,8,128], index: 3, kind: output, shape index: {0}]   ;;  %s3578_s4 = inlined_call_operand.vmem [shape: bf16[2,8,8,128], index: 4, kind: output, shape index: {1}]   ;;  %s3579_s5 = inlined_call_operand.vmem [shape: f32[1,2,128], index: 5, kind: output, shape index: {2}]  }
   0x1   :  { %v2828_v0 = vld [vmem:[%s3576_s2 + $0x40] sm:$0xff]   ;;  %125 = vst [vmem:[#allocation2] sm:$0xff] %v2924_v2  ;;  %126 = vst [vmem:[#allocation2 + $0x8] sm:$0x3] %v2924_v2  ;;  %v2830_v3 = vld [vmem:[%s3576_s2 + $0x48] sm:$0xff]  }
   0x2   :  { %v2829_v1 = vld [vmem:[%s3576_s2 + $0x100] sm:$0xff]   ;;  %127 = vst [vmem:[#allocation2 + $0xa0] sm:$0xff] %v2924_v2  ;;  %128 = vst [vmem:[#allocation2 + $0xa8] sm:$0x3] %v2924_v2  ;;  %2392 = vmatprep.subr.bf16.mxu1 %v2828_v0  ;;  %v2831_v4 = vld [vmem:[%s3576_s2 + $0x108] sm:$0xff]  }
   0x3   :  { %130 = vst [vmem:[#allocation2 + $0x90] sm:$0xff] %v2924_v2  ;;  %131 = vst [vmem:[#allocation2 + $0x98] sm:$0x3] %v2924_v2  ;;  %2520 = vmatprep.subr.bf16.mxu0 %v2829_v1  ;;  %2393 = vmatpush3.bf16.msra.mxu1 %v2828_v0  ;;  %v2832_v5 = vld [vmem:[%s3576_s2 + $0x50] sm:$0xff]   ;;  %v2834_v7 = vld [vmem:[%s3576_s2 + $0x58] sm:$0xff]  }
   0x4   :  { %132 = vst [vmem:[#allocation2 + $0x130] sm:$0xff] %v2924_v2  ;;  %133 = vst [vmem:[#allocation2 + $0x138] sm:$0x3] %v2924_v2  ;;  %2521 = vmatpush3.bf16.msra.mxu0 %v2829_v1  ;;  %2394 = vmatprep.subr.bf16.mxu1 %v2830_v3  ;;  %v2833_v6 = vld [vmem:[%s3576_s2 + $0x110] sm:$0xff]   ;;  %v2835_v8 = vld [vmem:[%s3576_s2 + $0x118] sm:$0xff]  }
   0x5   :  { %135 = vst [vmem:[#allocation2 + $0x10] sm:$0x1] %v2924_v2  ;;  %136 = vst [vmem:[#allocation2 + $0x20] sm:$0x1] %v2924_v2  ;;  %2522 = vmatprep.subr.bf16.mxu0 %v2831_v4  ;;  %v2836_v9 = vld [vmem:[%s3576_s2 + $0x60] sm:$0xff]   ;;  %v2838_v11 = vld [vmem:[%s3576_s2 + $0x68] sm:$0xff]  }
   0x6   :  { %137 = vst [vmem:[#allocation2 + $0x30] sm:$0x1] %v2924_v2  ;;  %138 = vst [vmem:[#allocation2 + $0x40] sm:$0x1] %v2924_v2  ;;  %v2837_v10 = vld [vmem:[%s3576_s2 + $0x120] sm:$0xff]   ;;  %v2839_v14 = vld [vmem:[%s3576_s2 + $0x128] sm:$0xff]  }
   0x7   :  { %139 = vst [vmem:[#allocation2 + $0x50] sm:$0x1] %v2924_v2  ;;  %140 = vst [vmem:[#allocation2 + $0x60] sm:$0x1] %v2924_v2  ;;  %2395 = vmatpush3.bf16.msra.mxu1 %v2830_v3  ;;  %v2163_v12 = vld [vmem:[%s3574_s0] sm:$0xff]   ;;  %v2234_v17 = vld [vmem:[%s3574_s0 + $0x8] sm:$0xff]  }
   0x8   :  { %141 = vst [vmem:[#allocation2 + $0x70] sm:$0x1] %v2924_v2  ;;  %142 = vst [vmem:[#allocation2 + $0x80] sm:$0x1] %v2924_v2  ;;  %2523 = vmatpush3.bf16.msra.mxu0 %v2831_v4  ;;  %2396 = vmatprep.subr.bf16.mxu1 %v2832_v5  ;;  %v2997_v13 = vld [vmem:[%s3575_s1] ss:$0 sm:$0xff]  ;;  %v2164_v15 = vunpack.c.l.bf16 %v2163_v12  ;;  %v2165_v16 = vunpack.c.h.bf16 %v2163_v12  ;;  %v2168_v19 = vunpack.c.l.bf16 %v2234_v17  ;;  %v2169_v20 = vunpack.c.h.bf16 %v2234_v17 }
   0x9   :  { %145 = vst [vmem:[#allocation2 + $0xb0] sm:$0x1] %v2924_v2  ;;  %146 = vst [vmem:[#allocation2 + $0xc0] sm:$0x1] %v2924_v2  ;;  %2524 = vmatprep.subr.bf16.mxu0 %v2833_v6  ;;  %v3008_v18 = vld [vmem:[%s3575_s1 + $0x1] ss:$0 sm:$0xff] }
   0xa   :  { %147 = vst [vmem:[#allocation2 + $0xd0] sm:$0x1] %v2924_v2  ;;  %148 = vst [vmem:[#allocation2 + $0xe0] sm:$0x1] %v2924_v2  ;;  %v2840_v21 = vld [vmem:[%s3576_s2 + $0x70] sm:$0xff]   ;;  %v56_v22 = vmul.f32 %v2164_v15, %v2997_v13  ;;  %v57_v23 = vmul.f32 %v2165_v16, %v2997_v13  ;;  %v58_v25 = vmul.f32 %v2168_v19, %v2997_v13  ;;  %v231_v28 = vld [vmem:[#allocation2 + $0x1] sm:$0xff] }
   0xb   :  { %149 = vst [vmem:[#allocation2 + $0xf0] sm:$0x1] %v2924_v2  ;;  %150 = vst [vmem:[#allocation2 + $0x100] sm:$0x1] %v2924_v2  ;;  %2397 = vmatpush3.bf16.msra.mxu1 %v2832_v5  ;;  %v2841_v24 = vld [vmem:[%s3576_s2 + $0x130] sm:$0xff]   ;;  %v59_v26 = vmul.f32 %v2169_v20, %v2997_v13  ;;  %v2236_v35 = vld [vmem:[%s3574_s0 + $0x18] sm:$0xff]  }
   0xc   :  { %151 = vst [vmem:[#allocation2 + $0x110] sm:$0x1] %v2924_v2  ;;  %152 = vst [vmem:[#allocation2 + $0x120] sm:$0x1] %v2924_v2  ;;  %2525 = vmatpush3.bf16.msra.mxu0 %v2833_v6  ;;  %2398 = vmatprep.subr.bf16.mxu1 %v2834_v7  ;;  %v77_v27 = vadd.f32 %v3008_v18, %v56_v22  ;;  %v78_v29 = vadd.f32 %v3008_v18, %v57_v23  ;;  %v2235_v30 = vld [vmem:[%s3574_s0 + $0x10] sm:$0xff]   ;;  %v2842_v36 = vld [vmem:[%s3576_s2 + $0x78] sm:$0xff]   ;;  %v2176_v39 = vunpack.c.l.bf16 %v2236_v35 }
   0xd   :  { %155 = vst [vmem:[#allocation2 + $0x19] sm:$0x1] %v2924_v2  ;;  %156 = vst [vmem:[#allocation2 + $0x29] sm:$0x1] %v2924_v2  ;;  %2526 = vmatprep.subr.bf16.mxu0 %v2835_v8  ;;  %v79_v31 = vadd.f32 %v3008_v18, %v58_v25  ;;  %v80_v32 = vadd.f32 %v3008_v18, %v59_v26  ;;  %v2172_v33 = vunpack.c.l.bf16 %v2235_v30  ;;  %v2173_v34 = vunpack.c.h.bf16 %v2235_v30  ;;  %v2843_v45 = vld [vmem:[%s3576_s2 + $0x138] sm:$0xff]   ;;  %v2237_v52 = vld [vmem:[%s3574_s0 + $0x20] sm:$0xff]  }
   0xe   :  { %157 = vst [vmem:[#allocation2 + $0x39] sm:$0x1] %v2924_v2  ;;  %158 = vst [vmem:[#allocation2 + $0x49] sm:$0x1] %v2924_v2  ;;  %v93_v37 = vmax.f32 %v77_v27, 0.0  ;;  %v3033_v38 = vmax.f32 %v78_v29, 0.0  ;;  %v2177_v40 = vunpack.c.h.bf16 %v2236_v35  ;;  %v62_v48 = vmul.f32 %v2176_v39, %v2997_v13 }
   0xf   :  { %159 = vst [vmem:[#allocation2 + $0x59] sm:$0x1] %v2924_v2  ;;  %160 = vst [vmem:[#allocation2 + $0x69] sm:$0x1] %v2924_v2  ;;  %2399 = vmatpush3.bf16.msra.mxu1 %v2834_v7  ;;  %v3035_v41 = vmax.f32 %v79_v31, 0.0  ;;  %v3037_v42 = vmax.f32 %v80_v32, 0.0  ;;  %v60_v43 = vmul.f32 %v2172_v33, %v2997_v13  ;;  %v61_v44 = vmul.f32 %v2173_v34, %v2997_v13 }
  0x10   :  { %161 = vst [vmem:[#allocation2 + $0x79] sm:$0x1] %v2924_v2  ;;  %162 = vst [vmem:[#allocation2 + $0x89] sm:$0x1] %v2924_v2  ;;  %2527 = vmatpush3.bf16.msra.mxu0 %v2835_v8  ;;  %2400 = vmatprep.subr.bf16.mxu1 %v2836_v9  ;;  %v247_v46 = vpack.c.bf16 %v93_v37, %v231_v28  ;;  %v979_v47 = vpack.c.bf16 %v3033_v38, %v93_v37  ;;  %v2180_v55 = vunpack.c.l.bf16 %v2237_v52  ;;  %v2238_v57 = vld [vmem:[%s3574_s0 + $0x28] sm:$0xff]   ;;  %v2844_v58 = vld [vmem:[%s3576_s2] sm:$0xff]  }
  0x11   :  { %165 = vst [vmem:[#allocation2 + $0xb9] sm:$0x1] %v2924_v2  ;;  %166 = vst [vmem:[#allocation2 + $0xc9] sm:$0x1] %v2924_v2  ;;  %2528 = vmatprep.subr.bf16.mxu0 %v2837_v10  ;;  %v63_v49 = vmul.f32 %v2177_v40, %v2997_v13  ;;  %v81_v50 = vadd.f32 %v3008_v18, %v60_v43  ;;  %v82_v51 = vadd.f32 %v3008_v18, %v61_v44  ;;  %v2845_v59 = vld [vmem:[%s3576_s2 + $0x140] sm:$0xff]   ;;  %v2846_v8 = vld [vmem:[%s3576_s2 + $0x8] sm:$0xff]  }
  0x12   :  { %167 = vst [vmem:[#allocation2 + $0xd9] sm:$0x1] %v2924_v2  ;;  %168 = vst [vmem:[#allocation2 + $0xe9] sm:$0x1] %v2924_v2  ;;  %2408 = vmatprep.mubr.bf16.mxu1 %v247_v46  ;;  %v83_v53 = vadd.f32 %v3008_v18, %v62_v48  ;;  %v2181_v56 = vunpack.c.h.bf16 %v2237_v52  ;;  %v2184_v62 = vunpack.c.l.bf16 %v2238_v57  ;;  %v2185_v63 = vunpack.c.h.bf16 %v2238_v57  ;;  %2536 = vmatprep.mubr.bf16.mxu0 %v979_v47  ;;  %v2239_v16 = vld [vmem:[%s3574_s0 + $0x30] sm:$0xff]   ;;  %v2240_v17 = vld [vmem:[%s3574_s0 + $0x38] sm:$0xff]  }
  0x13   :  { %169 = vst [vmem:[#allocation2 + $0xf9] sm:$0x1] %v2924_v2  ;;  %170 = vst [vmem:[#allocation2 + $0x109] sm:$0x1] %v2924_v2  ;;  %2401 = vmatpush3.bf16.msra.mxu1 %v2836_v9  ;;  %v84_v54 = vadd.f32 %v3008_v18, %v63_v49  ;;  %v3069_v60 = vmax.f32 %v81_v50, 0.0  ;;  %v3071_v61 = vmax.f32 %v82_v51, 0.0  ;;  %v248_v4 = vpack.c.bf16 %v3035_v41, %v3033_v38 }
  0x14   :  { %171 = vst [vmem:[#allocation2 + $0x119] sm:$0x1] %v2924_v2  ;;  %172 = vst [vmem:[#allocation2 + $0x129] sm:$0x1] %v2924_v2  ;;  %2529 = vmatpush3.bf16.msra.mxu0 %v2837_v10  ;;  %2402 = vmatprep.subr.bf16.mxu1 %v2838_v11  ;;  %v3073_v0 = vmax.f32 %v83_v53, 0.0  ;;  %v65_v3 = vmul.f32 %v2181_v56, %v2997_v13  ;;  %v66_v5 = vmul.f32 %v2184_v62, %v2997_v13  ;;  %v2847_v19 = vld [vmem:[%s3576_s2 + $0x148] sm:$0xff]  }
  0x15   :  { %154 = vst [vmem:[#allocation2 + $0x9] sm:$0x1] %v2924_v2  ;;  %134 = vst [vmem:[#allocation2] sm:$0x1] %v2924_v2  ;;  %2530 = vmatprep.subr.bf16.mxu0 %v2839_v14  ;;  %v3075_v1 = vmax.f32 %v84_v54, 0.0  ;;  %v67_v6 = vmul.f32 %v2185_v63, %v2997_v13  ;;  %v980_v7 = vpack.c.bf16 %v3037_v42, %v3035_v41  ;;  %v2188_v22 = vunpack.c.l.bf16 %v2239_v16  ;;  %v2848_v29 = vld [vmem:[%s3576_s2 + $0x10] sm:$0xff]  }
  0x16   :  { %143 = vst [vmem:[#allocation2 + $0x90] sm:$0x1] %v2924_v2  ;;  %144 = vst [vmem:[#allocation2 + $0xa0] sm:$0x1] %v2924_v2  ;;  %v3094_v9 = vpack.c.bf16 %v3069_v60, %v3037_v42  ;;  %v981_v12 = vpack.c.bf16 %v3071_v61, %v3069_v60  ;;  %v2189_v23 = vunpack.c.h.bf16 %v2239_v16  ;;  %v2192_v26 = vunpack.c.l.bf16 %v2240_v17  ;;  %v2849_v31 = vld [vmem:[%s3576_s2 + $0x150] sm:$0xff]   ;;  %v2851_v43 = vld [vmem:[%s3576_s2 + $0x158] sm:$0xff]  }
  0x17   :  { %153 = vst [vmem:[#allocation2 + $0x130] sm:$0x1] %v2924_v2  ;;  %163 = vst [vmem:[#allocation2 + $0x99] sm:$0x1] %v2924_v2  ;;  %2403 = vmatpush3.bf16.msra.mxu1 %v2838_v11  ;;  %v86_v11 = vadd.f32 %v3008_v18, %v65_v3  ;;  %v88_v15 = vadd.f32 %v3008_v18, %v67_v6  ;;  %v2193_v27 = vunpack.c.h.bf16 %v2240_v17  ;;  %v2852_v47 = vld [vmem:[%s3576_s2 + $0x20] sm:$0xff]   ;;  %v2854_v51 = vld [vmem:[%s3576_s2 + $0x28] sm:$0xff]  }
  0x18   :  { %164 = vst [vmem:[#allocation2 + $0xa9] sm:$0x1] %v2924_v2  ;;  %173 = vst [vmem:[#allocation2 + $0x139] sm:$0x1] %v2924_v2  ;;  %2531 = vmatpush3.bf16.msra.mxu0 %v2839_v14  ;;  %2404 = vmatprep.subr.bf16.mxu1 %v2840_v21  ;;  %v64_v2 = vmul.f32 %v2180_v55, %v2997_v13  ;;  %v87_v14 = vadd.f32 %v3008_v18, %v66_v5  ;;  %v2853_v48 = vld [vmem:[%s3576_s2 + $0x160] sm:$0xff]   ;;  %v2855_v52 = vld [vmem:[%s3576_s2 + $0x168] sm:$0xff]  }
  0x19   :  { %2532 = vmatprep.subr.bf16.mxu0 %v2841_v24  ;;  %109 = vst [vmem:[#allocation3] sm:$0xff] %v93_v37  ;;  %175 = vst [vmem:[#allocation2 + $0x11] sm:$0xff] %v93_v37  ;;  %v3121_v25 = vmax.f32 %v88_v15, 0.0  ;;  %v68_v28 = vmul.f32 %v2188_v22, %v2997_v13  ;;  %v69_v30 = vmul.f32 %v2189_v23, %v2997_v13  ;;  %v2856_v55 = vld [vmem:[%s3576_s2 + $0x30] sm:$0xff]   ;;  %v2858_v63 = vld [vmem:[%s3576_s2 + $0x38] sm:$0xff]  }
  0x1a   :  { %110 = vst [vmem:[#allocation3 + $0x8] sm:$0xff] %v3033_v38  ;;  %176 = vst [vmem:[#allocation2 + $0x21] sm:$0xff] %v3033_v38  ;;  %v85_v10 = vadd.f32 %v3008_v18, %v64_v2  ;;  %v70_v33 = vmul.f32 %v2192_v26, %v2997_v13  ;;  %v71_v34 = vmul.f32 %v2193_v27, %v2997_v13  ;;  %v2850_v13 = vld [vmem:[%s3576_s2 + $0x18] sm:$0xff]   ;;  %v2857_v56 = vld [vmem:[%s3576_s2 + $0x170] sm:$0xff]  }
  0x1b   :  { %111 = vst [vmem:[#allocation3 + $0x10] sm:$0xff] %v3035_v41  ;;  %177 = vst [vmem:[#allocation2 + $0x31] sm:$0xff] %v3035_v41  ;;  %2405 = vmatpush3.bf16.msra.mxu1 %v2840_v21  ;;  %v3117_v21 = vmax.f32 %v86_v11, 0.0  ;;  %v89_v32 = vadd.f32 %v3008_v18, %v68_v28  ;;  %v3145_v35 = vpack.c.bf16 %v3073_v0, %v3071_v61  ;;  %v2860_v6 = vld [vmem:[%s3576_s2 + $0x80] sm:$0xff]   ;;  %v2865_v28 = vld [vmem:[%s3576_s2 + $0x190] sm:$0xff]  }
  0x1c   :  { %112 = vst [vmem:[#allocation3 + $0x18] sm:$0xff] %v3037_v42  ;;  %178 = vst [vmem:[#allocation2 + $0x41] sm:$0xff] %v3037_v42  ;;  %2533 = vmatpush3.bf16.msra.mxu0 %v2841_v24  ;;  %2406 = vmatprep.subr.bf16.mxu1 %v2842_v36  ;;  %v3115_v20 = vmax.f32 %v85_v10, 0.0  ;;  %v3119_v24 = vmax.f32 %v87_v14, 0.0  ;;  %v90_v37 = vadd.f32 %v3008_v18, %v69_v30  ;;  %v191_v57 = vld [vmem:[#allocation2] sm:$0xff]  ;;  %v2862_v14 = vld [vmem:[%s3576_s2 + $0x88] sm:$0xff]  }
  0x1d   :  { %2534 = vmatprep.subr.bf16.mxu0 %v2843_v45  ;;  %113 = vst [vmem:[#allocation3 + $0x20] sm:$0xff] %v3069_v60  ;;  %179 = vst [vmem:[#allocation2 + $0x51] sm:$0xff] %v3069_v60  ;;  %v982_v38 = vpack.c.bf16 %v3075_v1, %v3073_v0  ;;  %v105_v39 = vmax.f32 %v89_v32, 0.0  ;;  %v91_v40 = vadd.f32 %v3008_v18, %v70_v33  ;;  %v2861_v10 = vld [vmem:[%s3576_s2 + $0x180] sm:$0xff]  }
  0x1e   :  { %114 = vst [vmem:[#allocation3 + $0x28] sm:$0xff] %v3071_v61  ;;  %180 = vst [vmem:[#allocation2 + $0x61] sm:$0xff] %v3071_v61  ;;  %v92_v41 = vadd.f32 %v3008_v18, %v71_v34  ;;  %v106_v42 = vmax.f32 %v90_v37, 0.0  ;;  %v983_v18 = vpack.c.bf16 %v3117_v21, %v3115_v20  ;;  %v3174_v49 = vpack.c.bf16 %v3119_v24, %v3117_v21  ;;  %v2867_v37 = vld [vmem:[%s3576_s2 + $0x198] sm:$0xff]  }
  0x1f   :  { %2407 = vmatpush3.bf16.msra.mxu1 %v2842_v36  ;;  %115 = vst [vmem:[#allocation3 + $0x30] sm:$0xff] %v3073_v0  ;;  %181 = vst [vmem:[#allocation2 + $0x71] sm:$0xff] %v3073_v0  ;;  %v239_v36 = vld [vmem:[#allocation2 + $0xa1] sm:$0xff]  ;;  %v984_v50 = vpack.c.bf16 %v3121_v25, %v3119_v24  ;;  %v3185_v53 = vpack.c.bf16 %v105_v39, %v3121_v25  ;;  %v2859_v0 = vld [vmem:[%s3576_s2 + $0x178] sm:$0xff]  }
  0x20   :  { %116 = vst [vmem:[#allocation3 + $0x38] sm:$0xff] %v3075_v1  ;;  %182 = vst [vmem:[#allocation2 + $0x81] sm:$0xff] %v3075_v1  ;;  %2535 = vmatpush3.bf16.msra.mxu0 %v2843_v45  ;;  %2424 = vmatprep.subr.bf16.mxu1 %v2844_v58  ;;  %v251_v44 = vpack.c.bf16 %v3115_v20, %v239_v36  ;;  %v107_v45 = vmax.f32 %v91_v40, 0.0  ;;  %v3159_v46 = vmax.f32 %v92_v41, 0.0  ;;  %v3199_v60 = vld [vmem:[#allocation2 + $0x12] sm:$0xff] }
  0x21   :  { %2552 = vmatprep.subr.bf16.mxu0 %v2845_v59  ;;  %117 = vst [vmem:[#allocation3 + $0x40] sm:$0xff] %v3115_v20  ;;  %183 = vst [vmem:[#allocation2 + $0xb1] sm:$0xff] %v3115_v20  ;;  %v985_v54 = vpack.c.bf16 %v106_v42, %v105_v39  ;;  %v3202_v62 = vld [vmem:[#allocation2 + $0x22] sm:$0xff]  ;;  %v2866_v36 = vld [vmem:[%s3576_s2 + $0x98] sm:$0xff]  }
  0x22   :  { %2409 = vmatmul.mubr.bf16.vlgmr.msra.gmra.mrb[0].mxu1 %v248_v4  ;;  %118 = vst [vmem:[#allocation3 + $0x48] sm:$0xff] %v3117_v21  ;;  %184 = vst [vmem:[#allocation2 + $0xc1] sm:$0xff] %v3117_v21  ;;  %v986_v61 = vpack.c.bf16 %v3159_v46, %v107_v45  ;;  %v1180_v3 = vpack.c.bf16 %v3202_v62, %v3199_v60  ;;  %v3214_v4 = vld [vmem:[#allocation2 + $0x20] sm:$0xff]  ;;  %v3216_v5 = vld [vmem:[#allocation2 + $0x30] sm:$0xff] }
  0x23   :  { %2537 = vmatmul.mubr.bf16.vlgmr.msra.gmra.mrb[0].mxu0 %v980_v7  ;;  %2425 = vmatpush3.bf16.msra.mxu1 %v2844_v58  ;;  %119 = vst [vmem:[#allocation3 + $0x50] sm:$0xff] %v3119_v24  ;;  %185 = vst [vmem:[#allocation2 + $0xd1] sm:$0xff] %v3119_v24  ;;  %v3195_v58 = vld [vmem:[#allocation2 + $0x10] sm:$0xff]  ;;  %v3228_v11 = vld [vmem:[#allocation2 + $0x40] sm:$0xff] }
  0x24   :  { %2553 = vmatpush3.bf16.msra.mxu0 %v2845_v59  ;;  %2426 = vmatprep.subr.bf16.mxu1 %v2846_v8  ;;  %120 = vst [vmem:[#allocation3 + $0x58] sm:$0xff] %v3121_v25  ;;  %186 = vst [vmem:[#allocation2 + $0xe1] sm:$0xff] %v3121_v25  ;;  %v3197_v59 = vpack.c.bf16 %v107_v45, %v106_v42  ;;  %v207_v2 = vpack.c.bf16 %v3195_v58, %v191_v57  ;;  %v3221_v7 = vld [vmem:[#allocation2 + $0x32] sm:$0xff]  ;;  %v2863_v20 = vld [vmem:[%s3576_s2 + $0x188] sm:$0xff]  }
  0x25   :  { %2554 = vmatprep.subr.bf16.mxu0 %v2847_v19  ;;  %2412 = vmatprep.mubr.bf16.mxu1 %v3094_v9  ;;  %121 = vst [vmem:[#allocation3 + $0x60] sm:$0xff] %v105_v39  ;;  %187 = vst [vmem:[#allocation2 + $0xf1] sm:$0xff] %v105_v39  ;;  %v3237_v15 = vld [vmem:[#allocation2 + $0x50] sm:$0xff]  ;;  %v3252_v22 = vld [vmem:[#allocation2 + $0x60] sm:$0xff] }
  0x26   :  { %2540 = vmatprep.mubr.bf16.mxu0 %v981_v12  ;;  %122 = vst [vmem:[#allocation3 + $0x68] sm:$0xff] %v106_v42  ;;  %188 = vst [vmem:[#allocation2 + $0x101] sm:$0xff] %v106_v42  ;;  %v3232_v12 = vpack.c.bf16 %v3216_v5, %v3214_v4  ;;  %v3241_v17 = vld [vmem:[#allocation2 + $0x52] sm:$0xff]  ;;  %v3250_v21 = vpack.c.bf16 %v3237_v15, %v3228_v11 }
  0x27   :  { %2427 = vmatpush3.bf16.msra.mxu1 %v2846_v8  ;;  %123 = vst [vmem:[#allocation3 + $0x70] sm:$0xff] %v107_v45  ;;  %189 = vst [vmem:[#allocation2 + $0x111] sm:$0xff] %v107_v45  ;;  %v3223_v8 = vld [vmem:[#allocation2 + $0x42] sm:$0xff]  ;;  %v3254_v23 = vld [vmem:[#allocation2 + $0x70] sm:$0xff] }
  0x28   :  { %2555 = vmatpush3.bf16.msra.mxu0 %v2847_v19  ;;  %2428 = vmatprep.subr.bf16.mxu1 %v2848_v29  ;;  %124 = vst [vmem:[#allocation3 + $0x78] sm:$0xff] %v3159_v46  ;;  %190 = vst [vmem:[#allocation2 + $0x121] sm:$0xff] %v3159_v46  ;;  %v1181_v16 = vpack.c.bf16 %v3223_v8, %v3221_v7  ;;  %v3243_v19 = vld [vmem:[#allocation2 + $0x62] sm:$0xff]  ;;  %v2864_v25 = vld [vmem:[%s3576_s2 + $0x90] sm:$0xff]  }
  0x29   :  { %2556 = vmatprep.subr.bf16.mxu0 %v2849_v31  ;;  %v1182_v24 = vpack.c.bf16 %v3243_v19, %v3241_v17  ;;  %v3262_v26 = vld [vmem:[#allocation2 + $0x72] sm:$0xff]  ;;  %v3264_v27 = vld [vmem:[#allocation2 + $0x82] sm:$0xff] }
  0x2a   :  { %2413 = vmatmul.mubr.bf16.gmra.mrb[4].mxu1 %v3145_v35  ;;  %v3270_v30 = vld [vmem:[#allocation2 + $0xb0] sm:$0xff]  ;;  %v1183_v33 = vpack.c.bf16 %v3264_v27, %v3262_v26  ;;  %v3280_v34 = vld [vmem:[#allocation2 + $0xc2] sm:$0xff] }
  0x2b   :  { %2541 = vmatmul.mubr.bf16.gmra.mrb[4].mxu0 %v982_v38  ;;  %2429 = vmatpush3.bf16.msra.mxu1 %v2848_v29  ;;  %v199_v29 = vld [vmem:[#allocation2 + $0xa0] sm:$0xff]  ;;  %v3276_v32 = vld [vmem:[#allocation2 + $0xb2] sm:$0xff] }
  0x2c   :  { %2557 = vmatpush3.bf16.msra.mxu0 %v2849_v31  ;;  %2430 = vmatprep.subr.bf16.mxu1 %v2850_v13  ;;  %v3274_v31 = vpack.c.bf16 %v3254_v23, %v3252_v22  ;;  %v211_v38 = vpack.c.bf16 %v3270_v30, %v199_v29  ;;  %v3289_v39 = vld [vmem:[#allocation2 + $0xc0] sm:$0xff]  ;;  %v3291_v40 = vld [vmem:[#allocation2 + $0xd0] sm:$0xff]  ;;  %v1184_v41 = vpack.c.bf16 %v3280_v34, %v3276_v32 }
  0x2d   :  { %2558 = vmatprep.subr.bf16.mxu0 %v2851_v43  ;;  %2416 = vmatprep.mubr.bf16.mxu1 %v251_v44  ;;  %v3299_v42 = vld [vmem:[#allocation2 + $0xd2] sm:$0xff]  ;;  %v2869_v44 = vld [vmem:[%s3576_s2 + $0x1a0] sm:$0xff]  }
  0x2e   :  { %2544 = vmatprep.mubr.bf16.mxu0 %v983_v18  ;;  %v3306_v45 = vld [vmem:[#allocation2 + $0xe0] sm:$0xff]  ;;  %v3310_v18 = vpack.c.bf16 %v3291_v40, %v3289_v39 }
  0x2f   :  { %2431 = vmatpush3.bf16.msra.mxu1 %v2850_v13  ;;  %v2868_v13 = vld [vmem:[%s3576_s2 + $0xa0] sm:$0xff]  }
  0x30   :  { %2559 = vmatpush3.bf16.msra.mxu0 %v2851_v43  ;;  %2432 = vmatprep.subr.bf16.mxu1 %v2852_v47  ;;  %v3301_v43 = vld [vmem:[#allocation2 + $0xe2] sm:$0xff] }
  0x31   :  { %2560 = vmatprep.subr.bf16.mxu0 %v2853_v48 }
  0x32   :  { %2417 = vmatmul.mubr.bf16.gmra.mrb[8].mxu1 %v3174_v49 }
  0x33   :  { %2545 = vmatmul.mubr.bf16.gmra.mrb[8].mxu0 %v984_v50  ;;  %2433 = vmatpush3.bf16.msra.mxu1 %v2852_v47  ;;  %v3312_v47 = vld [vmem:[#allocation2 + $0xf0] sm:$0xff]  ;;  %v1185_v50 = vpack.c.bf16 %v3301_v43, %v3299_v42 }
  0x34   :  { %2561 = vmatpush3.bf16.msra.mxu0 %v2853_v48  ;;  %2434 = vmatprep.subr.bf16.mxu1 %v2854_v51  ;;  %v3314_v48 = vld [vmem:[#allocation2 + $0xf2] sm:$0xff] }
  0x35   :  { %2562 = vmatprep.subr.bf16.mxu0 %v2855_v52  ;;  %2420 = vmatprep.mubr.bf16.mxu1 %v3185_v53 }
  0x36   :  { %2548 = vmatprep.mubr.bf16.mxu0 %v985_v54  ;;  %v2871_v54 = vld [vmem:[%s3576_s2 + $0x1a8] sm:$0xff]  }
  0x37   :  { %2435 = vmatpush3.bf16.msra.mxu1 %v2854_v51  ;;  %v3318_v51 = vld [vmem:[#allocation2 + $0x102] sm:$0xff] }
  0x38   :  { %2563 = vmatpush3.bf16.msra.mxu0 %v2855_v52  ;;  %2436 = vmatprep.subr.bf16.mxu1 %v2856_v55  ;;  %v2870_v52 = vld [vmem:[%s3576_s2 + $0xa8] sm:$0xff]   ;;  %v1186_v57 = vpack.c.bf16 %v3318_v51, %v3314_v48 }
  0x39   :  { %2564 = vmatprep.subr.bf16.mxu0 %v2857_v56 }
  0x3a   :  { %2421 = vmatmul.mubr.bf16.gmra.mrb[12].mxu1 %v3197_v59 }
  0x3b   :  { %2549 = vmatmul.mubr.bf16.gmra.mrb[12].mxu0 %v986_v61  ;;  %2437 = vmatpush3.bf16.msra.mxu1 %v2856_v55  ;;  %v3328_v55 = vpack.c.bf16 %v3312_v47, %v3306_v45  ;;  %v3335_v61 = vld [vmem:[#allocation2 + $0x110] sm:$0xff] }
  0x3c   :  { %2565 = vmatpush3.bf16.msra.mxu0 %v2857_v56  ;;  %2438 = vmatprep.subr.bf16.mxu1 %v2858_v63  ;;  %v3330_v56 = vld [vmem:[#allocation2 + $0x100] sm:$0xff] }
  0x3d   :  { %2566 = vmatprep.subr.bf16.mxu0 %v2859_v0  ;;  %2440 = vmatprep.mubr.bf16.mxu1 %v207_v2  ;;  %v3342_v2 = vld [vmem:[#allocation2 + $0x122] sm:$0xff] }
  0x3e   :  { %2568 = vmatprep.mubr.bf16.mxu0 %v1180_v3  ;;  %v2873_v3 = vld [vmem:[%s3576_s2 + $0x1b0] sm:$0xff]  }
  0x3f   :  { %2439 = vmatpush3.bf16.msra.mxu1 %v2858_v63  ;;  %v2872_v63 = vld [vmem:[%s3576_s2 + $0xb0] sm:$0xff]  }
  0x40   :  { %2567 = vmatpush3.bf16.msra.mxu0 %v2859_v0  ;;  %2456 = vmatprep.subr.bf16.mxu1 %v2860_v6  ;;  %v3340_v0 = vld [vmem:[#allocation2 + $0x112] sm:$0xff] }
  0x41   :  { %2584 = vmatprep.subr.bf16.mxu0 %v2861_v10 }
  0x42   :  { %2441 = vmatmul.mubr.bf16.vlgmr.msra.gmra.mrb[0].mxu1 %v3232_v12 }
  0x43   :  { %2569 = vmatmul.mubr.bf16.vlgmr.msra.gmra.mrb[0].mxu0 %v1181_v16  ;;  %2457 = vmatpush3.bf16.msra.mxu1 %v2860_v6  ;;  %v3350_v6 = vpack.c.bf16 %v3335_v61, %v3330_v56  ;;  %v2874_v16 = vld [vmem:[%s3576_s2 + $0xb8] sm:$0xff]  }
  0x44   :  { %2585 = vmatpush3.bf16.msra.mxu0 %v2861_v10  ;;  %2458 = vmatprep.subr.bf16.mxu1 %v2862_v14  ;;  %v561_v10 = vld [vmem:[#allocation2 + $0x2] sm:$0xff] }
  0x45   :  { %2586 = vmatprep.subr.bf16.mxu0 %v2863_v20  ;;  %2444 = vmatprep.mubr.bf16.mxu1 %v3250_v21 }
  0x46   :  { %2572 = vmatprep.mubr.bf16.mxu0 %v1182_v24  ;;  %v577_v24 = vpack.c.bf16 %v3199_v60, %v561_v10 }
  0x47   :  { %2459 = vmatpush3.bf16.msra.mxu1 %v2862_v14  ;;  %v1187_v14 = vpack.c.bf16 %v3342_v2, %v3340_v0 }
  0x48   :  { %2587 = vmatpush3.bf16.msra.mxu0 %v2863_v20  ;;  %2460 = vmatprep.subr.bf16.mxu1 %v2864_v25  ;;  %v2875_v20 = vld [vmem:[%s3576_s2 + $0x1b8] sm:$0xff]  }
  0x49   :  { %2588 = vmatprep.subr.bf16.mxu0 %v2865_v28 }
  0x4a   :  { %2445 = vmatmul.mubr.bf16.gmra.mrb[4].mxu1 %v3274_v31 }
  0x4b   :  { %2573 = vmatmul.mubr.bf16.gmra.mrb[4].mxu0 %v1183_v33  ;;  %2461 = vmatpush3.bf16.msra.mxu1 %v2864_v25 }
  0x4c   :  { %2589 = vmatpush3.bf16.msra.mxu0 %v2865_v28  ;;  %2462 = vmatprep.subr.bf16.mxu1 %v2866_v36 }
  0x4d   :  { %2590 = vmatprep.subr.bf16.mxu0 %v2867_v37  ;;  %2448 = vmatprep.mubr.bf16.mxu1 %v211_v38 }
  0x4e   :  { %2576 = vmatprep.mubr.bf16.mxu0 %v1184_v41 }
  0x4f   :  { %2463 = vmatpush3.bf16.msra.mxu1 %v2866_v36 }
  0x50   :  { %2591 = vmatpush3.bf16.msra.mxu0 %v2867_v37  ;;  %2464 = vmatprep.subr.bf16.mxu1 %v2868_v13 }
  0x51   :  { %2592 = vmatprep.subr.bf16.mxu0 %v2869_v44 }
  0x52   :  { %2449 = vmatmul.mubr.bf16.gmra.mrb[8].mxu1 %v3310_v18 }
  0x53   :  { %2577 = vmatmul.mubr.bf16.gmra.mrb[8].mxu0 %v1185_v50  ;;  %2465 = vmatpush3.bf16.msra.mxu1 %v2868_v13 }
  0x54   :  { %2593 = vmatpush3.bf16.msra.mxu0 %v2869_v44  ;;  %2466 = vmatprep.subr.bf16.mxu1 %v2870_v52 }
  0x55   :  { %2594 = vmatprep.subr.bf16.mxu0 %v2871_v54  ;;  %2452 = vmatprep.mubr.bf16.mxu1 %v3328_v55 }
  0x56   :  { %2580 = vmatprep.mubr.bf16.mxu0 %v1186_v57 }
  0x57   :  { %2467 = vmatpush3.bf16.msra.mxu1 %v2870_v52 }
  0x58   :  { %2595 = vmatpush3.bf16.msra.mxu0 %v2871_v54  ;;  %2468 = vmatprep.subr.bf16.mxu1 %v2872_v63 }
  0x59   :  { %2596 = vmatprep.subr.bf16.mxu0 %v2873_v3 }
  0x5a   :  { %2453 = vmatmul.mubr.bf16.gmra.mrb[12].mxu1 %v3350_v6 }
  0x5b   :  { %2581 = vmatmul.mubr.bf16.gmra.mrb[12].mxu0 %v1187_v14  ;;  %2469 = vmatpush3.bf16.msra.mxu1 %v2872_v63 }
  0x5c   :  { %11 = vsyncpa [#allocation4], 0  ;;  %2597 = vmatpush3.bf16.msra.mxu0 %v2873_v3  ;;  %2470 = vmatprep.subr.bf16.mxu1 %v2874_v16  ;;  %v2876_v25 = vld [vmem:[%s3576_s2 + $0xc0] sm:$0xff]   ;;  %v3371_v60 = vpack.c.bf16 %v3221_v7, %v3202_v62  ;;  %v2878_v29 = vld [vmem:[%s3576_s2 + $0xc8] sm:$0xff]   ;;  %v3381_v36 = vpack.c.bf16 %v3241_v17, %v3223_v8  ;;  %v3397_v17 = vpack.c.bf16 %v3262_v26, %v3243_v19 }
  0x5d   :  { %2598 = vmatprep.subr.bf16.mxu0 %v2875_v20  ;;  %2472 = vmatprep.mubr.bf16.mxu1 %v577_v24  ;;  %v2877_v28 = vld [vmem:[%s3576_s2 + $0x1c0] sm:$0xff]   ;;  %v2879_v33 = vld [vmem:[%s3576_s2 + $0x1c8] sm:$0xff]   ;;  %v2880_v62 = vld [vmem:[%s3576_s2 + $0xd0] sm:$0xff]   ;;  %v3427_v50 = vpack.c.bf16 %v3314_v48, %v3301_v43  ;;  %v3443_v48 = vpack.c.bf16 %v3340_v0, %v3318_v51  ;;  %v778_v51 = vpack.c.bf16 %v3214_v4, %v3195_v58 }
  0x5e   :  { %2600 = vmatprep.mubr.bf16.mxu0 %v3232_v12  ;;  %v3388_v7 = vld [vmem:[#allocation2 + $0x80] sm:$0xff]  ;;  %v1373_v12 = vld [vmem:[#allocation2 + $0x90] sm:$0xff]  ;;  %v2882_v38 = vld [vmem:[%s3576_s2 + $0xd8] sm:$0xff]   ;;  %v780_v4 = vpack.c.bf16 %v3252_v22, %v3237_v15  ;;  %v782_v22 = vpack.c.bf16 %v3289_v39, %v3270_v30  ;;  %v784_v30 = vpack.c.bf16 %v3330_v56, %v3312_v47 }
  0x5f   :  { %2471 = vmatpush3.bf16.msra.mxu1 %v2874_v16  ;;  %v2881_v8 = vld [vmem:[%s3576_s2 + $0x1d0] sm:$0xff]   ;;  %v1385_v37 = vpack.c.bf16 %v1373_v12, %v3388_v7  ;;  %v2883_v41 = vld [vmem:[%s3576_s2 + $0x1d8] sm:$0xff]   ;;  %v2884_v19 = vld [vmem:[%s3576_s2 + $0xe0] sm:$0xff]  }
  0x60   :  { %2599 = vmatpush3.bf16.msra.mxu0 %v2875_v20  ;;  %2488 = vmatprep.subr.bf16.mxu1 %v2876_v25  ;;  %v2885_v26 = vld [vmem:[%s3576_s2 + $0x1e0] sm:$0xff]   ;;  %v2886_v13 = vld [vmem:[%s3576_s2 + $0xe8] sm:$0xff]   ;;  %v2889_v43 = vld [vmem:[%s3576_s2 + $0x1f0] sm:$0xff]  }
  0x61   :  { %2616 = vmatprep.subr.bf16.mxu0 %v2877_v28  ;;  %v2887_v44 = vld [vmem:[%s3576_s2 + $0x1e8] sm:$0xff]   ;;  %v2890_v57 = vld [vmem:[%s3576_s2 + $0xf8] sm:$0xff]   ;;  %v2892_v3 = vld [vmem:[%s3576_s2 + $0x200] sm:$0xff]  }
  0x62   :  { %2473 = vmatmul.mubr.bf16.vlgmr.msra.gmra.mrb[0].mxu1 %v3371_v60  ;;  %v1567_v54 = vld [vmem:[#allocation2 + $0x21] sm:$0xff]  ;;  %v2891_v63 = vld [vmem:[%s3576_s2 + $0x1f8] sm:$0xff]   ;;  %v2898_v39 = vld [vmem:[%s3576_s2 + $0x230] sm:$0xff]  }
  0x63   :  { %2601 = vmatmul.mubr.bf16.vlgmr.msra.gmra.mrb[0].mxu0 %v3250_v21  ;;  %2489 = vmatpush3.bf16.msra.mxu1 %v2876_v25  ;;  %v569_v21 = vld [vmem:[#allocation2 + $0xa2] sm:$0xff]  ;;  %v1574_v10 = vld [vmem:[#allocation2 + $0x91] sm:$0xff] }
  0x64   :  { %2617 = vmatpush3.bf16.msra.mxu0 %v2877_v28  ;;  %2490 = vmatprep.subr.bf16.mxu1 %v2878_v29  ;;  %v2893_v58 = vld [vmem:[%s3576_s2 + $0x208] sm:$0xff]   ;;  %v1586_v15 = vpack.c.bf16 %v1574_v10, %v3075_v1  ;;  %v783_v1 = vpack.c.bf16 %v3306_v45, %v3291_v40 }
  0x65   :  { %2618 = vmatprep.subr.bf16.mxu0 %v2879_v33  ;;  %2476 = vmatprep.mubr.bf16.mxu1 %v3381_v36 }
  0x66   :  { %2604 = vmatprep.mubr.bf16.mxu0 %v3274_v31  ;;  %v581_v31 = vpack.c.bf16 %v3276_v32, %v569_v21  ;;  %v3417_v32 = vpack.c.bf16 %v3299_v42, %v3280_v34  ;;  %v2888_v34 = vld [vmem:[%s3576_s2 + $0xf0] sm:$0xff]   ;;  %v3434_v42 = vld [vmem:[#allocation2 + $0x120] sm:$0xff] }
  0x67   :  { %2491 = vmatpush3.bf16.msra.mxu1 %v2878_v29  ;;  %v785_v40 = vpack.c.bf16 %v3434_v42, %v3335_v61 }
  0x68   :  { %2619 = vmatpush3.bf16.msra.mxu0 %v2879_v33  ;;  %2492 = vmatprep.subr.bf16.mxu1 %v2880_v62 }
  0x69   :  { %2620 = vmatprep.subr.bf16.mxu0 %v2881_v8 }
  0x6a   :  { %2477 = vmatmul.mubr.bf16.gmra.mrb[4].mxu1 %v3397_v17 }
  0x6b   :  { %2605 = vmatmul.mubr.bf16.gmra.mrb[4].mxu0 %v1385_v37  ;;  %2493 = vmatpush3.bf16.msra.mxu1 %v2880_v62 }
  0x6c   :  { %2621 = vmatpush3.bf16.msra.mxu0 %v2881_v8  ;;  %2494 = vmatprep.subr.bf16.mxu1 %v2882_v38 }
  0x6d   :  { %2622 = vmatprep.subr.bf16.mxu0 %v2883_v41  ;;  %2480 = vmatprep.mubr.bf16.mxu1 %v581_v31 }
  0x6e   :  { %2608 = vmatprep.mubr.bf16.mxu0 %v3310_v18  ;;  %v1381_v18 = vld [vmem:[#allocation2 + $0x130] sm:$0xff] }
  0x6f   :  { %2495 = vmatpush3.bf16.msra.mxu1 %v2882_v38  ;;  %v1389_v52 = vpack.c.bf16 %v1381_v18, %v3434_v42 }
  0x70   :  { %2623 = vmatpush3.bf16.msra.mxu0 %v2883_v41  ;;  %2496 = vmatprep.subr.bf16.mxu1 %v2884_v19 }
  0x71   :  { %2624 = vmatprep.subr.bf16.mxu0 %v2885_v26 }
  0x72   :  { %2481 = vmatmul.mubr.bf16.gmra.mrb[8].mxu1 %v3417_v32 }
  0x73   :  { %2609 = vmatmul.mubr.bf16.gmra.mrb[8].mxu0 %v3328_v55  ;;  %2497 = vmatpush3.bf16.msra.mxu1 %v2884_v19  ;;  %v1568_v55 = vld [vmem:[#allocation2 + $0x31] sm:$0xff] }
  0x74   :  { %2625 = vmatpush3.bf16.msra.mxu0 %v2885_v26  ;;  %2498 = vmatprep.subr.bf16.mxu1 %v2886_v13  ;;  %v1583_v0 = vpack.c.bf16 %v1568_v55, %v1567_v54 }
  0x75   :  { %2626 = vmatprep.subr.bf16.mxu0 %v2887_v44  ;;  %2484 = vmatprep.mubr.bf16.mxu1 %v3427_v50 }
  0x76   :  { %2612 = vmatprep.mubr.bf16.mxu0 %v3350_v6  ;;  %v779_v6 = vpack.c.bf16 %v3228_v11, %v3216_v5  ;;  %v2894_v5 = vld [vmem:[%s3576_s2 + $0x210] sm:$0xff]   ;;  %v781_v11 = vpack.c.bf16 %v3388_v7, %v3254_v23  ;;  %v2897_v23 = vld [vmem:[%s3576_s2 + $0x228] sm:$0xff]  }
  0x77   :  { %2499 = vmatpush3.bf16.msra.mxu1 %v2886_v13 }
  0x78   :  { %2627 = vmatpush3.bf16.msra.mxu0 %v2887_v44  ;;  %2500 = vmatprep.subr.bf16.mxu1 %v2888_v34 }
  0x79   :  { %2628 = vmatprep.subr.bf16.mxu0 %v2889_v43 }
  0x7a   :  { %2485 = vmatmul.mubr.bf16.gmra.mrb[12].mxu1 %v3443_v48 }
  0x7b   :  { %2613 = vmatmul.mubr.bf16.gmra.mrb[12].mxu0 %v1389_v52  ;;  %2501 = vmatpush3.bf16.msra.mxu1 %v2888_v34 }
  0x7c   :  { %2629 = vmatpush3.bf16.msra.mxu0 %v2889_v43  ;;  %2502 = vmatprep.subr.bf16.mxu1 %v2890_v57 }
  0x7d   :  { %2630 = vmatprep.subr.bf16.mxu0 %v2891_v63  ;;  %2504 = vmatprep.mubr.bf16.mxu1 %v778_v51 }
  0x7e   :  { %2632 = vmatprep.mubr.bf16.mxu0 %v1583_v0 }
  0x7f   :  { %2503 = vmatpush3.bf16.msra.mxu1 %v2890_v57 }
  0x80   :  { %2631 = vmatpush3.bf16.msra.mxu0 %v2891_v63  ;;  %2680 = vmatprep.subr.bf16.mxu1 %v2892_v3 }
  0x81   :  { %2648 = vmatprep.subr.bf16.mxu0 %v2892_v3 }
  0x82   :  { %2505 = vmatmul.mubr.bf16.vlgmr.msra.gmra.mrb[0].mxu1 %v779_v6 }
  0x83   :  { %2633 = vmatmul.mubr.bf16.vlgmr.msra.gmra.mrb[0].mxu0 %v3094_v9  ;;  %2688 = vmatpush3.bf16.msra.mxu1 %v2892_v3  ;;  %v2895_v9 = vld [vmem:[%s3576_s2 + $0x218] sm:$0xff]  }
  0x84   :  { %2649 = vmatpush3.bf16.msra.mxu0 %v2892_v3  ;;  %2681 = vmatprep.subr.bf16.mxu1 %v2893_v58 }
  0x85   :  { %2650 = vmatprep.subr.bf16.mxu0 %v2893_v58  ;;  %2508 = vmatprep.mubr.bf16.mxu1 %v780_v4 }
  0x86   :  { %2636 = vmatprep.mubr.bf16.mxu0 %v3145_v35  ;;  %v2896_v35 = vld [vmem:[%s3576_s2 + $0x220] sm:$0xff]  }
  0x87   :  { %2689 = vmatpush3.bf16.msra.mxu1 %v2893_v58 }
  0x88   :  { %2651 = vmatpush3.bf16.msra.mxu0 %v2893_v58  ;;  %2682 = vmatprep.subr.bf16.mxu1 %v2894_v5 }
  0x89   :  { %2652 = vmatprep.subr.bf16.mxu0 %v2894_v5 }
  0x8a   :  { %2509 = vmatmul.mubr.bf16.gmra.mrb[4].mxu1 %v781_v11 }
  0x8b   :  { %2637 = vmatmul.mubr.bf16.gmra.mrb[4].mxu0 %v1586_v15  ;;  %2690 = vmatpush3.bf16.msra.mxu1 %v2894_v5 }
  0x8c   :  { %2653 = vmatpush3.bf16.msra.mxu0 %v2894_v5  ;;  %2683 = vmatprep.subr.bf16.mxu1 %v2895_v9 }
  0x8d   :  { %2654 = vmatprep.subr.bf16.mxu0 %v2895_v9  ;;  %2512 = vmatprep.mubr.bf16.mxu1 %v782_v22 }
  0x8e   :  { %2640 = vmatprep.mubr.bf16.mxu0 %v3174_v49  ;;  %v1582_v49 = vld [vmem:[#allocation2 + $0x131] sm:$0xff] }
  0x8f   :  { %2691 = vmatpush3.bf16.msra.mxu1 %v2895_v9  ;;  %v1590_v45 = vpack.c.bf16 %v1582_v49, %v3159_v46  ;;  %v1783_v46 = vld [vmem:[#allocation2 + $0x132] sm:$0xff] }
  0x90   :  { %2655 = vmatpush3.bf16.msra.mxu0 %v2895_v9  ;;  %2684 = vmatprep.subr.bf16.mxu1 %v2896_v35  ;;  %v1791_v47 = vpack.c.bf16 %v1783_v46, %v3342_v2 }
  0x91   :  { %2656 = vmatprep.subr.bf16.mxu0 %v2896_v35 }
  0x92   :  { %2513 = vmatmul.mubr.bf16.gmra.mrb[8].mxu1 %v783_v1 }
  0x93   :  { %2641 = vmatmul.mubr.bf16.gmra.mrb[8].mxu0 %v3185_v53  ;;  %2692 = vmatpush3.bf16.msra.mxu1 %v2896_v35  ;;  %v2899_v53 = vld [vmem:[%s3576_s2 + $0x238] sm:$0xff]   ;;  %s2925_s2 = smov [#allocation3]  }
  0x94   :  { %2657 = vmatpush3.bf16.msra.mxu0 %v2896_v35  ;;  %2685 = vmatprep.subr.bf16.mxu1 %v2897_v23  ;;  %s2069_s23 = sshll.u32 %s2925_s2, 4  ;;  %s2070_s23 = int_to_ptr.vmem [resolvable:$true] %s2069_s23 }
  0x95   :  { %2658 = vmatprep.subr.bf16.mxu0 %v2897_v23  ;;  %2516 = vmatprep.mubr.bf16.mxu1 %v784_v30  ;;  %s2900_s24 = scalar_lea.vmem %s2070_s23, 2048  ;;  %p2905_p1 = scmp.lt.s32.totalorder %s2070_s23, %s2070_s23 }
  0x96   :  { %2644 = vmatprep.mubr.bf16.mxu0 %v3197_v59  ;;  %v1775_v59 = vld [vmem:[#allocation2 + $0x92] sm:$0xff]  ;;  %p2901_p0 = scmp.ne.s32.totalorder %s2070_s23, %s2900_s24  ;;  %p2906_p2 = scmp.lt.s32.totalorder %s2900_s24, %s2900_s24 }
  0x97   :  { %2693 = vmatpush3.bf16.msra.mxu1 %v2897_v23  ;;  %v1787_v56 = vpack.c.bf16 %v1775_v59, %v3264_v27 }
  0x98   :  { %2659 = vmatpush3.bf16.msra.mxu0 %v2897_v23  ;;  %2686 = vmatprep.subr.bf16.mxu1 %v2898_v39  ;;  %p2907_p3 = por %p2906_p2, %p2905_p1 }
  0x99   :  { %2660 = vmatprep.subr.bf16.mxu0 %v2898_v39 }
  0x9a   :  { %2517 = vmatmul.mubr.bf16.gmra.mrb[12].mxu1 %v785_v40  ;;  %p2908_p4 = pnand %p2907_p3, %p2901_p0 }
  0x9b   :  { %2645 = vmatmul.mubr.bf16.gmra.mrb[12].mxu0 %v1590_v45  ;;  %2694 = vmatpush3.bf16.msra.mxu1 %v2898_v39 }
  0x9c   :  { %2661 = vmatpush3.bf16.msra.mxu0 %v2898_v39  ;;  %2687 = vmatprep.subr.bf16.mxu1 %v2899_v53 }
  0x9d   :  { %2662 = vmatprep.subr.bf16.mxu0 %v2899_v53  ;;  %2664 = vmatprep.mubr.bf16.mxu0 %v3371_v60 }
  0x9e   :  { %2672 = vmatprep.mubr.bf16.mxu1 %v3417_v32 }
  0x9f   :  { %2695 = vmatpush3.bf16.msra.mxu1 %v2899_v53 }
  0xa0   :  { %2663 = vmatpush3.bf16.msra.mxu0 %v2899_v53 }
  0xa2   :  { %2673 = vmatmul.mubr.bf16.vlgmr.msra.gmra.mrb[16].mxu1 %v3427_v50 }
  0xa3   :  { %2665 = vmatmul.mubr.bf16.vlgmr.msra.gmra.mrb[0].mxu0 %v3381_v36  ;;  %2676 = vmatprep.mubr.bf16.mxu1 %v3443_v48 }
  0xa4   :  { %2668 = vmatprep.mubr.bf16.mxu0 %v3397_v17 }
  0xaa   :  { %2677 = vmatmul.mubr.bf16.gmra.mrb[20].mxu1 %v1791_v47 }
  0xab   :  { %2669 = vmatmul.mubr.bf16.gmra.mrb[4].mxu0 %v1787_v56 }
  0xac   :  { %2911 = shalt.err (!%p2908_p4)
}
  0xad   :  { %s2912_s0 = scalar_lea.hbm %s3577_s3, 2048 }
  0xae   :  { %p2913_p5 = scmp.ne.s32.totalorder %s3577_s3, %s2912_s0  ;;  %p2916_p6 = scmp.lt.u32.totalorder %s2912_s0, %s3577_s3 }
  0xb0   :  { %p2918_p7 = pnand %p2916_p6, %p2913_p5 }
  0xb2   :  { %2921 = shalt.err (!%p2918_p7)
}
  0xb3   :  { %s2926_s30 = smov 128   ;;  %s2927_s6 = smov 8   ;;  %vm2061_vm0 = vcmask 1040384  }
  0xb4   :  { %2075 = dma.vmem_to_hbm [thread:$0]  %s2070_s23, 2048, %s3577_s3, [#allocation4], %s2926_s30, %s2926_s30, %s2927_s6  }
 0x155   :  { %v2506_v27 = vpop.f32.mrb[0].mxu1 }
 0x156   :  { %v884_v61 = vpop.f32.mrb[1].mxu1 }
 0x157   :  { %v2507_v2 = vpop.f32.mrb[2].mxu1 }
 0x158   :  { %v887_v14 = vpop.f32.mrb[3].mxu1 }
 0x15d   :  { %v2510_v16 = vpop.f32.mrb[4].mxu1 }
 0x15e   :  { %v3520_v20 = vpop.f32.mrb[5].mxu1 }
 0x15f   :  { %v3522_v24 = vpop.f32.mrb[6].mxu1 }
 0x160   :  { %v3524_v25 = vpop.f32.mrb[7].mxu1 }
 0x165   :  { %v2514_v28 = vpop.f32.mrb[8].mxu1 }
 0x166   :  { %v2642_v60 = vpop.f32.mrb[8].mxu0  ;;  %v916_v29 = vpop.f32.mrb[9].mxu1 }
 0x167   :  { %v2704_v33 = vadd.f32 %v2642_v60, %v2514_v28  ;;  %v1721_v36 = vpop.f32.mrb[9].mxu0  ;;  %v2515_v62 = vpop.f32.mrb[10].mxu1 }
 0x168   :  { %v2706_v7 = vadd.f32 %v1721_v36, %v916_v29  ;;  %v2643_v12 = vpop.f32.mrb[10].mxu0  ;;  %v919_v8 = vpop.f32.mrb[11].mxu1 }
 0x169   :  { %v2708_v17 = vadd.f32 %v2643_v12, %v2515_v62  ;;  %v1724_v21 = vpop.f32.mrb[11].mxu0 }
 0x16a   :  { %v2710_v37 = vadd.f32 %v1724_v21, %v919_v8 }
 0x16d   :  { %v2518_v38 = vpop.f32.mrb[12].mxu1 }
 0x16e   :  { %v2646_v41 = vpop.f32.mrb[12].mxu0  ;;  %v932_v31 = vpop.f32.mrb[13].mxu1 }
 0x16f   :  { %v2712_v19 = vadd.f32 %v2646_v41, %v2518_v38  ;;  %v1737_v26 = vpop.f32.mrb[13].mxu0  ;;  %v2519_v32 = vpop.f32.mrb[14].mxu1 }
 0x170   :  { %v2714_v13 = vadd.f32 %v1737_v26, %v932_v31  ;;  %v2647_v44 = vpop.f32.mrb[14].mxu0  ;;  %v935_v50 = vpop.f32.mrb[15].mxu1 }
 0x171   :  { %v2716_v34 = vadd.f32 %v2647_v44, %v2519_v32  ;;  %v1740_v42 = vpop.f32.mrb[15].mxu0 }
 0x172   :  { %v2718_v18 = vadd.f32 %v1740_v42, %v935_v50 }
 0x175   :  { %v2674_v43 = vpop.f32.mrb[16].mxu1 }
 0x176   :  { %v2666_v48 = vpop.f32.mrb[0].mxu0  ;;  %v3526_v52 = vadd.f32 %v2704_v33, %v2674_v43  ;;  %v1922_v54 = vpop.f32.mrb[17].mxu1 }
 0x177   :  { %v2696_v55 = vadd.f32 %v2666_v48, %v2506_v27  ;;  %v1890_v57 = vpop.f32.mrb[1].mxu0  ;;  %v3528_v63 = vadd.f32 %v2706_v7, %v1922_v54  ;;  %v2675_v51 = vpop.f32.mrb[18].mxu1 }
 0x178   :  { %v2697_v0 = vadd.f32 %v1890_v57, %v884_v61  ;;  %v2667_v3 = vpop.f32.mrb[2].mxu0  ;;  %v3530_v6 = vadd.f32 %v2708_v17, %v2675_v51  ;;  %v1925_v58 = vpop.f32.mrb[19].mxu1 }
 0x179   :  { %v2698_v4 = vadd.f32 %v2667_v3, %v2507_v2  ;;  %v1893_v10 = vpop.f32.mrb[3].mxu0  ;;  %v2711_v5 = vadd.f32 %v2710_v37, %v1925_v58  ;;  %v2025_v39 = vmul.f32 %v2696_v55, %v2696_v55 }
 0x17a   :  { %v2222_v11 = vpack.c.bf16 %v3530_v6, %v3526_v52  ;;  %v2699_v15 = vadd.f32 %v1893_v10, %v887_v14  ;;  %v2023_v35 = vmul.f32 %v2697_v0, %v2697_v0 }
 0x17b   :  { %v2202_v9 = vpack.c.bf16 %v2698_v4, %v2696_v55  ;;  %v2217_v22 = vpack.c.bf16 %v2711_v5, %v3528_v63  ;;  %v2026_v2 = vmul.f32 %v2698_v4, %v2698_v4  ;;  %v2032_v43 = vmul.f32 %v2711_v5, %v2711_v5 }
 0x17c   :  { %2245 = vst [vmem:[%s3578_s4 + $0x28] sm:$0xff] %v2222_v11   ;;  %v2197_v1 = vpack.c.bf16 %v2699_v15, %v2697_v0  ;;  %v2001_v23 = vadd.f32 %v2699_v15, %v2697_v0  ;;  %v2024_v30 = vmul.f32 %v2699_v15, %v2699_v15  ;;  %v2034_v0 = vmul.f32 %v3530_v6, %v3530_v6 }
 0x17d   :  { %2241 = vst [vmem:[%s3578_s4 + $0x8] sm:$0xff] %v2202_v9   ;;  %2244 = vst [vmem:[%s3578_s4 + $0x20] sm:$0xff] %v2217_v22   ;;  %v2678_v49 = vpop.f32.mrb[20].mxu1 }
 0x17e   :  { %2198 = vst [vmem:[%s3578_s4] sm:$0xff] %v2197_v1   ;;  %v2002_v40 = vadd.f32 %v2696_v55, %v2001_v23  ;;  %v2039_v45 = vadd.f32 %v2024_v30, %v2023_v35  ;;  %v2670_v53 = vpop.f32.mrb[4].mxu0  ;;  %v2713_v46 = vadd.f32 %v2712_v19, %v2678_v49  ;;  %v1938_v59 = vpop.f32.mrb[21].mxu1  ;;  %v2033_v55 = vmul.f32 %v3526_v52, %v3526_v52 }
 0x17f   :  { %v2700_v47 = vadd.f32 %v2670_v53, %v2510_v16  ;;  %v1906_v56 = vpop.f32.mrb[5].mxu0  ;;  %v2715_v27 = vadd.f32 %v2714_v13, %v1938_v59  ;;  %v2679_v61 = vpop.f32.mrb[22].mxu1 }
 0x180   :  { %v2040_v14 = vadd.f32 %v2039_v45, %v2025_v39  ;;  %v2701_v28 = vadd.f32 %v1906_v56, %v3520_v20  ;;  %v2003_v60 = vadd.f32 %v2698_v4, %v2002_v40  ;;  %v2671_v29 = vpop.f32.mrb[6].mxu0  ;;  %v1941_v33 = vpop.f32.mrb[23].mxu1  ;;  %v2717_v62 = vadd.f32 %v2716_v34, %v2679_v61 }
 0x181   :  { %v2702_v36 = vadd.f32 %v2671_v29, %v3522_v24  ;;  %v1909_v7 = vpop.f32.mrb[7].mxu0  ;;  %v2719_v20 = vadd.f32 %v2718_v18, %v1941_v33  ;;  %v2029_v24 = vmul.f32 %v2700_v47, %v2700_v47  ;;  %v2031_v34 = vmul.f32 %v3528_v63, %v3528_v63 }
 0x182   :  { %v2004_v12 = vadd.f32 %v2701_v28, %v2003_v60  ;;  %v2027_v8 = vmul.f32 %v2701_v28, %v2701_v28  ;;  %v2041_v17 = vadd.f32 %v2040_v14, %v2026_v2  ;;  %v2703_v21 = vadd.f32 %v1909_v7, %v3524_v25 }
 0x183   :  { %v2212_v16 = vpack.c.bf16 %v2702_v36, %v2700_v47  ;;  %v2232_v37 = vpack.c.bf16 %v2717_v62, %v2713_v46  ;;  %v2227_v32 = vpack.c.bf16 %v2719_v20, %v2715_v27  ;;  %v2030_v13 = vmul.f32 %v2702_v36, %v2702_v36 }
 0x184   :  { %v2042_v38 = vadd.f32 %v2041_v17, %v2027_v8  ;;  %v2207_v41 = vpack.c.bf16 %v2703_v21, %v2701_v28  ;;  %v2005_v31 = vadd.f32 %v2703_v21, %v2004_v12  ;;  %v2028_v19 = vmul.f32 %v2703_v21, %v2703_v21 }
 0x185   :  { %2243 = vst [vmem:[%s3578_s4 + $0x18] sm:$0xff] %v2212_v16   ;;  %2247 = vst [vmem:[%s3578_s4 + $0x38] sm:$0xff] %v2232_v37   ;;  %v2035_v4 = vmul.f32 %v2715_v27, %v2715_v27  ;;  %v2036_v15 = vmul.f32 %v2719_v20, %v2719_v20  ;;  %v2037_v22 = vmul.f32 %v2713_v46, %v2713_v46 }
 0x186   :  { %2242 = vst [vmem:[%s3578_s4 + $0x10] sm:$0xff] %v2207_v41   ;;  %v2006_v25 = vadd.f32 %v2700_v47, %v2005_v31  ;;  %v2043_v26 = vadd.f32 %v2042_v38, %v2028_v19  ;;  %2246 = vst [vmem:[%s3578_s4 + $0x30] sm:$0xff] %v2227_v32   ;;  %v2038_v1 = vmul.f32 %v2717_v62, %v2717_v62 }
 0x188   :  { %v2007_v44 = vadd.f32 %v2702_v36, %v2006_v25  ;;  %v2044_v50 = vadd.f32 %v2043_v26, %v2029_v24 }
 0x18a   :  { %v2008_v42 = vadd.f32 %v3528_v63, %v2007_v44  ;;  %v2045_v18 = vadd.f32 %v2044_v50, %v2030_v13 }
 0x18c   :  { %v2046_v48 = vadd.f32 %v2045_v18, %v2031_v34  ;;  %v2009_v54 = vadd.f32 %v2711_v5, %v2008_v42 }
 0x18e   :  { %v2010_v57 = vadd.f32 %v3526_v52, %v2009_v54  ;;  %v2047_v51 = vadd.f32 %v2046_v48, %v2032_v43 }
 0x190   :  { %v2011_v3 = vadd.f32 %v3530_v6, %v2010_v57  ;;  %v2048_v58 = vadd.f32 %v2047_v51, %v2033_v55 }
 0x192   :  { %v2012_v10 = vadd.f32 %v2715_v27, %v2011_v3  ;;  %v2049_v11 = vadd.f32 %v2048_v58, %v2034_v0 }
 0x194   :  { %v2013_v63 = vadd.f32 %v2719_v20, %v2012_v10  ;;  %v2050_v9 = vadd.f32 %v2049_v11, %v2035_v4 }
 0x196   :  { %v2014_v5 = vadd.f32 %v2713_v46, %v2013_v63  ;;  %v2051_v35 = vadd.f32 %v2050_v9, %v2036_v15 }
 0x198   :  { %v2015_v23 = vadd.f32 %v2717_v62, %v2014_v5  ;;  %v2052_v30 = vadd.f32 %v2051_v35, %v2037_v22 }
 0x19a   :  { %v2016_v52 = vrot.slane %v2015_v23, 4  ;;  %v2053_v49 = vadd.f32 %v2052_v30, %v2038_v1 }
 0x19c   :  { %v2017_v39 = vadd.f32 %v2016_v52, %v2015_v23  ;;  %v2054_v40 = vrot.slane %v2053_v49, 4 }
 0x19e   :  { %v2018_v45 = vrot.slane %v2017_v39, 2  ;;  %v2055_v53 = vadd.f32 %v2054_v40, %v2053_v49 }
 0x1a0   :  { %v2019_v6 = vadd.f32 %v2018_v45, %v2017_v39  ;;  %v2056_v59 = vrot.slane %v2055_v53, 2 }
 0x1a2   :  { %v2020_v47 = vrot.slane %v2019_v6, 1  ;;  %v2057_v56 = vadd.f32 %v2056_v59, %v2055_v53 }
 0x1a4   :  { %v2058_v27 = vrot.slane %v2057_v56, 1  ;;  %v2021_v61 = vadd.f32 %v2020_v47, %v2019_v6 }
 0x1a6   :  { %v2059_v2 = vadd.f32 %v2058_v27, %v2057_v56 }
 0x1a8   :  { %v2062_v14 = vsel %vm2061_vm0, %v2021_v61, %v2059_v2 }
 0x1a9   :  { %2063 = vst [vmem:[%s3579_s5] sm:$0x3] %v2062_v14 }
 0x1aa   :  { %2922 = dma.done.wait [#allocation4], 2048  }
 0x1ab   :  { %2923 = vsyncadd [#allocation4], 4294965248 }
 0x1ac   :  { %2087 = vsyncpa [#allocation4], 1 }

</bundles_post_ra>
